<compile_context>
chip_gen: v7x
topology: tpu7x:2x2x1
jax: 0.10.0
libtpu: 0.0.40
codegen_flags: <defaults>
</compile_context>

<pallas_src>
import functools

import jax
import jax.numpy as jnp
from jax import lax
from jax.experimental import pallas as pl
from jax.experimental.pallas import tpu as pltpu


# ---------------------------------------------------------------------------
# helpers
# ---------------------------------------------------------------------------
def _act(y, act):
    """ConvBNLayer activation (f32 VPU math)."""
    if act == "relu":
        return jnp.maximum(y, 0.0)
    if act == "hardswish":                       # x * relu6(x + 3) / 6
        return y * (jnp.clip(y + 3.0, 0.0, 6.0) * (1.0 / 6.0))
    return y                                     # if_act=False


def _fold_bn(p, eps=1e-5):
    # TODO(synk): BatchNorm is folded in inference mode (running stats);
    # training-mode batch statistics are not reproduced.
    s = p["gamma"] / jnp.sqrt(p["var"] + eps)
    return p["w"] * s, (p["b"] - p["mean"]) * s + p["beta"]


def _stride_hw(stride):
    if isinstance(stride, int):
        return stride, stride
    return int(stride[0]), int(stride[1])


def _is_shortcut(stride, cin, cout):
    # exact PyTorch semantics: `stride == 1 and in_channels == out_channels`
    return (stride == 1) and (cin == cout)


# ---------------------------------------------------------------------------
# fused ResidualUnit kernel
# ---------------------------------------------------------------------------
def _residual_unit_kernel(H, W, k, sh, p, Ho, Wo, act, use_se, shortcut, *refs):
    if use_se:
        (x_ref, we_ref, be_ref, wd_ref, bd_ref,
         w1_ref, b1_ref, w2_ref, b2_ref,
         wl_ref, bl_ref, o_ref, exp_ref, dw_ref) = refs
    else:
        (x_ref, we_ref, be_ref, wd_ref, bd_ref,
         wl_ref, bl_ref, o_ref, exp_ref, dw_ref) = refs

    mid = we_ref.shape[1]

    # ---- 1) expand 1x1 conv (+folded BN) + act: one MXU matmul over all pixels
    x_bf = x_ref[0].astype(jnp.bfloat16)                        # (H*W, Cin)
    y = jnp.dot(x_bf, we_ref[...], preferred_element_type=jnp.float32)
    y = _act(y + be_ref[...], act)                              # (H*W, mid) f32

    # ---- 2) scatter rows into a zero-padded VMEM scratch, bucketed by
    #      (padded_row % stride) so the strided depthwise conv only touches
    #      contiguous row slices (no wasted stride-1 rows, no strided loads).
    exp_ref[...] = jnp.zeros_like(exp_ref)                      # zero halo
    for r in range(H):
        rp = r + p
        exp_ref[rp % sh, rp // sh, p:p + W, :] = y[r * W:(r + 1) * W, :]

    # ---- 3) depthwise k x k conv, stride (sh, 1), + folded BN + act.
    #      Weights/bias are loaded ONCE before the unrolled tap loop.
    wd = wd_ref[...]                                            # (k*k, mid) f32
    bd = bd_ref[...]                                            # (1, mid)   f32
    acc = jnp.zeros((Ho, Wo, mid), jnp.float32)
    for kh in range(k):
        bkt, base = kh % sh, kh // sh
        for kw in range(k):
            tap = exp_ref[bkt, base:base + Ho, kw:kw + Wo, :]   # (Ho, Wo, mid)
            acc = acc + tap * wd[kh * k + kw:kh * k + kw + 1, :]
    dw = _act(acc + bd, act)                                    # (Ho, Wo, mid)

    # ---- 4) SE (fused): global avg pool -> FC+relu -> FC+hsigmoid -> rescale
    if use_se:
        pooled = jnp.sum(dw, axis=0)                            # (Wo, mid)
        pooled = jnp.sum(pooled, axis=0, keepdims=True) * (1.0 / (Ho * Wo))
        h = jnp.dot(pooled.astype(jnp.bfloat16), w1_ref[...],
                    preferred_element_type=jnp.float32) + b1_ref[...]
        h = jnp.maximum(h, 0.0)
        e = jnp.dot(h.astype(jnp.bfloat16), w2_ref[...],
                    preferred_element_type=jnp.float32) + b2_ref[...]
        e = jnp.clip(e + 3.0, 0.0, 6.0) * (1.0 / 6.0)           # relu6(x+3)/6
        dw = dw * e
    dw_ref[...] = dw

    # ---- 5) linear 1x1 conv (+folded BN, no act) + optional residual add
    wl = wl_ref[...]                                            # (mid, Cout) bf16
    bl = bl_ref[...]                                            # (1, Cout)   f32
    for ro in range(Ho):
        z = jnp.dot(dw_ref[ro].astype(jnp.bfloat16), wl,
                    preferred_element_type=jnp.float32) + bl    # (Wo, Cout)
        if shortcut:
            z = z + x_ref[0, ro * W:(ro + 1) * W, :]            # residual (f32)
        o_ref[0, ro] = z


# ---------------------------------------------------------------------------
# wrapper
# ---------------------------------------------------------------------------
def residual_unit_forward(params, x_nchw):
    """Forward of the PyTorch ResidualUnit.  NCHW in / NCHW out (like torch);
    internally NHWC so channels map to the TPU lane dimension."""
    x = jnp.transpose(x_nchw, (0, 2, 3, 1)).astype(jnp.float32)   # -> NHWC
    N, H, W, cin = x.shape

    k, stride = params["k"], params["stride"]
    act, use_se = params["act"], params["use_se"]
    sh, sw = _stride_hw(stride)
    assert sw == 1, "only stride (s, 1) implemented"  # TODO(synk): column stride
    p = (k - 1) // 2
    Wp = W + 2 * p
    Ho = (H + 2 * p - k) // sh + 1
    Wo = W
    # rows of the padded expanded activation, bucketed by (row % sh)
    Hb = max((k - 1) // sh + Ho, (p + H - 1) // sh + 1)

    # fold BN; MXU operands -> bf16, depthwise weights stay f32 (v5e-friendly)
    we, be = _fold_bn(params["expand"])
    wd, bd = _fold_bn(params["dw"])
    wl, bl = _fold_bn(params["linear"])
    mid, cout = we.shape[1], wl.shape[1]
    shortcut = _is_shortcut(stride, cin, cout)

    operands = [(x.reshape(N, H * W, cin),
                 pl.BlockSpec((1, H * W, cin), lambda n: (n, 0, 0)))]

    def add_full(arr):  # whole-array (2-D) operand, revisited every grid step
        operands.append((arr, pl.BlockSpec(arr.shape, lambda n: (0, 0))))

    add_full(we.astype(jnp.bfloat16))
    add_full(be.reshape(1, mid))
    add_full(wd)
    add_full(bd.reshape(1, mid))
    if use_se:
        se = params["se"]
        cr = se["w1"].shape[1]
        add_full(se["w1"].astype(jnp.bfloat16))
        add_full(se["b1"].reshape(1, cr))
        add_full(se["w2"].astype(jnp.bfloat16))
        add_full(se["b2"].reshape(1, mid))
    add_full(wl.astype(jnp.bfloat16))
    add_full(bl.reshape(1, cout))
    inputs, in_specs = zip(*operands)

    kernel = functools.partial(_residual_unit_kernel, H, W, k, sh, p, Ho, Wo,
                               act, use_se, shortcut)
    y = pl.pallas_call(
        kernel,
        out_shape=jax.ShapeDtypeStruct((N, Ho, Wo, cout), jnp.float32),
        grid=(N,),                                   # one batch element / step
        in_specs=list(in_specs),
        out_specs=pl.BlockSpec((1, Ho, Wo, cout), lambda n: (n, 0, 0, 0)),
        scratch_shapes=[
            pltpu.VMEM((sh, Hb, Wp, mid), jnp.float32),   # padded expanded act
            pltpu.VMEM((Ho, Wo, mid), jnp.float32),       # depthwise / SE out
        ],
        compiler_params=pltpu.CompilerParams(
            dimension_semantics=("parallel",)),      # v7x: 2 TCs split batch
    )(*inputs)
    return jnp.transpose(y, (0, 3, 1, 2))            # -> NCHW


# ---------------------------------------------------------------------------
# pure-JAX reference (same BN folding + same bf16 matmul inputs)
# ---------------------------------------------------------------------------
def residual_unit_reference(params, x_nchw):
    x = jnp.transpose(x_nchw, (0, 2, 3, 1)).astype(jnp.float32)
    N, H, W, cin = x.shape
    k, stride = params["k"], params["stride"]
    act, use_se = params["act"], params["use_se"]
    sh, sw = _stride_hw(stride)
    p = (k - 1) // 2

    we, be = _fold_bn(params["expand"])
    mid = we.shape[1]
    y = jnp.dot(x.reshape(-1, cin).astype(jnp.bfloat16), we.astype(jnp.bfloat16),
                preferred_element_type=jnp.float32).reshape(N, H, W, mid)
    y = _act(y + be, act)

    wd, bd = _fold_bn(params["dw"])
    y = lax.conv_general_dilated(
        y, wd.reshape(k, k, 1, mid), window_strides=(sh, sw),
        padding=((p, p), (p, p)),
        dimension_numbers=("NHWC", "HWIO", "NHWC"), feature_group_count=mid)
    y = _act(y + bd, act)

    if use_se:
        se = params["se"]
        pooled = jnp.mean(y, axis=(1, 2))
        h = jnp.maximum(
            jnp.dot(pooled.astype(jnp.bfloat16), se["w1"].astype(jnp.bfloat16),
                    preferred_element_type=jnp.float32) + se["b1"], 0.0)
        e = jnp.dot(h.astype(jnp.bfloat16), se["w2"].astype(jnp.bfloat16),
                    preferred_element_type=jnp.float32) + se["b2"]
        e = jnp.clip(e + 3.0, 0.0, 6.0) / 6.0
        y = y * e[:, None, None, :]

    wl, bl = _fold_bn(params["linear"])
    cout = wl.shape[1]
    N2, H2, W2, _ = y.shape
    z = jnp.dot(y.reshape(-1, mid).astype(jnp.bfloat16), wl.astype(jnp.bfloat16),
                preferred_element_type=jnp.float32).reshape(N2, H2, W2, cout) + bl
    if _is_shortcut(stride, cin, cout):
        z = z + x
    return jnp.transpose(z, (0, 3, 1, 2))


# ---------------------------------------------------------------------------
# deterministic synthetic parameters
# ---------------------------------------------------------------------------
class _Key:
    def __init__(self, seed):
        self._k = jax.random.PRNGKey(seed)

    def __call__(self):
        self._k, sub = jax.random.split(self._k)
        return sub


def _init_convbn(kg, w_shape, cout, fan_in):
    std = 1.0 / float(fan_in) ** 0.5
    return dict(
        w=jax.random.normal(kg(), w_shape, jnp.float32) * std,
        b=jax.random.normal(kg(), (cout,), jnp.float32) * 0.05,
        gamma=jax.random.uniform(kg(), (cout,), jnp.float32, minval=0.7, maxval=1.3),
        beta=jax.random.normal(kg(), (cout,), jnp.float32) * 0.05,
        mean=jax.random.normal(kg(), (cout,), jnp.float32) * 0.05,
        var=jax.random.uniform(kg(), (cout,), jnp.float32, minval=0.5, maxval=1.5),
    )


def build_residual_unit_params(seed, in_channels, mid_channels, out_channels,
                               kernel_size, stride, use_se, act):
    kg = _Key(seed)
    k = kernel_size
    prm = dict(
        expand=_init_convbn(kg, (in_channels, mid_channels), mid_channels, in_channels),
        dw=_init_convbn(kg, (k * k, mid_channels), mid_channels, k * k),
        linear=_init_convbn(kg, (mid_channels, out_channels), out_channels, mid_channels),
        k=k, stride=stride, act=act, use_se=use_se,
    )
    if use_se:
        cr = mid_channels // 4
        prm["se"] = dict(
            w1=jax.random.normal(kg(), (mid_channels, cr), jnp.float32) / float(mid_channels) ** 0.5,
            b1=jax.random.normal(kg(), (cr,), jnp.float32) * 0.05,
            w2=jax.random.normal(kg(), (cr, mid_channels), jnp.float32) / float(cr) ** 0.5,
            b2=jax.random.normal(kg(), (mid_channels,), jnp.float32) * 0.05,
        )
    return prm


# ---------------------------------------------------------------------------
if __name__ == "__main__":
    x = jax.random.normal(jax.random.PRNGKey(0), (2, 16, 16, 16), jnp.float32)  # NCHW

    configs = [
        # shortcut path: stride 1, Cin == Cout, no SE, relu
        dict(in_channels=16, mid_channels=64, out_channels=16,
             kernel_size=3, stride=1, use_se=False, act="relu"),
        # strided + SE path: stride (2, 1), k=5, hardswish
        dict(in_channels=16, mid_channels=64, out_channels=32,
             kernel_size=5, stride=(2, 1), use_se=True, act="hardswish"),
    ]
    for i, cfg in enumerate(configs):
        prm = build_residual_unit_params(seed=i + 1, **cfg)
        fwd = jax.jit(functools.partial(residual_unit_forward, prm))
        out = fwd(x)
        jax.block_until_ready(out)

        ref = residual_unit_reference(prm, x)
        assert out.shape == ref.shape, (out.shape, ref.shape)
        assert out.dtype == jnp.float32
        err = float(jnp.max(jnp.abs(out - ref)))
        assert err < 5e-2, (cfg, err)

    print("KERNEL_OK")
</pallas_src>

<mosaic_0001>
module attributes {stable_mosaic.version = 11 : i64} {
  func.func @_residual_unit_kernel(%arg0: i32, %arg1: memref<1x256x16xf32, #tpu.memory_space<vmem>>, %arg2: memref<16x64xbf16, #tpu.memory_space<vmem>>, %arg3: memref<1x64xf32, #tpu.memory_space<vmem>>, %arg4: memref<9x64xf32, #tpu.memory_space<vmem>>, %arg5: memref<1x64xf32, #tpu.memory_space<vmem>>, %arg6: memref<64x16xbf16, #tpu.memory_space<vmem>>, %arg7: memref<1x16xf32, #tpu.memory_space<vmem>>, %arg8: memref<1x16x16x16xf32, #tpu.memory_space<vmem>>, %arg9: memref<1x18x18x64xf32, #tpu.memory_space<vmem>>, %arg10: memref<16x16x64xf32, #tpu.memory_space<vmem>>) attributes {dimension_semantics = [#tpu.dimension_semantics<parallel>], iteration_bounds = array<i64: 2>, scalar_prefetch = 0 : i64, scratch_operands = 2 : i64, tpu.core_type = #tpu.core_type<tc>, window_params = [{transform_indices = @transform_0, window_bounds = array<i64: 1, 256, 16>}, {pipeline_mode = #tpu.pipeline_mode<synchronous>, transform_indices = @transform_1, window_bounds = array<i64: 16, 64>}, {pipeline_mode = #tpu.pipeline_mode<synchronous>, transform_indices = @transform_2, window_bounds = array<i64: 1, 64>}, {pipeline_mode = #tpu.pipeline_mode<synchronous>, transform_indices = @transform_3, window_bounds = array<i64: 9, 64>}, {pipeline_mode = #tpu.pipeline_mode<synchronous>, transform_indices = @transform_4, window_bounds = array<i64: 1, 64>}, {pipeline_mode = #tpu.pipeline_mode<synchronous>, transform_indices = @transform_5, window_bounds = array<i64: 64, 16>}, {pipeline_mode = #tpu.pipeline_mode<synchronous>, transform_indices = @transform_6, window_bounds = array<i64: 1, 16>}, {transform_indices = @transform_7, window_bounds = array<i64: 1, 16, 16, 16>}]} {
    %c0 = arith.constant 0 : index
    %c0_0 = arith.constant 0 : index
    %c0_1 = arith.constant 0 : index
    %0 = vector.load %arg1[%c0, %c0_0, %c0_1] : memref<1x256x16xf32, #tpu.memory_space<vmem>>, vector<1x256x16xf32>
    %1 = vector.shape_cast %0 : vector<1x256x16xf32> to vector<256x16xf32>
    %2 = arith.truncf %1 : vector<256x16xf32> to vector<256x16xbf16>
    %c0_2 = arith.constant 0 : index
    %c0_3 = arith.constant 0 : index
    %3 = vector.load %arg2[%c0_2, %c0_3] : memref<16x64xbf16, #tpu.memory_space<vmem>>, vector<16x64xbf16>
    %cst = arith.constant dense<0.000000e+00> : vector<256x64xf32>
    %4 = tpu.matmul %2, %3, %cst {dimension_numbers = #tpu.dot_dimension_numbers<[1], [0], [0], [1], [0, 0, 1, 1], [], []>} : vector<256x16xbf16>, vector<16x64xbf16>, vector<256x64xf32> -> vector<256x64xf32>
    %c0_4 = arith.constant 0 : index
    %c0_5 = arith.constant 0 : index
    %5 = vector.load %arg3[%c0_4, %c0_5] : memref<1x64xf32, #tpu.memory_space<vmem>>, vector<1x64xf32>
    %6 = vector.broadcast %5 : vector<1x64xf32> to vector<256x64xf32>
    %7 = arith.addf %4, %6 : vector<256x64xf32>
    %cst_6 = arith.constant 0.000000e+00 : f32
    %8 = vector.broadcast %cst_6 : f32 to vector<256x64xf32>
    %9 = arith.maximumf %7, %8 : vector<256x64xf32>
    %cst_7 = arith.constant 0.000000e+00 : f32
    %10 = vector.broadcast %cst_7 : f32 to vector<1x18x18x64xf32>
    %c0_8 = arith.constant 0 : index
    %c0_9 = arith.constant 0 : index
    %c0_10 = arith.constant 0 : index
    %c0_11 = arith.constant 0 : index
    %11 = vector.load %arg9[%c0_8, %c0_9, %c0_10, %c0_11] : memref<1x18x18x64xf32, #tpu.memory_space<vmem>>, vector<1x18x18x64xf32>
    tpu.vector_store %arg9[%c0_8, %c0_9, %c0_10, %c0_11], %10 {strides = array<i32>} : memref<1x18x18x64xf32, #tpu.memory_space<vmem>>, vector<1x18x18x64xf32>,
    %12 = vector.extract_strided_slice %9 {offsets = [0, 0], sizes = [16, 64], strides = [1, 1]} : vector<256x64xf32> to vector<16x64xf32>
    %c0_12 = arith.constant 0 : index
    %c1 = arith.constant 1 : index
    %c1_13 = arith.constant 1 : index
    %c0_14 = arith.constant 0 : index
    %13 = vector.load %arg9[%c0_12, %c1, %c1_13, %c0_14] : memref<1x18x18x64xf32, #tpu.memory_space<vmem>>, vector<1x1x16x64xf32>
    %14 = vector.shape_cast %13 : vector<1x1x16x64xf32> to vector<16x64xf32>
    %15 = vector.shape_cast %12 : vector<16x64xf32> to vector<1x1x16x64xf32>
    tpu.vector_store %arg9[%c0_12, %c1, %c1_13, %c0_14], %15 {strides = array<i32>} : memref<1x18x18x64xf32, #tpu.memory_space<vmem>>, vector<1x1x16x64xf32>,
    %16 = vector.extract_strided_slice %9 {offsets = [16, 0], sizes = [16, 64], strides = [1, 1]} : vector<256x64xf32> to vector<16x64xf32>
    %c0_15 = arith.constant 0 : index
    %c2 = arith.constant 2 : index
    %c1_16 = arith.constant 1 : index
    %c0_17 = arith.constant 0 : index
    %17 = vector.load %arg9[%c0_15, %c2, %c1_16, %c0_17] : memref<1x18x18x64xf32, #tpu.memory_space<vmem>>, vector<1x1x16x64xf32>
    %18 = vector.shape_cast %17 : vector<1x1x16x64xf32> to vector<16x64xf32>
    %19 = vector.shape_cast %16 : vector<16x64xf32> to vector<1x1x16x64xf32>
    tpu.vector_store %arg9[%c0_15, %c2, %c1_16, %c0_17], %19 {strides = array<i32>} : memref<1x18x18x64xf32, #tpu.memory_space<vmem>>, vector<1x1x16x64xf32>,
    %20 = vector.extract_strided_slice %9 {offsets = [32, 0], sizes = [16, 64], strides = [1, 1]} : vector<256x64xf32> to vector<16x64xf32>
    %c0_18 = arith.constant 0 : index
    %c3 = arith.constant 3 : index
    %c1_19 = arith.constant 1 : index
    %c0_20 = arith.constant 0 : index
    %21 = vector.load %arg9[%c0_18, %c3, %c1_19, %c0_20] : memref<1x18x18x64xf32, #tpu.memory_space<vmem>>, vector<1x1x16x64xf32>
    %22 = vector.shape_cast %21 : vector<1x1x16x64xf32> to vector<16x64xf32>
    %23 = vector.shape_cast %20 : vector<16x64xf32> to vector<1x1x16x64xf32>
    tpu.vector_store %arg9[%c0_18, %c3, %c1_19, %c0_20], %23 {strides = array<i32>} : memref<1x18x18x64xf32, #tpu.memory_space<vmem>>, vector<1x1x16x64xf32>,
    %24 = vector.extract_strided_slice %9 {offsets = [48, 0], sizes = [16, 64], strides = [1, 1]} : vector<256x64xf32> to vector<16x64xf32>
    %c0_21 = arith.constant 0 : index
    %c4 = arith.constant 4 : index
    %c1_22 = arith.constant 1 : index
    %c0_23 = arith.constant 0 : index
    %25 = vector.load %arg9[%c0_21, %c4, %c1_22, %c0_23] : memref<1x18x18x64xf32, #tpu.memory_space<vmem>>, vector<1x1x16x64xf32>
    %26 = vector.shape_cast %25 : vector<1x1x16x64xf32> to vector<16x64xf32>
    %27 = vector.shape_cast %24 : vector<16x64xf32> to vector<1x1x16x64xf32>
    tpu.vector_store %arg9[%c0_21, %c4, %c1_22, %c0_23], %27 {strides = array<i32>} : memref<1x18x18x64xf32, #tpu.memory_space<vmem>>, vector<1x1x16x64xf32>,
    %28 = vector.extract_strided_slice %9 {offsets = [64, 0], sizes = [16, 64], strides = [1, 1]} : vector<256x64xf32> to vector<16x64xf32>
    %c0_24 = arith.constant 0 : index
    %c5 = arith.constant 5 : index
    %c1_25 = arith.constant 1 : index
    %c0_26 = arith.constant 0 : index
    %29 = vector.load %arg9[%c0_24, %c5, %c1_25, %c0_26] : memref<1x18x18x64xf32, #tpu.memory_space<vmem>>, vector<1x1x16x64xf32>
    %30 = vector.shape_cast %29 : vector<1x1x16x64xf32> to vector<16x64xf32>
    %31 = vector.shape_cast %28 : vector<16x64xf32> to vector<1x1x16x64xf32>
    tpu.vector_store %arg9[%c0_24, %c5, %c1_25, %c0_26], %31 {strides = array<i32>} : memref<1x18x18x64xf32, #tpu.memory_space<vmem>>, vector<1x1x16x64xf32>,
    %32 = vector.extract_strided_slice %9 {offsets = [80, 0], sizes = [16, 64], strides = [1, 1]} : vector<256x64xf32> to vector<16x64xf32>
    %c0_27 = arith.constant 0 : index
    %c6 = arith.constant 6 : index
    %c1_28 = arith.constant 1 : index
    %c0_29 = arith.constant 0 : index
    %33 = vector.load %arg9[%c0_27, %c6, %c1_28, %c0_29] : memref<1x18x18x64xf32, #tpu.memory_space<vmem>>, vector<1x1x16x64xf32>
    %34 = vector.shape_cast %33 : vector<1x1x16x64xf32> to vector<16x64xf32>
    %35 = vector.shape_cast %32 : vector<16x64xf32> to vector<1x1x16x64xf32>
    tpu.vector_store %arg9[%c0_27, %c6, %c1_28, %c0_29], %35 {strides = array<i32>} : memref<1x18x18x64xf32, #tpu.memory_space<vmem>>, vector<1x1x16x64xf32>,
    %36 = vector.extract_strided_slice %9 {offsets = [96, 0], sizes = [16, 64], strides = [1, 1]} : vector<256x64xf32> to vector<16x64xf32>
    %c0_30 = arith.constant 0 : index
    %c7 = arith.constant 7 : index
    %c1_31 = arith.constant 1 : index
    %c0_32 = arith.constant 0 : index
    %37 = vector.load %arg9[%c0_30, %c7, %c1_31, %c0_32] : memref<1x18x18x64xf32, #tpu.memory_space<vmem>>, vector<1x1x16x64xf32>
    %38 = vector.shape_cast %37 : vector<1x1x16x64xf32> to vector<16x64xf32>
    %39 = vector.shape_cast %36 : vector<16x64xf32> to vector<1x1x16x64xf32>
    tpu.vector_store %arg9[%c0_30, %c7, %c1_31, %c0_32], %39 {strides = array<i32>} : memref<1x18x18x64xf32, #tpu.memory_space<vmem>>, vector<1x1x16x64xf32>,
    %40 = vector.extract_strided_slice %9 {offsets = [112, 0], sizes = [16, 64], strides = [1, 1]} : vector<256x64xf32> to vector<16x64xf32>
    %c0_33 = arith.constant 0 : index
    %c8 = arith.constant 8 : index
    %c1_34 = arith.constant 1 : index
    %c0_35 = arith.constant 0 : index
    %41 = vector.load %arg9[%c0_33, %c8, %c1_34, %c0_35] : memref<1x18x18x64xf32, #tpu.memory_space<vmem>>, vector<1x1x16x64xf32>
    %42 = vector.shape_cast %41 : vector<1x1x16x64xf32> to vector<16x64xf32>
    %43 = vector.shape_cast %40 : vector<16x64xf32> to vector<1x1x16x64xf32>
    tpu.vector_store %arg9[%c0_33, %c8, %c1_34, %c0_35], %43 {strides = array<i32>} : memref<1x18x18x64xf32, #tpu.memory_space<vmem>>, vector<1x1x16x64xf32>,
    %44 = vector.extract_strided_slice %9 {offsets = [128, 0], sizes = [16, 64], strides = [1, 1]} : vector<256x64xf32> to vector<16x64xf32>
    %c0_36 = arith.constant 0 : index
    %c9 = arith.constant 9 : index
    %c1_37 = arith.constant 1 : index
    %c0_38 = arith.constant 0 : index
    %45 = vector.load %arg9[%c0_36, %c9, %c1_37, %c0_38] : memref<1x18x18x64xf32, #tpu.memory_space<vmem>>, vector<1x1x16x64xf32>
    %46 = vector.shape_cast %45 : vector<1x1x16x64xf32> to vector<16x64xf32>
    %47 = vector.shape_cast %44 : vector<16x64xf32> to vector<1x1x16x64xf32>
    tpu.vector_store %arg9[%c0_36, %c9, %c1_37, %c0_38], %47 {strides = array<i32>} : memref<1x18x18x64xf32, #tpu.memory_space<vmem>>, vector<1x1x16x64xf32>,
    %48 = vector.extract_strided_slice %9 {offsets = [144, 0], sizes = [16, 64], strides = [1, 1]} : vector<256x64xf32> to vector<16x64xf32>
    %c0_39 = arith.constant 0 : index
    %c10 = arith.constant 10 : index
    %c1_40 = arith.constant 1 : index
    %c0_41 = arith.constant 0 : index
    %49 = vector.load %arg9[%c0_39, %c10, %c1_40, %c0_41] : memref<1x18x18x64xf32, #tpu.memory_space<vmem>>, vector<1x1x16x64xf32>
    %50 = vector.shape_cast %49 : vector<1x1x16x64xf32> to vector<16x64xf32>
    %51 = vector.shape_cast %48 : vector<16x64xf32> to vector<1x1x16x64xf32>
    tpu.vector_store %arg9[%c0_39, %c10, %c1_40, %c0_41], %51 {strides = array<i32>} : memref<1x18x18x64xf32, #tpu.memory_space<vmem>>, vector<1x1x16x64xf32>,
    %52 = vector.extract_strided_slice %9 {offsets = [160, 0], sizes = [16, 64], strides = [1, 1]} : vector<256x64xf32> to vector<16x64xf32>
    %c0_42 = arith.constant 0 : index
    %c11 = arith.constant 11 : index
    %c1_43 = arith.constant 1 : index
    %c0_44 = arith.constant 0 : index
    %53 = vector.load %arg9[%c0_42, %c11, %c1_43, %c0_44] : memref<1x18x18x64xf32, #tpu.memory_space<vmem>>, vector<1x1x16x64xf32>
    %54 = vector.shape_cast %53 : vector<1x1x16x64xf32> to vector<16x64xf32>
    %55 = vector.shape_cast %52 : vector<16x64xf32> to vector<1x1x16x64xf32>
    tpu.vector_store %arg9[%c0_42, %c11, %c1_43, %c0_44], %55 {strides = array<i32>} : memref<1x18x18x64xf32, #tpu.memory_space<vmem>>, vector<1x1x16x64xf32>,
    %56 = vector.extract_strided_slice %9 {offsets = [176, 0], sizes = [16, 64], strides = [1, 1]} : vector<256x64xf32> to vector<16x64xf32>
    %c0_45 = arith.constant 0 : index
    %c12 = arith.constant 12 : index
    %c1_46 = arith.constant 1 : index
    %c0_47 = arith.constant 0 : index
    %57 = vector.load %arg9[%c0_45, %c12, %c1_46, %c0_47] : memref<1x18x18x64xf32, #tpu.memory_space<vmem>>, vector<1x1x16x64xf32>
    %58 = vector.shape_cast %57 : vector<1x1x16x64xf32> to vector<16x64xf32>
    %59 = vector.shape_cast %56 : vector<16x64xf32> to vector<1x1x16x64xf32>
    tpu.vector_store %arg9[%c0_45, %c12, %c1_46, %c0_47], %59 {strides = array<i32>} : memref<1x18x18x64xf32, #tpu.memory_space<vmem>>, vector<1x1x16x64xf32>,
    %60 = vector.extract_strided_slice %9 {offsets = [192, 0], sizes = [16, 64], strides = [1, 1]} : vector<256x64xf32> to vector<16x64xf32>
    %c0_48 = arith.constant 0 : index
    %c13 = arith.constant 13 : index
    %c1_49 = arith.constant 1 : index
    %c0_50 = arith.constant 0 : index
    %61 = vector.load %arg9[%c0_48, %c13, %c1_49, %c0_50] : memref<1x18x18x64xf32, #tpu.memory_space<vmem>>, vector<1x1x16x64xf32>
    %62 = vector.shape_cast %61 : vector<1x1x16x64xf32> to vector<16x64xf32>
    %63 = vector.shape_cast %60 : vector<16x64xf32> to vector<1x1x16x64xf32>
    tpu.vector_store %arg9[%c0_48, %c13, %c1_49, %c0_50], %63 {strides = array<i32>} : memref<1x18x18x64xf32, #tpu.memory_space<vmem>>, vector<1x1x16x64xf32>,
    %64 = vector.extract_strided_slice %9 {offsets = [208, 0], sizes = [16, 64], strides = [1, 1]} : vector<256x64xf32> to vector<16x64xf32>
    %c0_51 = arith.constant 0 : index
    %c14 = arith.constant 14 : index
    %c1_52 = arith.constant 1 : index
    %c0_53 = arith.constant 0 : index
    %65 = vector.load %arg9[%c0_51, %c14, %c1_52, %c0_53] : memref<1x18x18x64xf32, #tpu.memory_space<vmem>>, vector<1x1x16x64xf32>
    %66 = vector.shape_cast %65 : vector<1x1x16x64xf32> to vector<16x64xf32>
    %67 = vector.shape_cast %64 : vector<16x64xf32> to vector<1x1x16x64xf32>
    tpu.vector_store %arg9[%c0_51, %c14, %c1_52, %c0_53], %67 {strides = array<i32>} : memref<1x18x18x64xf32, #tpu.memory_space<vmem>>, vector<1x1x16x64xf32>,
    %68 = vector.extract_strided_slice %9 {offsets = [224, 0], sizes = [16, 64], strides = [1, 1]} : vector<256x64xf32> to vector<16x64xf32>
    %c0_54 = arith.constant 0 : index
    %c15 = arith.constant 15 : index
    %c1_55 = arith.constant 1 : index
    %c0_56 = arith.constant 0 : index
    %69 = vector.load %arg9[%c0_54, %c15, %c1_55, %c0_56] : memref<1x18x18x64xf32, #tpu.memory_space<vmem>>, vector<1x1x16x64xf32>
    %70 = vector.shape_cast %69 : vector<1x1x16x64xf32> to vector<16x64xf32>
    %71 = vector.shape_cast %68 : vector<16x64xf32> to vector<1x1x16x64xf32>
    tpu.vector_store %arg9[%c0_54, %c15, %c1_55, %c0_56], %71 {strides = array<i32>} : memref<1x18x18x64xf32, #tpu.memory_space<vmem>>, vector<1x1x16x64xf32>,
    %72 = vector.extract_strided_slice %9 {offsets = [240, 0], sizes = [16, 64], strides = [1, 1]} : vector<256x64xf32> to vector<16x64xf32>
    %c0_57 = arith.constant 0 : index
    %c16 = arith.constant 16 : index
    %c1_58 = arith.constant 1 : index
    %c0_59 = arith.constant 0 : index
    %73 = vector.load %arg9[%c0_57, %c16, %c1_58, %c0_59] : memref<1x18x18x64xf32, #tpu.memory_space<vmem>>, vector<1x1x16x64xf32>
    %74 = vector.shape_cast %73 : vector<1x1x16x64xf32> to vector<16x64xf32>
    %75 = vector.shape_cast %72 : vector<16x64xf32> to vector<1x1x16x64xf32>
    tpu.vector_store %arg9[%c0_57, %c16, %c1_58, %c0_59], %75 {strides = array<i32>} : memref<1x18x18x64xf32, #tpu.memory_space<vmem>>, vector<1x1x16x64xf32>,
    %c0_60 = arith.constant 0 : index
    %c0_61 = arith.constant 0 : index
    %76 = vector.load %arg4[%c0_60, %c0_61] : memref<9x64xf32, #tpu.memory_space<vmem>>, vector<9x64xf32>
    %c0_62 = arith.constant 0 : index
    %c0_63 = arith.constant 0 : index
    %77 = vector.load %arg5[%c0_62, %c0_63] : memref<1x64xf32, #tpu.memory_space<vmem>>, vector<1x64xf32>
    %cst_64 = arith.constant 0.000000e+00 : f32
    %78 = vector.broadcast %cst_64 : f32 to vector<16x16x64xf32>
    %c0_65 = arith.constant 0 : index
    %c0_66 = arith.constant 0 : index
    %c0_67 = arith.constant 0 : index
    %c0_68 = arith.constant 0 : index
    %79 = vector.load %arg9[%c0_65, %c0_66, %c0_67, %c0_68] : memref<1x18x18x64xf32, #tpu.memory_space<vmem>>, vector<1x16x16x64xf32>
    %80 = vector.shape_cast %79 : vector<1x16x16x64xf32> to vector<16x16x64xf32>
    %81 = vector.extract_strided_slice %76 {offsets = [0, 0], sizes = [1, 64], strides = [1, 1]} : vector<9x64xf32> to vector<1x64xf32>
    %82 = vector.shape_cast %81 : vector<1x64xf32> to vector<1x1x64xf32>
    %83 = vector.broadcast %82 : vector<1x1x64xf32> to vector<16x16x64xf32>
    %84 = arith.mulf %80, %83 : vector<16x16x64xf32>
    %85 = arith.addf %78, %84 : vector<16x16x64xf32>
    %c0_69 = arith.constant 0 : index
    %c0_70 = arith.constant 0 : index
    %c1_71 = arith.constant 1 : index
    %c0_72 = arith.constant 0 : index
    %86 = vector.load %arg9[%c0_69, %c0_70, %c1_71, %c0_72] : memref<1x18x18x64xf32, #tpu.memory_space<vmem>>, vector<1x16x16x64xf32>
    %87 = vector.shape_cast %86 : vector<1x16x16x64xf32> to vector<16x16x64xf32>
    %88 = vector.extract_strided_slice %76 {offsets = [1, 0], sizes = [1, 64], strides = [1, 1]} : vector<9x64xf32> to vector<1x64xf32>
    %89 = vector.shape_cast %88 : vector<1x64xf32> to vector<1x1x64xf32>
    %90 = vector.broadcast %89 : vector<1x1x64xf32> to vector<16x16x64xf32>
    %91 = arith.mulf %87, %90 : vector<16x16x64xf32>
    %92 = arith.addf %85, %91 : vector<16x16x64xf32>
    %c0_73 = arith.constant 0 : index
    %c0_74 = arith.constant 0 : index
    %c2_75 = arith.constant 2 : index
    %c0_76 = arith.constant 0 : index
    %93 = vector.load %arg9[%c0_73, %c0_74, %c2_75, %c0_76] : memref<1x18x18x64xf32, #tpu.memory_space<vmem>>, vector<1x16x16x64xf32>
    %94 = vector.shape_cast %93 : vector<1x16x16x64xf32> to vector<16x16x64xf32>
    %95 = vector.extract_strided_slice %76 {offsets = [2, 0], sizes = [1, 64], strides = [1, 1]} : vector<9x64xf32> to vector<1x64xf32>
    %96 = vector.shape_cast %95 : vector<1x64xf32> to vector<1x1x64xf32>
    %97 = vector.broadcast %96 : vector<1x1x64xf32> to vector<16x16x64xf32>
    %98 = arith.mulf %94, %97 : vector<16x16x64xf32>
    %99 = arith.addf %92, %98 : vector<16x16x64xf32>
    %c0_77 = arith.constant 0 : index
    %c1_78 = arith.constant 1 : index
    %c0_79 = arith.constant 0 : index
    %c0_80 = arith.constant 0 : index
    %100 = vector.load %arg9[%c0_77, %c1_78, %c0_79, %c0_80] : memref<1x18x18x64xf32, #tpu.memory_space<vmem>>, vector<1x16x16x64xf32>
    %101 = vector.shape_cast %100 : vector<1x16x16x64xf32> to vector<16x16x64xf32>
    %102 = vector.extract_strided_slice %76 {offsets = [3, 0], sizes = [1, 64], strides = [1, 1]} : vector<9x64xf32> to vector<1x64xf32>
    %103 = vector.shape_cast %102 : vector<1x64xf32> to vector<1x1x64xf32>
    %104 = vector.broadcast %103 : vector<1x1x64xf32> to vector<16x16x64xf32>
    %105 = arith.mulf %101, %104 : vector<16x16x64xf32>
    %106 = arith.addf %99, %105 : vector<16x16x64xf32>
    %c0_81 = arith.constant 0 : index
    %c1_82 = arith.constant 1 : index
    %c1_83 = arith.constant 1 : index
    %c0_84 = arith.constant 0 : index
    %107 = vector.load %arg9[%c0_81, %c1_82, %c1_83, %c0_84] : memref<1x18x18x64xf32, #tpu.memory_space<vmem>>, vector<1x16x16x64xf32>
    %108 = vector.shape_cast %107 : vector<1x16x16x64xf32> to vector<16x16x64xf32>
    %109 = vector.extract_strided_slice %76 {offsets = [4, 0], sizes = [1, 64], strides = [1, 1]} : vector<9x64xf32> to vector<1x64xf32>
    %110 = vector.shape_cast %109 : vector<1x64xf32> to vector<1x1x64xf32>
    %111 = vector.broadcast %110 : vector<1x1x64xf32> to vector<16x16x64xf32>
    %112 = arith.mulf %108, %111 : vector<16x16x64xf32>
    %113 = arith.addf %106, %112 : vector<16x16x64xf32>
    %c0_85 = arith.constant 0 : index
    %c1_86 = arith.constant 1 : index
    %c2_87 = arith.constant 2 : index
    %c0_88 = arith.constant 0 : index
    %114 = vector.load %arg9[%c0_85, %c1_86, %c2_87, %c0_88] : memref<1x18x18x64xf32, #tpu.memory_space<vmem>>, vector<1x16x16x64xf32>
    %115 = vector.shape_cast %114 : vector<1x16x16x64xf32> to vector<16x16x64xf32>
    %116 = vector.extract_strided_slice %76 {offsets = [5, 0], sizes = [1, 64], strides = [1, 1]} : vector<9x64xf32> to vector<1x64xf32>
    %117 = vector.shape_cast %116 : vector<1x64xf32> to vector<1x1x64xf32>
    %118 = vector.broadcast %117 : vector<1x1x64xf32> to vector<16x16x64xf32>
    %119 = arith.mulf %115, %118 : vector<16x16x64xf32>
    %120 = arith.addf %113, %119 : vector<16x16x64xf32>
    %c0_89 = arith.constant 0 : index
    %c2_90 = arith.constant 2 : index
    %c0_91 = arith.constant 0 : index
    %c0_92 = arith.constant 0 : index
    %121 = vector.load %arg9[%c0_89, %c2_90, %c0_91, %c0_92] : memref<1x18x18x64xf32, #tpu.memory_space<vmem>>, vector<1x16x16x64xf32>
    %122 = vector.shape_cast %121 : vector<1x16x16x64xf32> to vector<16x16x64xf32>
    %123 = vector.extract_strided_slice %76 {offsets = [6, 0], sizes = [1, 64], strides = [1, 1]} : vector<9x64xf32> to vector<1x64xf32>
    %124 = vector.shape_cast %123 : vector<1x64xf32> to vector<1x1x64xf32>
    %125 = vector.broadcast %124 : vector<1x1x64xf32> to vector<16x16x64xf32>
    %126 = arith.mulf %122, %125 : vector<16x16x64xf32>
    %127 = arith.addf %120, %126 : vector<16x16x64xf32>
    %c0_93 = arith.constant 0 : index
    %c2_94 = arith.constant 2 : index
    %c1_95 = arith.constant 1 : index
    %c0_96 = arith.constant 0 : index
    %128 = vector.load %arg9[%c0_93, %c2_94, %c1_95, %c0_96] : memref<1x18x18x64xf32, #tpu.memory_space<vmem>>, vector<1x16x16x64xf32>
    %129 = vector.shape_cast %128 : vector<1x16x16x64xf32> to vector<16x16x64xf32>
    %130 = vector.extract_strided_slice %76 {offsets = [7, 0], sizes = [1, 64], strides = [1, 1]} : vector<9x64xf32> to vector<1x64xf32>
    %131 = vector.shape_cast %130 : vector<1x64xf32> to vector<1x1x64xf32>
    %132 = vector.broadcast %131 : vector<1x1x64xf32> to vector<16x16x64xf32>
    %133 = arith.mulf %129, %132 : vector<16x16x64xf32>
    %134 = arith.addf %127, %133 : vector<16x16x64xf32>
    %c0_97 = arith.constant 0 : index
    %c2_98 = arith.constant 2 : index
    %c2_99 = arith.constant 2 : index
    %c0_100 = arith.constant 0 : index
    %135 = vector.load %arg9[%c0_97, %c2_98, %c2_99, %c0_100] : memref<1x18x18x64xf32, #tpu.memory_space<vmem>>, vector<1x16x16x64xf32>
    %136 = vector.shape_cast %135 : vector<1x16x16x64xf32> to vector<16x16x64xf32>
    %137 = vector.extract_strided_slice %76 {offsets = [8, 0], sizes = [1, 64], strides = [1, 1]} : vector<9x64xf32> to vector<1x64xf32>
    %138 = vector.shape_cast %137 : vector<1x64xf32> to vector<1x1x64xf32>
    %139 = vector.broadcast %138 : vector<1x1x64xf32> to vector<16x16x64xf32>
    %140 = arith.mulf %136, %139 : vector<16x16x64xf32>
    %141 = arith.addf %134, %140 : vector<16x16x64xf32>
    %142 = vector.shape_cast %77 : vector<1x64xf32> to vector<1x1x64xf32>
    %143 = vector.broadcast %142 : vector<1x1x64xf32> to vector<16x16x64xf32>
    %144 = arith.addf %141, %143 : vector<16x16x64xf32>
    %cst_101 = arith.constant 0.000000e+00 : f32
    %145 = vector.broadcast %cst_101 : f32 to vector<16x16x64xf32>
    %146 = arith.maximumf %144, %145 : vector<16x16x64xf32>
    %c0_102 = arith.constant 0 : index
    %c0_103 = arith.constant 0 : index
    %c0_104 = arith.constant 0 : index
    %147 = vector.load %arg10[%c0_102, %c0_103, %c0_104] : memref<16x16x64xf32, #tpu.memory_space<vmem>>, vector<16x16x64xf32>
    tpu.vector_store %arg10[%c0_102, %c0_103, %c0_104], %146 {strides = array<i32>} : memref<16x16x64xf32, #tpu.memory_space<vmem>>, vector<16x16x64xf32>,
    %c0_105 = arith.constant 0 : index
    %c0_106 = arith.constant 0 : index
    %148 = vector.load %arg6[%c0_105, %c0_106] : memref<64x16xbf16, #tpu.memory_space<vmem>>, vector<64x16xbf16>
    %c0_107 = arith.constant 0 : index
    %c0_108 = arith.constant 0 : index
    %149 = vector.load %arg7[%c0_107, %c0_108] : memref<1x16xf32, #tpu.memory_space<vmem>>, vector<1x16xf32>
    %c0_109 = arith.constant 0 : index
    %c0_110 = arith.constant 0 : index
    %c0_111 = arith.constant 0 : index
    %150 = vector.load %arg10[%c0_109, %c0_110, %c0_111] : memref<16x16x64xf32, #tpu.memory_space<vmem>>, vector<1x16x64xf32>
    %151 = vector.shape_cast %150 : vector<1x16x64xf32> to vector<16x64xf32>
    %152 = arith.truncf %151 : vector<16x64xf32> to vector<16x64xbf16>
    %cst_112 = arith.constant dense<0.000000e+00> : vector<16x16xf32>
    %153 = tpu.matmul %152, %148, %cst_112 {dimension_numbers = #tpu.dot_dimension_numbers<[1], [0], [0], [1], [0, 0, 1, 1], [], []>} : vector<16x64xbf16>, vector<64x16xbf16>, vector<16x16xf32> -> vector<16x16xf32>
    %154 = vector.broadcast %149 : vector<1x16xf32> to vector<16x16xf32>
    %155 = arith.addf %153, %154 : vector<16x16xf32>
    %c0_113 = arith.constant 0 : index
    %c0_114 = arith.constant 0 : index
    %c0_115 = arith.constant 0 : index
    %156 = vector.load %arg1[%c0_113, %c0_114, %c0_115] : memref<1x256x16xf32, #tpu.memory_space<vmem>>, vector<1x16x16xf32>
    %157 = vector.shape_cast %156 : vector<1x16x16xf32> to vector<16x16xf32>
    %158 = arith.addf %155, %157 : vector<16x16xf32>
    %c0_116 = arith.constant 0 : index
    %c0_117 = arith.constant 0 : index
    %c0_118 = arith.constant 0 : index
    %c0_119 = arith.constant 0 : index
    %159 = vector.load %arg8[%c0_116, %c0_117, %c0_118, %c0_119] : memref<1x16x16x16xf32, #tpu.memory_space<vmem>>, vector<1x1x16x16xf32>
    %160 = vector.shape_cast %159 : vector<1x1x16x16xf32> to vector<16x16xf32>
    %161 = vector.shape_cast %158 : vector<16x16xf32> to vector<1x1x16x16xf32>
    tpu.vector_store %arg8[%c0_116, %c0_117, %c0_118, %c0_119], %161 {strides = array<i32>} : memref<1x16x16x16xf32, #tpu.memory_space<vmem>>, vector<1x1x16x16xf32>,
    %c1_120 = arith.constant 1 : index
    %c0_121 = arith.constant 0 : index
    %c0_122 = arith.constant 0 : index
    %162 = vector.load %arg10[%c1_120, %c0_121, %c0_122] : memref<16x16x64xf32, #tpu.memory_space<vmem>>, vector<1x16x64xf32>
    %163 = vector.shape_cast %162 : vector<1x16x64xf32> to vector<16x64xf32>
    %164 = arith.truncf %163 : vector<16x64xf32> to vector<16x64xbf16>
    %cst_123 = arith.constant dense<0.000000e+00> : vector<16x16xf32>
    %165 = tpu.matmul %164, %148, %cst_123 {dimension_numbers = #tpu.dot_dimension_numbers<[1], [0], [0], [1], [0, 0, 1, 1], [], []>} : vector<16x64xbf16>, vector<64x16xbf16>, vector<16x16xf32> -> vector<16x16xf32>
    %166 = vector.broadcast %149 : vector<1x16xf32> to vector<16x16xf32>
    %167 = arith.addf %165, %166 : vector<16x16xf32>
    %c0_124 = arith.constant 0 : index
    %c16_125 = arith.constant 16 : index
    %c0_126 = arith.constant 0 : index
    %168 = vector.load %arg1[%c0_124, %c16_125, %c0_126] : memref<1x256x16xf32, #tpu.memory_space<vmem>>, vector<1x16x16xf32>
    %169 = vector.shape_cast %168 : vector<1x16x16xf32> to vector<16x16xf32>
    %170 = arith.addf %167, %169 : vector<16x16xf32>
    %c0_127 = arith.constant 0 : index
    %c1_128 = arith.constant 1 : index
    %c0_129 = arith.constant 0 : index
    %c0_130 = arith.constant 0 : index
    %171 = vector.load %arg8[%c0_127, %c1_128, %c0_129, %c0_130] : memref<1x16x16x16xf32, #tpu.memory_space<vmem>>, vector<1x1x16x16xf32>
    %172 = vector.shape_cast %171 : vector<1x1x16x16xf32> to vector<16x16xf32>
    %173 = vector.shape_cast %170 : vector<16x16xf32> to vector<1x1x16x16xf32>
    tpu.vector_store %arg8[%c0_127, %c1_128, %c0_129, %c0_130], %173 {strides = array<i32>} : memref<1x16x16x16xf32, #tpu.memory_space<vmem>>, vector<1x1x16x16xf32>,
    %c2_131 = arith.constant 2 : index
    %c0_132 = arith.constant 0 : index
    %c0_133 = arith.constant 0 : index
    %174 = vector.load %arg10[%c2_131, %c0_132, %c0_133] : memref<16x16x64xf32, #tpu.memory_space<vmem>>, vector<1x16x64xf32>
    %175 = vector.shape_cast %174 : vector<1x16x64xf32> to vector<16x64xf32>
    %176 = arith.truncf %175 : vector<16x64xf32> to vector<16x64xbf16>
    %cst_134 = arith.constant dense<0.000000e+00> : vector<16x16xf32>
    %177 = tpu.matmul %176, %148, %cst_134 {dimension_numbers = #tpu.dot_dimension_numbers<[1], [0], [0], [1], [0, 0, 1, 1], [], []>} : vector<16x64xbf16>, vector<64x16xbf16>, vector<16x16xf32> -> vector<16x16xf32>
    %178 = vector.broadcast %149 : vector<1x16xf32> to vector<16x16xf32>
    %179 = arith.addf %177, %178 : vector<16x16xf32>
    %c0_135 = arith.constant 0 : index
    %c32 = arith.constant 32 : index
    %c0_136 = arith.constant 0 : index
    %180 = vector.load %arg1[%c0_135, %c32, %c0_136] : memref<1x256x16xf32, #tpu.memory_space<vmem>>, vector<1x16x16xf32>
    %181 = vector.shape_cast %180 : vector<1x16x16xf32> to vector<16x16xf32>
    %182 = arith.addf %179, %181 : vector<16x16xf32>
    %c0_137 = arith.constant 0 : index
    %c2_138 = arith.constant 2 : index
    %c0_139 = arith.constant 0 : index
    %c0_140 = arith.constant 0 : index
    %183 = vector.load %arg8[%c0_137, %c2_138, %c0_139, %c0_140] : memref<1x16x16x16xf32, #tpu.memory_space<vmem>>, vector<1x1x16x16xf32>
    %184 = vector.shape_cast %183 : vector<1x1x16x16xf32> to vector<16x16xf32>
    %185 = vector.shape_cast %182 : vector<16x16xf32> to vector<1x1x16x16xf32>
    tpu.vector_store %arg8[%c0_137, %c2_138, %c0_139, %c0_140], %185 {strides = array<i32>} : memref<1x16x16x16xf32, #tpu.memory_space<vmem>>, vector<1x1x16x16xf32>,
    %c3_141 = arith.constant 3 : index
    %c0_142 = arith.constant 0 : index
    %c0_143 = arith.constant 0 : index
    %186 = vector.load %arg10[%c3_141, %c0_142, %c0_143] : memref<16x16x64xf32, #tpu.memory_space<vmem>>, vector<1x16x64xf32>
    %187 = vector.shape_cast %186 : vector<1x16x64xf32> to vector<16x64xf32>
    %188 = arith.truncf %187 : vector<16x64xf32> to vector<16x64xbf16>
    %cst_144 = arith.constant dense<0.000000e+00> : vector<16x16xf32>
    %189 = tpu.matmul %188, %148, %cst_144 {dimension_numbers = #tpu.dot_dimension_numbers<[1], [0], [0], [1], [0, 0, 1, 1], [], []>} : vector<16x64xbf16>, vector<64x16xbf16>, vector<16x16xf32> -> vector<16x16xf32>
    %190 = vector.broadcast %149 : vector<1x16xf32> to vector<16x16xf32>
    %191 = arith.addf %189, %190 : vector<16x16xf32>
    %c0_145 = arith.constant 0 : index
    %c48 = arith.constant 48 : index
    %c0_146 = arith.constant 0 : index
    %192 = vector.load %arg1[%c0_145, %c48, %c0_146] : memref<1x256x16xf32, #tpu.memory_space<vmem>>, vector<1x16x16xf32>
    %193 = vector.shape_cast %192 : vector<1x16x16xf32> to vector<16x16xf32>
    %194 = arith.addf %191, %193 : vector<16x16xf32>
    %c0_147 = arith.constant 0 : index
    %c3_148 = arith.constant 3 : index
    %c0_149 = arith.constant 0 : index
    %c0_150 = arith.constant 0 : index
    %195 = vector.load %arg8[%c0_147, %c3_148, %c0_149, %c0_150] : memref<1x16x16x16xf32, #tpu.memory_space<vmem>>, vector<1x1x16x16xf32>
    %196 = vector.shape_cast %195 : vector<1x1x16x16xf32> to vector<16x16xf32>
    %197 = vector.shape_cast %194 : vector<16x16xf32> to vector<1x1x16x16xf32>
    tpu.vector_store %arg8[%c0_147, %c3_148, %c0_149, %c0_150], %197 {strides = array<i32>} : memref<1x16x16x16xf32, #tpu.memory_space<vmem>>, vector<1x1x16x16xf32>,
    %c4_151 = arith.constant 4 : index
    %c0_152 = arith.constant 0 : index
    %c0_153 = arith.constant 0 : index
    %198 = vector.load %arg10[%c4_151, %c0_152, %c0_153] : memref<16x16x64xf32, #tpu.memory_space<vmem>>, vector<1x16x64xf32>
    %199 = vector.shape_cast %198 : vector<1x16x64xf32> to vector<16x64xf32>
    %200 = arith.truncf %199 : vector<16x64xf32> to vector<16x64xbf16>
    %cst_154 = arith.constant dense<0.000000e+00> : vector<16x16xf32>
    %201 = tpu.matmul %200, %148, %cst_154 {dimension_numbers = #tpu.dot_dimension_numbers<[1], [0], [0], [1], [0, 0, 1, 1], [], []>} : vector<16x64xbf16>, vector<64x16xbf16>, vector<16x16xf32> -> vector<16x16xf32>
    %202 = vector.broadcast %149 : vector<1x16xf32> to vector<16x16xf32>
    %203 = arith.addf %201, %202 : vector<16x16xf32>
    %c0_155 = arith.constant 0 : index
    %c64 = arith.constant 64 : index
    %c0_156 = arith.constant 0 : index
    %204 = vector.load %arg1[%c0_155, %c64, %c0_156] : memref<1x256x16xf32, #tpu.memory_space<vmem>>, vector<1x16x16xf32>
    %205 = vector.shape_cast %204 : vector<1x16x16xf32> to vector<16x16xf32>
    %206 = arith.addf %203, %205 : vector<16x16xf32>
    %c0_157 = arith.constant 0 : index
    %c4_158 = arith.constant 4 : index
    %c0_159 = arith.constant 0 : index
    %c0_160 = arith.constant 0 : index
    %207 = vector.load %arg8[%c0_157, %c4_158, %c0_159, %c0_160] : memref<1x16x16x16xf32, #tpu.memory_space<vmem>>, vector<1x1x16x16xf32>
    %208 = vector.shape_cast %207 : vector<1x1x16x16xf32> to vector<16x16xf32>
    %209 = vector.shape_cast %206 : vector<16x16xf32> to vector<1x1x16x16xf32>
    tpu.vector_store %arg8[%c0_157, %c4_158, %c0_159, %c0_160], %209 {strides = array<i32>} : memref<1x16x16x16xf32, #tpu.memory_space<vmem>>, vector<1x1x16x16xf32>,
    %c5_161 = arith.constant 5 : index
    %c0_162 = arith.constant 0 : index
    %c0_163 = arith.constant 0 : index
    %210 = vector.load %arg10[%c5_161, %c0_162, %c0_163] : memref<16x16x64xf32, #tpu.memory_space<vmem>>, vector<1x16x64xf32>
    %211 = vector.shape_cast %210 : vector<1x16x64xf32> to vector<16x64xf32>
    %212 = arith.truncf %211 : vector<16x64xf32> to vector<16x64xbf16>
    %cst_164 = arith.constant dense<0.000000e+00> : vector<16x16xf32>
    %213 = tpu.matmul %212, %148, %cst_164 {dimension_numbers = #tpu.dot_dimension_numbers<[1], [0], [0], [1], [0, 0, 1, 1], [], []>} : vector<16x64xbf16>, vector<64x16xbf16>, vector<16x16xf32> -> vector<16x16xf32>
    %214 = vector.broadcast %149 : vector<1x16xf32> to vector<16x16xf32>
    %215 = arith.addf %213, %214 : vector<16x16xf32>
    %c0_165 = arith.constant 0 : index
    %c80 = arith.constant 80 : index
    %c0_166 = arith.constant 0 : index
    %216 = vector.load %arg1[%c0_165, %c80, %c0_166] : memref<1x256x16xf32, #tpu.memory_space<vmem>>, vector<1x16x16xf32>
    %217 = vector.shape_cast %216 : vector<1x16x16xf32> to vector<16x16xf32>
    %218 = arith.addf %215, %217 : vector<16x16xf32>
    %c0_167 = arith.constant 0 : index
    %c5_168 = arith.constant 5 : index
    %c0_169 = arith.constant 0 : index
    %c0_170 = arith.constant 0 : index
    %219 = vector.load %arg8[%c0_167, %c5_168, %c0_169, %c0_170] : memref<1x16x16x16xf32, #tpu.memory_space<vmem>>, vector<1x1x16x16xf32>
    %220 = vector.shape_cast %219 : vector<1x1x16x16xf32> to vector<16x16xf32>
    %221 = vector.shape_cast %218 : vector<16x16xf32> to vector<1x1x16x16xf32>
    tpu.vector_store %arg8[%c0_167, %c5_168, %c0_169, %c0_170], %221 {strides = array<i32>} : memref<1x16x16x16xf32, #tpu.memory_space<vmem>>, vector<1x1x16x16xf32>,
    %c6_171 = arith.constant 6 : index
    %c0_172 = arith.constant 0 : index
    %c0_173 = arith.constant 0 : index
    %222 = vector.load %arg10[%c6_171, %c0_172, %c0_173] : memref<16x16x64xf32, #tpu.memory_space<vmem>>, vector<1x16x64xf32>
    %223 = vector.shape_cast %222 : vector<1x16x64xf32> to vector<16x64xf32>
    %224 = arith.truncf %223 : vector<16x64xf32> to vector<16x64xbf16>
    %cst_174 = arith.constant dense<0.000000e+00> : vector<16x16xf32>
    %225 = tpu.matmul %224, %148, %cst_174 {dimension_numbers = #tpu.dot_dimension_numbers<[1], [0], [0], [1], [0, 0, 1, 1], [], []>} : vector<16x64xbf16>, vector<64x16xbf16>, vector<16x16xf32> -> vector<16x16xf32>
    %226 = vector.broadcast %149 : vector<1x16xf32> to vector<16x16xf32>
    %227 = arith.addf %225, %226 : vector<16x16xf32>
    %c0_175 = arith.constant 0 : index
    %c96 = arith.constant 96 : index
    %c0_176 = arith.constant 0 : index
    %228 = vector.load %arg1[%c0_175, %c96, %c0_176] : memref<1x256x16xf32, #tpu.memory_space<vmem>>, vector<1x16x16xf32>
    %229 = vector.shape_cast %228 : vector<1x16x16xf32> to vector<16x16xf32>
    %230 = arith.addf %227, %229 : vector<16x16xf32>
    %c0_177 = arith.constant 0 : index
    %c6_178 = arith.constant 6 : index
    %c0_179 = arith.constant 0 : index
    %c0_180 = arith.constant 0 : index
    %231 = vector.load %arg8[%c0_177, %c6_178, %c0_179, %c0_180] : memref<1x16x16x16xf32, #tpu.memory_space<vmem>>, vector<1x1x16x16xf32>
    %232 = vector.shape_cast %231 : vector<1x1x16x16xf32> to vector<16x16xf32>
    %233 = vector.shape_cast %230 : vector<16x16xf32> to vector<1x1x16x16xf32>
    tpu.vector_store %arg8[%c0_177, %c6_178, %c0_179, %c0_180], %233 {strides = array<i32>} : memref<1x16x16x16xf32, #tpu.memory_space<vmem>>, vector<1x1x16x16xf32>,
    %c7_181 = arith.constant 7 : index
    %c0_182 = arith.constant 0 : index
    %c0_183 = arith.constant 0 : index
    %234 = vector.load %arg10[%c7_181, %c0_182, %c0_183] : memref<16x16x64xf32, #tpu.memory_space<vmem>>, vector<1x16x64xf32>
    %235 = vector.shape_cast %234 : vector<1x16x64xf32> to vector<16x64xf32>
    %236 = arith.truncf %235 : vector<16x64xf32> to vector<16x64xbf16>
    %cst_184 = arith.constant dense<0.000000e+00> : vector<16x16xf32>
    %237 = tpu.matmul %236, %148, %cst_184 {dimension_numbers = #tpu.dot_dimension_numbers<[1], [0], [0], [1], [0, 0, 1, 1], [], []>} : vector<16x64xbf16>, vector<64x16xbf16>, vector<16x16xf32> -> vector<16x16xf32>
    %238 = vector.broadcast %149 : vector<1x16xf32> to vector<16x16xf32>
    %239 = arith.addf %237, %238 : vector<16x16xf32>
    %c0_185 = arith.constant 0 : index
    %c112 = arith.constant 112 : index
    %c0_186 = arith.constant 0 : index
    %240 = vector.load %arg1[%c0_185, %c112, %c0_186] : memref<1x256x16xf32, #tpu.memory_space<vmem>>, vector<1x16x16xf32>
    %241 = vector.shape_cast %240 : vector<1x16x16xf32> to vector<16x16xf32>
    %242 = arith.addf %239, %241 : vector<16x16xf32>
    %c0_187 = arith.constant 0 : index
    %c7_188 = arith.constant 7 : index
    %c0_189 = arith.constant 0 : index
    %c0_190 = arith.constant 0 : index
    %243 = vector.load %arg8[%c0_187, %c7_188, %c0_189, %c0_190] : memref<1x16x16x16xf32, #tpu.memory_space<vmem>>, vector<1x1x16x16xf32>
    %244 = vector.shape_cast %243 : vector<1x1x16x16xf32> to vector<16x16xf32>
    %245 = vector.shape_cast %242 : vector<16x16xf32> to vector<1x1x16x16xf32>
    tpu.vector_store %arg8[%c0_187, %c7_188, %c0_189, %c0_190], %245 {strides = array<i32>} : memref<1x16x16x16xf32, #tpu.memory_space<vmem>>, vector<1x1x16x16xf32>,
    %c8_191 = arith.constant 8 : index
    %c0_192 = arith.constant 0 : index
    %c0_193 = arith.constant 0 : index
    %246 = vector.load %arg10[%c8_191, %c0_192, %c0_193] : memref<16x16x64xf32, #tpu.memory_space<vmem>>, vector<1x16x64xf32>
    %247 = vector.shape_cast %246 : vector<1x16x64xf32> to vector<16x64xf32>
    %248 = arith.truncf %247 : vector<16x64xf32> to vector<16x64xbf16>
    %cst_194 = arith.constant dense<0.000000e+00> : vector<16x16xf32>
    %249 = tpu.matmul %248, %148, %cst_194 {dimension_numbers = #tpu.dot_dimension_numbers<[1], [0], [0], [1], [0, 0, 1, 1], [], []>} : vector<16x64xbf16>, vector<64x16xbf16>, vector<16x16xf32> -> vector<16x16xf32>
    %250 = vector.broadcast %149 : vector<1x16xf32> to vector<16x16xf32>
    %251 = arith.addf %249, %250 : vector<16x16xf32>
    %c0_195 = arith.constant 0 : index
    %c128 = arith.constant 128 : index
    %c0_196 = arith.constant 0 : index
    %252 = vector.load %arg1[%c0_195, %c128, %c0_196] : memref<1x256x16xf32, #tpu.memory_space<vmem>>, vector<1x16x16xf32>
    %253 = vector.shape_cast %252 : vector<1x16x16xf32> to vector<16x16xf32>
    %254 = arith.addf %251, %253 : vector<16x16xf32>
    %c0_197 = arith.constant 0 : index
    %c8_198 = arith.constant 8 : index
    %c0_199 = arith.constant 0 : index
    %c0_200 = arith.constant 0 : index
    %255 = vector.load %arg8[%c0_197, %c8_198, %c0_199, %c0_200] : memref<1x16x16x16xf32, #tpu.memory_space<vmem>>, vector<1x1x16x16xf32>
    %256 = vector.shape_cast %255 : vector<1x1x16x16xf32> to vector<16x16xf32>
    %257 = vector.shape_cast %254 : vector<16x16xf32> to vector<1x1x16x16xf32>
    tpu.vector_store %arg8[%c0_197, %c8_198, %c0_199, %c0_200], %257 {strides = array<i32>} : memref<1x16x16x16xf32, #tpu.memory_space<vmem>>, vector<1x1x16x16xf32>,
    %c9_201 = arith.constant 9 : index
    %c0_202 = arith.constant 0 : index
    %c0_203 = arith.constant 0 : index
    %258 = vector.load %arg10[%c9_201, %c0_202, %c0_203] : memref<16x16x64xf32, #tpu.memory_space<vmem>>, vector<1x16x64xf32>
    %259 = vector.shape_cast %258 : vector<1x16x64xf32> to vector<16x64xf32>
    %260 = arith.truncf %259 : vector<16x64xf32> to vector<16x64xbf16>
    %cst_204 = arith.constant dense<0.000000e+00> : vector<16x16xf32>
    %261 = tpu.matmul %260, %148, %cst_204 {dimension_numbers = #tpu.dot_dimension_numbers<[1], [0], [0], [1], [0, 0, 1, 1], [], []>} : vector<16x64xbf16>, vector<64x16xbf16>, vector<16x16xf32> -> vector<16x16xf32>
    %262 = vector.broadcast %149 : vector<1x16xf32> to vector<16x16xf32>
    %263 = arith.addf %261, %262 : vector<16x16xf32>
    %c0_205 = arith.constant 0 : index
    %c144 = arith.constant 144 : index
    %c0_206 = arith.constant 0 : index
    %264 = vector.load %arg1[%c0_205, %c144, %c0_206] : memref<1x256x16xf32, #tpu.memory_space<vmem>>, vector<1x16x16xf32>
    %265 = vector.shape_cast %264 : vector<1x16x16xf32> to vector<16x16xf32>
    %266 = arith.addf %263, %265 : vector<16x16xf32>
    %c0_207 = arith.constant 0 : index
    %c9_208 = arith.constant 9 : index
    %c0_209 = arith.constant 0 : index
    %c0_210 = arith.constant 0 : index
    %267 = vector.load %arg8[%c0_207, %c9_208, %c0_209, %c0_210] : memref<1x16x16x16xf32, #tpu.memory_space<vmem>>, vector<1x1x16x16xf32>
    %268 = vector.shape_cast %267 : vector<1x1x16x16xf32> to vector<16x16xf32>
    %269 = vector.shape_cast %266 : vector<16x16xf32> to vector<1x1x16x16xf32>
    tpu.vector_store %arg8[%c0_207, %c9_208, %c0_209, %c0_210], %269 {strides = array<i32>} : memref<1x16x16x16xf32, #tpu.memory_space<vmem>>, vector<1x1x16x16xf32>,
    %c10_211 = arith.constant 10 : index
    %c0_212 = arith.constant 0 : index
    %c0_213 = arith.constant 0 : index
    %270 = vector.load %arg10[%c10_211, %c0_212, %c0_213] : memref<16x16x64xf32, #tpu.memory_space<vmem>>, vector<1x16x64xf32>
    %271 = vector.shape_cast %270 : vector<1x16x64xf32> to vector<16x64xf32>
    %272 = arith.truncf %271 : vector<16x64xf32> to vector<16x64xbf16>
    %cst_214 = arith.constant dense<0.000000e+00> : vector<16x16xf32>
    %273 = tpu.matmul %272, %148, %cst_214 {dimension_numbers = #tpu.dot_dimension_numbers<[1], [0], [0], [1], [0, 0, 1, 1], [], []>} : vector<16x64xbf16>, vector<64x16xbf16>, vector<16x16xf32> -> vector<16x16xf32>
    %274 = vector.broadcast %149 : vector<1x16xf32> to vector<16x16xf32>
    %275 = arith.addf %273, %274 : vector<16x16xf32>
    %c0_215 = arith.constant 0 : index
    %c160 = arith.constant 160 : index
    %c0_216 = arith.constant 0 : index
    %276 = vector.load %arg1[%c0_215, %c160, %c0_216] : memref<1x256x16xf32, #tpu.memory_space<vmem>>, vector<1x16x16xf32>
    %277 = vector.shape_cast %276 : vector<1x16x16xf32> to vector<16x16xf32>
    %278 = arith.addf %275, %277 : vector<16x16xf32>
    %c0_217 = arith.constant 0 : index
    %c10_218 = arith.constant 10 : index
    %c0_219 = arith.constant 0 : index
    %c0_220 = arith.constant 0 : index
    %279 = vector.load %arg8[%c0_217, %c10_218, %c0_219, %c0_220] : memref<1x16x16x16xf32, #tpu.memory_space<vmem>>, vector<1x1x16x16xf32>
    %280 = vector.shape_cast %279 : vector<1x1x16x16xf32> to vector<16x16xf32>
    %281 = vector.shape_cast %278 : vector<16x16xf32> to vector<1x1x16x16xf32>
    tpu.vector_store %arg8[%c0_217, %c10_218, %c0_219, %c0_220], %281 {strides = array<i32>} : memref<1x16x16x16xf32, #tpu.memory_space<vmem>>, vector<1x1x16x16xf32>,
    %c11_221 = arith.constant 11 : index
    %c0_222 = arith.constant 0 : index
    %c0_223 = arith.constant 0 : index
    %282 = vector.load %arg10[%c11_221, %c0_222, %c0_223] : memref<16x16x64xf32, #tpu.memory_space<vmem>>, vector<1x16x64xf32>
    %283 = vector.shape_cast %282 : vector<1x16x64xf32> to vector<16x64xf32>
    %284 = arith.truncf %283 : vector<16x64xf32> to vector<16x64xbf16>
    %cst_224 = arith.constant dense<0.000000e+00> : vector<16x16xf32>
    %285 = tpu.matmul %284, %148, %cst_224 {dimension_numbers = #tpu.dot_dimension_numbers<[1], [0], [0], [1], [0, 0, 1, 1], [], []>} : vector<16x64xbf16>, vector<64x16xbf16>, vector<16x16xf32> -> vector<16x16xf32>
    %286 = vector.broadcast %149 : vector<1x16xf32> to vector<16x16xf32>
    %287 = arith.addf %285, %286 : vector<16x16xf32>
    %c0_225 = arith.constant 0 : index
    %c176 = arith.constant 176 : index
    %c0_226 = arith.constant 0 : index
    %288 = vector.load %arg1[%c0_225, %c176, %c0_226] : memref<1x256x16xf32, #tpu.memory_space<vmem>>, vector<1x16x16xf32>
    %289 = vector.shape_cast %288 : vector<1x16x16xf32> to vector<16x16xf32>
    %290 = arith.addf %287, %289 : vector<16x16xf32>
    %c0_227 = arith.constant 0 : index
    %c11_228 = arith.constant 11 : index
    %c0_229 = arith.constant 0 : index
    %c0_230 = arith.constant 0 : index
    %291 = vector.load %arg8[%c0_227, %c11_228, %c0_229, %c0_230] : memref<1x16x16x16xf32, #tpu.memory_space<vmem>>, vector<1x1x16x16xf32>
    %292 = vector.shape_cast %291 : vector<1x1x16x16xf32> to vector<16x16xf32>
    %293 = vector.shape_cast %290 : vector<16x16xf32> to vector<1x1x16x16xf32>
    tpu.vector_store %arg8[%c0_227, %c11_228, %c0_229, %c0_230], %293 {strides = array<i32>} : memref<1x16x16x16xf32, #tpu.memory_space<vmem>>, vector<1x1x16x16xf32>,
    %c12_231 = arith.constant 12 : index
    %c0_232 = arith.constant 0 : index
    %c0_233 = arith.constant 0 : index
    %294 = vector.load %arg10[%c12_231, %c0_232, %c0_233] : memref<16x16x64xf32, #tpu.memory_space<vmem>>, vector<1x16x64xf32>
    %295 = vector.shape_cast %294 : vector<1x16x64xf32> to vector<16x64xf32>
    %296 = arith.truncf %295 : vector<16x64xf32> to vector<16x64xbf16>
    %cst_234 = arith.constant dense<0.000000e+00> : vector<16x16xf32>
    %297 = tpu.matmul %296, %148, %cst_234 {dimension_numbers = #tpu.dot_dimension_numbers<[1], [0], [0], [1], [0, 0, 1, 1], [], []>} : vector<16x64xbf16>, vector<64x16xbf16>, vector<16x16xf32> -> vector<16x16xf32>
    %298 = vector.broadcast %149 : vector<1x16xf32> to vector<16x16xf32>
    %299 = arith.addf %297, %298 : vector<16x16xf32>
    %c0_235 = arith.constant 0 : index
    %c192 = arith.constant 192 : index
    %c0_236 = arith.constant 0 : index
    %300 = vector.load %arg1[%c0_235, %c192, %c0_236] : memref<1x256x16xf32, #tpu.memory_space<vmem>>, vector<1x16x16xf32>
    %301 = vector.shape_cast %300 : vector<1x16x16xf32> to vector<16x16xf32>
    %302 = arith.addf %299, %301 : vector<16x16xf32>
    %c0_237 = arith.constant 0 : index
    %c12_238 = arith.constant 12 : index
    %c0_239 = arith.constant 0 : index
    %c0_240 = arith.constant 0 : index
    %303 = vector.load %arg8[%c0_237, %c12_238, %c0_239, %c0_240] : memref<1x16x16x16xf32, #tpu.memory_space<vmem>>, vector<1x1x16x16xf32>
    %304 = vector.shape_cast %303 : vector<1x1x16x16xf32> to vector<16x16xf32>
    %305 = vector.shape_cast %302 : vector<16x16xf32> to vector<1x1x16x16xf32>
    tpu.vector_store %arg8[%c0_237, %c12_238, %c0_239, %c0_240], %305 {strides = array<i32>} : memref<1x16x16x16xf32, #tpu.memory_space<vmem>>, vector<1x1x16x16xf32>,
    %c13_241 = arith.constant 13 : index
    %c0_242 = arith.constant 0 : index
    %c0_243 = arith.constant 0 : index
    %306 = vector.load %arg10[%c13_241, %c0_242, %c0_243] : memref<16x16x64xf32, #tpu.memory_space<vmem>>, vector<1x16x64xf32>
    %307 = vector.shape_cast %306 : vector<1x16x64xf32> to vector<16x64xf32>
    %308 = arith.truncf %307 : vector<16x64xf32> to vector<16x64xbf16>
    %cst_244 = arith.constant dense<0.000000e+00> : vector<16x16xf32>
    %309 = tpu.matmul %308, %148, %cst_244 {dimension_numbers = #tpu.dot_dimension_numbers<[1], [0], [0], [1], [0, 0, 1, 1], [], []>} : vector<16x64xbf16>, vector<64x16xbf16>, vector<16x16xf32> -> vector<16x16xf32>
    %310 = vector.broadcast %149 : vector<1x16xf32> to vector<16x16xf32>
    %311 = arith.addf %309, %310 : vector<16x16xf32>
    %c0_245 = arith.constant 0 : index
    %c208 = arith.constant 208 : index
    %c0_246 = arith.constant 0 : index
    %312 = vector.load %arg1[%c0_245, %c208, %c0_246] : memref<1x256x16xf32, #tpu.memory_space<vmem>>, vector<1x16x16xf32>
    %313 = vector.shape_cast %312 : vector<1x16x16xf32> to vector<16x16xf32>
    %314 = arith.addf %311, %313 : vector<16x16xf32>
    %c0_247 = arith.constant 0 : index
    %c13_248 = arith.constant 13 : index
    %c0_249 = arith.constant 0 : index
    %c0_250 = arith.constant 0 : index
    %315 = vector.load %arg8[%c0_247, %c13_248, %c0_249, %c0_250] : memref<1x16x16x16xf32, #tpu.memory_space<vmem>>, vector<1x1x16x16xf32>
    %316 = vector.shape_cast %315 : vector<1x1x16x16xf32> to vector<16x16xf32>
    %317 = vector.shape_cast %314 : vector<16x16xf32> to vector<1x1x16x16xf32>
    tpu.vector_store %arg8[%c0_247, %c13_248, %c0_249, %c0_250], %317 {strides = array<i32>} : memref<1x16x16x16xf32, #tpu.memory_space<vmem>>, vector<1x1x16x16xf32>,
    %c14_251 = arith.constant 14 : index
    %c0_252 = arith.constant 0 : index
    %c0_253 = arith.constant 0 : index
    %318 = vector.load %arg10[%c14_251, %c0_252, %c0_253] : memref<16x16x64xf32, #tpu.memory_space<vmem>>, vector<1x16x64xf32>
    %319 = vector.shape_cast %318 : vector<1x16x64xf32> to vector<16x64xf32>
    %320 = arith.truncf %319 : vector<16x64xf32> to vector<16x64xbf16>
    %cst_254 = arith.constant dense<0.000000e+00> : vector<16x16xf32>
    %321 = tpu.matmul %320, %148, %cst_254 {dimension_numbers = #tpu.dot_dimension_numbers<[1], [0], [0], [1], [0, 0, 1, 1], [], []>} : vector<16x64xbf16>, vector<64x16xbf16>, vector<16x16xf32> -> vector<16x16xf32>
    %322 = vector.broadcast %149 : vector<1x16xf32> to vector<16x16xf32>
    %323 = arith.addf %321, %322 : vector<16x16xf32>
    %c0_255 = arith.constant 0 : index
    %c224 = arith.constant 224 : index
    %c0_256 = arith.constant 0 : index
    %324 = vector.load %arg1[%c0_255, %c224, %c0_256] : memref<1x256x16xf32, #tpu.memory_space<vmem>>, vector<1x16x16xf32>
    %325 = vector.shape_cast %324 : vector<1x16x16xf32> to vector<16x16xf32>
    %326 = arith.addf %323, %325 : vector<16x16xf32>
    %c0_257 = arith.constant 0 : index
    %c14_258 = arith.constant 14 : index
    %c0_259 = arith.constant 0 : index
    %c0_260 = arith.constant 0 : index
    %327 = vector.load %arg8[%c0_257, %c14_258, %c0_259, %c0_260] : memref<1x16x16x16xf32, #tpu.memory_space<vmem>>, vector<1x1x16x16xf32>
    %328 = vector.shape_cast %327 : vector<1x1x16x16xf32> to vector<16x16xf32>
    %329 = vector.shape_cast %326 : vector<16x16xf32> to vector<1x1x16x16xf32>
    tpu.vector_store %arg8[%c0_257, %c14_258, %c0_259, %c0_260], %329 {strides = array<i32>} : memref<1x16x16x16xf32, #tpu.memory_space<vmem>>, vector<1x1x16x16xf32>,
    %c15_261 = arith.constant 15 : index
    %c0_262 = arith.constant 0 : index
    %c0_263 = arith.constant 0 : index
    %330 = vector.load %arg10[%c15_261, %c0_262, %c0_263] : memref<16x16x64xf32, #tpu.memory_space<vmem>>, vector<1x16x64xf32>
    %331 = vector.shape_cast %330 : vector<1x16x64xf32> to vector<16x64xf32>
    %332 = arith.truncf %331 : vector<16x64xf32> to vector<16x64xbf16>
    %cst_264 = arith.constant dense<0.000000e+00> : vector<16x16xf32>
    %333 = tpu.matmul %332, %148, %cst_264 {dimension_numbers = #tpu.dot_dimension_numbers<[1], [0], [0], [1], [0, 0, 1, 1], [], []>} : vector<16x64xbf16>, vector<64x16xbf16>, vector<16x16xf32> -> vector<16x16xf32>
    %334 = vector.broadcast %149 : vector<1x16xf32> to vector<16x16xf32>
    %335 = arith.addf %333, %334 : vector<16x16xf32>
    %c0_265 = arith.constant 0 : index
    %c240 = arith.constant 240 : index
    %c0_266 = arith.constant 0 : index
    %336 = vector.load %arg1[%c0_265, %c240, %c0_266] : memref<1x256x16xf32, #tpu.memory_space<vmem>>, vector<1x16x16xf32>
    %337 = vector.shape_cast %336 : vector<1x16x16xf32> to vector<16x16xf32>
    %338 = arith.addf %335, %337 : vector<16x16xf32>
    %c0_267 = arith.constant 0 : index
    %c15_268 = arith.constant 15 : index
    %c0_269 = arith.constant 0 : index
    %c0_270 = arith.constant 0 : index
    %339 = vector.load %arg8[%c0_267, %c15_268, %c0_269, %c0_270] : memref<1x16x16x16xf32, #tpu.memory_space<vmem>>, vector<1x1x16x16xf32>
    %340 = vector.shape_cast %339 : vector<1x1x16x16xf32> to vector<16x16xf32>
    %341 = vector.shape_cast %338 : vector<16x16xf32> to vector<1x1x16x16xf32>
    tpu.vector_store %arg8[%c0_267, %c15_268, %c0_269, %c0_270], %341 {strides = array<i32>} : memref<1x16x16x16xf32, #tpu.memory_space<vmem>>, vector<1x1x16x16xf32>,
    return
  }
  func.func @transform_0(%arg0: i32) -> (i32, i32, i32) {
    %c0_i32 = arith.constant 0 : i32
    %c0_i32_0 = arith.constant 0 : i32
    %c0_i32_1 = arith.constant 0 : i32
    return %arg0, %c0_i32, %c0_i32_0 : i32, i32, i32
  }
  func.func @transform_1(%arg0: i32) -> (i32, i32) {
    %c0_i32 = arith.constant 0 : i32
    %c0_i32_0 = arith.constant 0 : i32
    %c0_i32_1 = arith.constant 0 : i32
    return %c0_i32, %c0_i32_0 : i32, i32
  }
  func.func @transform_2(%arg0: i32) -> (i32, i32) {
    %c0_i32 = arith.constant 0 : i32
    %c0_i32_0 = arith.constant 0 : i32
    %c0_i32_1 = arith.constant 0 : i32
    return %c0_i32, %c0_i32_0 : i32, i32
  }
  func.func @transform_3(%arg0: i32) -> (i32, i32) {
    %c0_i32 = arith.constant 0 : i32
    %c0_i32_0 = arith.constant 0 : i32
    %c0_i32_1 = arith.constant 0 : i32
    return %c0_i32, %c0_i32_0 : i32, i32
  }
  func.func @transform_4(%arg0: i32) -> (i32, i32) {
    %c0_i32 = arith.constant 0 : i32
    %c0_i32_0 = arith.constant 0 : i32
    %c0_i32_1 = arith.constant 0 : i32
    return %c0_i32, %c0_i32_0 : i32, i32
  }
  func.func @transform_5(%arg0: i32) -> (i32, i32) {
    %c0_i32 = arith.constant 0 : i32
    %c0_i32_0 = arith.constant 0 : i32
    %c0_i32_1 = arith.constant 0 : i32
    return %c0_i32, %c0_i32_0 : i32, i32
  }
  func.func @transform_6(%arg0: i32) -> (i32, i32) {
    %c0_i32 = arith.constant 0 : i32
    %c0_i32_0 = arith.constant 0 : i32
    %c0_i32_1 = arith.constant 0 : i32
    return %c0_i32, %c0_i32_0 : i32, i32
  }
  func.func @transform_7(%arg0: i32) -> (i32, i32, i32, i32) {
    %c0_i32 = arith.constant 0 : i32
    %c0_i32_0 = arith.constant 0 : i32
    %c0_i32_1 = arith.constant 0 : i32
    %c0_i32_2 = arith.constant 0 : i32
    return %arg0, %c0_i32, %c0_i32_0, %c0_i32_1 : i32, i32, i32, i32
  }
}

</mosaic_0001>

<bundles_post_ra>
// kernel: residual_unit_forward.1
= control target key start
LH: loop header
LB: loop body
LE: loop exit
PB: predicated region body
PF: predicated region fallthrough
CT: control target
= control target key end

     0   :  { %s3148_s24 = smov 0   ;;  %s4539_s0 = inlined_call_operand.vmem [shape: f32[2,256,16], index: 0, kind: input, shape index: {}]   ;;  %s4540_s1 = inlined_call_operand.vmem [shape: bf16[16,64], index: 1, kind: input, shape index: {}]   ;;  %s4541_s2 = inlined_call_operand.vmem [shape: f32[1,64], index: 2, kind: input, shape index: {}]   ;;  %s4542_s3 = inlined_call_operand.vmem [shape: f32[9,64], index: 3, kind: input, shape index: {}]   ;;  %s4543_s4 = inlined_call_operand.vmem [shape: f32[1,64], index: 4, kind: input, shape index: {}]   ;;  %s4544_s5 = inlined_call_operand.vmem [shape: bf16[64,16], index: 5, kind: input, shape index: {}]   ;;  %s4545_s6 = inlined_call_operand.vmem [shape: f32[1,16], index: 6, kind: input, shape index: {}]   ;;  %s4546_s7 = inlined_call_operand.vmem [shape: f32[2,16,16,16], index: 7, kind: output, shape index: {}]  }
   0x1 LB: > { %s2666_s25 = sadd.s32 4294967295, %s3104_s24   ;;  %p2670_p0 = scmp.ge.s32.totalorder %s3104_s24, 1  ;;  %s3104_s24 = sphi %s3148_s24, %s17_s24  }
   0x2   : > { %p237_p1 = scmp.lt.s32.totalorder %s3104_s24, 3 }
   0x4   : > { %p238_p2 = pnand %p2670_p0, %p237_p1 }
   0x6   : > { %241 = sbr.rel (%p238_p2) target bundleno = 685 (0x2ad), region = 48 }
   0xd   : > { %v3083_v0 = vld [vmem:[%s4540_s1] sm:$0xff]   ;;  %p269_p3 = scmp.lt.s32.totalorder %s2666_s25, 1  ;;  %vm343_vm0 = vcmask 130048   ;;  %vm585_vm1 = vcmask 523264   ;;  %v4547_v49 = vmov 0.0   ;;  %vm588_vm2 = vcmask 517120  }
   0xe   : > { %2847 = vmatprep.subr.bf16.mxu0 %v3083_v0  ;;  %593 = vst.msk [vmem:[#allocation2 + $0x30] sm:$0xff] %vm585_vm1, %v4547_v49  ;;  %594 = vst.msk [vmem:[#allocation2 + $0x38] sm:$0xff] %vm585_vm1, %v4547_v49  ;;  %2881 = vmatprep.subr.bf16.mxu1 %v4547_v49  ;;  %v3330_v50 = vld [vmem:[%s4544_s5] sm:$0xff]   ;;  %v3339_v51 = vld [vmem:[%s4544_s5 + $0x8] sm:$0xff]   ;;  %vm3107_vm3 = vmmov 0   ;;  %v724_v54 = vlaneseq }
   0xf   : > { %s4597_s25 = smov (!%p269_p3, %s2666_s25), 1  ;;  %2848 = vmatpush3.bf16.msra.mxu0 %v3083_v0  ;;  %586 = vst.msk [vmem:[#allocation2] sm:$0xff] %vm585_vm1, %v4547_v49  ;;  %587 = vst.msk [vmem:[#allocation2 + $0x8] sm:$0xff] %vm585_vm1, %v4547_v49  ;;  %2882 = vmatpush3.bf16.msra.mxu1 %v3330_v50  ;;  %v3348_v52 = vld [vmem:[%s4544_s5 + $0x10] sm:$0xff]   ;;  %v3357_v53 = vld [vmem:[%s4544_s5 + $0x18] sm:$0xff]  }
  0x10   : > { %s2748_s28 = sshll.u32 %s4597_s25, 8  ;;  %590 = vst.msk [vmem:[#allocation2 + $0x18] sm:$0xff] %vm585_vm1, %v4547_v49  ;;  %591 = vst.msk [vmem:[#allocation2 + $0x20] sm:$0xff] %vm585_vm1, %v4547_v49  ;;  %2929 = vmatprep.subr.bf16.mxu0 %v4547_v49  ;;  %2883 = vmatprep.subr.bf16.mxu1 %v4547_v49  ;;  %v725_v55 = vshrl.u32 %v724_v54, 7  ;;  %v689_v58 = vld [vmem:[%s4542_s3] sm:$0xff] }
  0x11   : > { %s3167_s8 = scalar_lea.vmem %s4539_s0, %s2748_s28  ;;  %596 = vst.msk [vmem:[#allocation2 + $0x48] sm:$0xff] %vm585_vm1, %v4547_v49  ;;  %597 = vst.msk [vmem:[#allocation2 + $0x50] sm:$0xff] %vm585_vm1, %v4547_v49  ;;  %2889 = vmatprep.mubr.msk.bf16.mxu1 %vm3107_vm3, %v4547_v49  ;;  %v3373_v59 = vld [vmem:[%s4541_s2] ss:$0 sm:$0xff]  ;;  %s4408_s11 = scalar_lea.vmem %s4546_s7, %s2748_s28 }
  0x12   : > { %v280_v1 = vld [vmem:[%s3167_s8] sm:$0xff]  ;;  %v281_v2 = vld [vmem:[%s3167_s8 + $0x8] sm:$0xff]  ;;  %v282_v3 = vld [vmem:[%s3167_s8 + $0x10] sm:$0xff]  ;;  %599 = vst.msk [vmem:[#allocation2 + $0x60] sm:$0xff] %vm585_vm1, %v4547_v49  ;;  %v726_v56 = vsub.s32 0, %v725_v55  ;;  %v826_v57 = vsub.s32 1, %v725_v55 }
  0x13   : > { %v312_v4 = vpack.c.bf16 %v281_v2, %v280_v1  ;;  %v283_v5 = vld [vmem:[%s3167_s8 + $0x18] sm:$0xff]  ;;  %v284_v6 = vld [vmem:[%s3167_s8 + $0x20] sm:$0xff]  ;;  %v285_v7 = vld [vmem:[%s3167_s8 + $0x28] sm:$0xff]  ;;  %600 = vst.msk [vmem:[#allocation2 + $0x68] sm:$0xff] %vm585_vm1, %v4547_v49  ;;  %2884 = vmatpush3.bf16.msra.mxu1 %v3339_v51 }
  0x14   : > { %v313_v8 = vpack.c.bf16 %v283_v5, %v282_v3  ;;  %v314_v9 = vpack.c.bf16 %v285_v7, %v284_v6  ;;  %v286_v10 = vld [vmem:[%s3167_s8 + $0x30] sm:$0xff]  ;;  %v287_v11 = vld [vmem:[%s3167_s8 + $0x38] sm:$0xff]  ;;  %v288_v12 = vld [vmem:[%s3167_s8 + $0x40] sm:$0xff]  ;;  %602 = vst.msk [vmem:[#allocation2 + $0x78] sm:$0xff] %vm585_vm1, %v4547_v49  ;;  %2885 = vmatprep.subr.bf16.mxu1 %v4547_v49  ;;  %v3375_v61 = vrot.slane %v689_v58, %v726_v56  ;;  %v926_v3 = vsub.s32 2, %v725_v55 }
  0x15   : > { %2849 = vmatprep.mubr.msk.bf16.mxu0 %vm343_vm0, %v312_v4  ;;  %v289_v13 = vld [vmem:[%s3167_s8 + $0x48] sm:$0xff]  ;;  %v315_v14 = vpack.c.bf16 %v287_v11, %v286_v10  ;;  %v290_v16 = vld [vmem:[%s3167_s8 + $0x50] sm:$0xff]  ;;  %v291_v17 = vld [vmem:[%s3167_s8 + $0x58] sm:$0xff]  ;;  %603 = vst.msk [vmem:[#allocation2 + $0x80] sm:$0xff] %vm585_vm1, %v4547_v49  ;;  %v3377_v62 = vrot.slane %v689_v58, %v826_v57 }
  0x16   : > { %2850 = vmatmul.mubr.msk.bf16.vlgmr.msra.gmra.mrb[0].mxu0 %vm343_vm0, %v313_v8  ;;  %v316_v15 = vpack.c.bf16 %v289_v13, %v288_v12  ;;  %v292_v18 = vld [vmem:[%s3167_s8 + $0x60] sm:$0xff]  ;;  %v293_v19 = vld [vmem:[%s3167_s8 + $0x68] sm:$0xff]  ;;  %v317_v20 = vpack.c.bf16 %v291_v17, %v290_v16  ;;  %v294_v22 = vld [vmem:[%s3167_s8 + $0x70] sm:$0xff]  ;;  %605 = vst.msk [vmem:[#allocation2 + $0x90] sm:$0xff] %vm585_vm1, %v4547_v49 }
  0x17   : > { %2853 = vmatprep.mubr.msk.bf16.mxu0 %vm343_vm0, %v314_v9  ;;  %v318_v21 = vpack.c.bf16 %v293_v19, %v292_v18  ;;  %v295_v23 = vld [vmem:[%s3167_s8 + $0x78] sm:$0xff]  ;;  %v296_v24 = vld [vmem:[%s3167_s8 + $0x80] sm:$0xff]  ;;  %v297_v25 = vld [vmem:[%s3167_s8 + $0x88] sm:$0xff]  ;;  %606 = vst.msk [vmem:[#allocation2 + $0x98] sm:$0xff] %vm585_vm1, %v4547_v49  ;;  %2930 = vmatpush3.bf16.msra.mxu0 %v3330_v50 }
  0x18   : > { %v319_v26 = vpack.c.bf16 %v295_v23, %v294_v22  ;;  %v320_v27 = vpack.c.bf16 %v297_v25, %v296_v24  ;;  %v298_v28 = vld [vmem:[%s3167_s8 + $0x90] sm:$0xff]  ;;  %v299_v29 = vld [vmem:[%s3167_s8 + $0x98] sm:$0xff]  ;;  %v300_v30 = vld [vmem:[%s3167_s8 + $0xa0] sm:$0xff]  ;;  %608 = vst.msk [vmem:[#allocation2 + $0xa8] sm:$0xff] %vm585_vm1, %v4547_v49  ;;  %2931 = vmatprep.subr.bf16.mxu0 %v4547_v49  ;;  %2886 = vmatpush3.bf16.msra.mxu1 %v3348_v52  ;;  %v1026_v22 = vsub.s32 3, %v725_v55  ;;  %v1126_v23 = vsub.s32 4, %v725_v55 }
  0x19   : > { %v301_v31 = vld [vmem:[%s3167_s8 + $0xa8] sm:$0xff]  ;;  %v321_v32 = vpack.c.bf16 %v299_v29, %v298_v28  ;;  %v302_v34 = vld [vmem:[%s3167_s8 + $0xb0] sm:$0xff]  ;;  %v303_v35 = vld [vmem:[%s3167_s8 + $0xb8] sm:$0xff]  ;;  %609 = vst.msk [vmem:[#allocation2 + $0xb0] sm:$0xff] %vm585_vm1, %v4547_v49  ;;  %2887 = vmatprep.subr.bf16.mxu1 %v4547_v49  ;;  %v1326_v24 = vsub.s32 6, %v725_v55  ;;  %v1426_v25 = vsub.s32 7, %v725_v55 }
  0x1a   : > { %v322_v33 = vpack.c.bf16 %v301_v31, %v300_v30  ;;  %v304_v36 = vld [vmem:[%s3167_s8 + $0xc0] sm:$0xff]  ;;  %v305_v37 = vld [vmem:[%s3167_s8 + $0xc8] sm:$0xff]  ;;  %v323_v38 = vpack.c.bf16 %v303_v35, %v302_v34  ;;  %v306_v40 = vld [vmem:[%s3167_s8 + $0xd0] sm:$0xff]  ;;  %611 = vst.msk [vmem:[#allocation2 + $0xc0] sm:$0xff] %vm585_vm1, %v4547_v49 }
  0x1b   : > { %v324_v39 = vpack.c.bf16 %v305_v37, %v304_v36  ;;  %v307_v41 = vld [vmem:[%s3167_s8 + $0xd8] sm:$0xff]  ;;  %v308_v42 = vld [vmem:[%s3167_s8 + $0xe0] sm:$0xff]  ;;  %v309_v43 = vld [vmem:[%s3167_s8 + $0xe8] sm:$0xff]  ;;  %612 = vst.msk [vmem:[#allocation2 + $0xc8] sm:$0xff] %vm585_vm1, %v4547_v49  ;;  %2932 = vmatpush3.bf16.msra.mxu0 %v3339_v51  ;;  %v3397_v36 = vrot.slane %v689_v58, %v1026_v22  ;;  %v3399_v37 = vrot.slane %v689_v58, %v1126_v23 }
  0x1c   : > { %v325_v44 = vpack.c.bf16 %v307_v41, %v306_v40  ;;  %v326_v45 = vpack.c.bf16 %v309_v43, %v308_v42  ;;  %v310_v46 = vld [vmem:[%s3167_s8 + $0xf0] sm:$0xff]  ;;  %v311_v47 = vld [vmem:[%s3167_s8 + $0xf8] sm:$0xff]  ;;  %614 = vst.msk [vmem:[#allocation2 + $0xd8] sm:$0xff] %vm585_vm1, %v4547_v49  ;;  %615 = vst.msk [vmem:[#allocation2 + $0xe0] sm:$0xff] %vm585_vm1, %v4547_v49  ;;  %2933 = vmatprep.subr.bf16.mxu0 %v4547_v49  ;;  %2888 = vmatpush3.bf16.msra.mxu1 %v3357_v53 }
  0x1d   : > { %v327_v48 = vpack.c.bf16 %v311_v47, %v310_v46  ;;  %617 = vst.msk [vmem:[#allocation2 + $0xf0] sm:$0xff] %vm585_vm1, %v4547_v49  ;;  %618 = vst.msk [vmem:[#allocation2 + $0xf8] sm:$0xff] %vm585_vm1, %v4547_v49  ;;  %2893 = vmatprep.subr.bf16.mxu1 %v4547_v49  ;;  %v692_v1 = vld [vmem:[#allocation2] sm:$0xff]  ;;  %v693_v6 = vld [vmem:[#allocation2 + $0x8] sm:$0xff]  ;;  %v3401_v42 = vrot.slane %v689_v58, %v1326_v24  ;;  %v3403_v43 = vrot.slane %v689_v58, %v1426_v25 }
  0x1e   : > { %2854 = vmatmul.mubr.msk.bf16.gmra.mrb[4].mxu0 %vm343_vm0, %v315_v14  ;;  %620 = vst.msk [vmem:[#allocation2 + $0x108] sm:$0xff] %vm585_vm1, %v4547_v49  ;;  %621 = vst.msk [vmem:[#allocation2 + $0x110] sm:$0xff] %vm585_vm1, %v4547_v49  ;;  %v792_v2 = vld [vmem:[#allocation2 + $0x1] sm:$0xff]  ;;  %v728_v12 = vmul.f32 %v3375_v61, %v692_v1  ;;  %v729_v17 = vmul.f32 %v3375_v61, %v693_v6 }
  0x1f   : > { %2857 = vmatprep.mubr.msk.bf16.mxu0 %vm343_vm0, %v316_v15  ;;  %623 = vst.msk [vmem:[#allocation2 + $0x120] sm:$0xff] %vm585_vm1, %v4547_v49  ;;  %624 = vst.msk [vmem:[#allocation2 + $0x128] sm:$0xff] %vm585_vm1, %v4547_v49  ;;  %2934 = vmatpush3.bf16.msra.mxu0 %v3348_v52  ;;  %v828_v13 = vmul.f32 %v3377_v62, %v792_v2  ;;  %v3386_v15 = vrot.slane %v689_v58, %v926_v3  ;;  %v892_v19 = vld [vmem:[#allocation2 + $0x2] sm:$0xff] }
  0x20   : > { %626 = vst.msk [vmem:[#allocation2 + $0x138] sm:$0xff] %vm585_vm1, %v4547_v49  ;;  %627 = vst.msk [vmem:[#allocation2 + $0x140] sm:$0xff] %vm585_vm1, %v4547_v49  ;;  %2935 = vmatprep.subr.bf16.mxu0 %v4547_v49  ;;  %v3439_v22 = vld [vmem:[%s4542_s3 + $0x8] ss:$0 sm:$0xff] }
  0x21   : > { %629 = vst.msk [vmem:[#allocation2 + $0x150] sm:$0xff] %vm585_vm1, %v4547_v49  ;;  %630 = vst.msk [vmem:[#allocation2 + $0x158] sm:$0xff] %vm585_vm1, %v4547_v49  ;;  %v928_v29 = vmul.f32 %v3386_v15, %v892_v19 }
  0x22   : > { %632 = vst.msk [vmem:[#allocation2 + $0x168] sm:$0xff] %vm585_vm1, %v4547_v49  ;;  %633 = vst.msk [vmem:[#allocation2 + $0x170] sm:$0xff] %vm585_vm1, %v4547_v49 }
  0x23   : > { %635 = vst.msk [vmem:[#allocation2 + $0x180] sm:$0xff] %vm585_vm1, %v4547_v49  ;;  %636 = vst.msk [vmem:[#allocation2 + $0x188] sm:$0xff] %vm585_vm1, %v4547_v49  ;;  %2936 = vmatpush3.bf16.msra.mxu0 %v3357_v53 }
  0x24   : > { %638 = vst.msk [vmem:[#allocation2 + $0x198] sm:$0xff] %vm585_vm1, %v4547_v49  ;;  %639 = vst.msk [vmem:[#allocation2 + $0x1a0] sm:$0xff] %vm585_vm1, %v4547_v49  ;;  %2953 = vmatprep.subr.bf16.mxu0 %v4547_v49 }
  0x25   : > { %595 = vst.msk [vmem:[#allocation2 + $0x40] sm:$0x3] %vm588_vm2, %v4547_v49  ;;  %589 = vst.msk [vmem:[#allocation2 + $0x10] sm:$0x3] %vm588_vm2, %v4547_v49 }
  0x26   : > { %2858 = vmatmul.mubr.msk.bf16.gmra.mrb[8].mxu0 %vm343_vm0, %v317_v20  ;;  %592 = vst.msk [vmem:[#allocation2 + $0x28] sm:$0x3] %vm588_vm2, %v4547_v49  ;;  %598 = vst.msk [vmem:[#allocation2 + $0x58] sm:$0x3] %vm588_vm2, %v4547_v49 }
  0x27   : > { %2861 = vmatprep.mubr.msk.bf16.mxu0 %vm343_vm0, %v318_v21  ;;  %601 = vst.msk [vmem:[#allocation2 + $0x70] sm:$0x3] %vm588_vm2, %v4547_v49  ;;  %604 = vst.msk [vmem:[#allocation2 + $0x88] sm:$0x3] %vm588_vm2, %v4547_v49 }
  0x28   : > { %607 = vst.msk [vmem:[#allocation2 + $0xa0] sm:$0x3] %vm588_vm2, %v4547_v49  ;;  %610 = vst.msk [vmem:[#allocation2 + $0xb8] sm:$0x3] %vm588_vm2, %v4547_v49 }
  0x29   : > { %613 = vst.msk [vmem:[#allocation2 + $0xd0] sm:$0x3] %vm588_vm2, %v4547_v49  ;;  %616 = vst.msk [vmem:[#allocation2 + $0xe8] sm:$0x3] %vm588_vm2, %v4547_v49 }
  0x2a   : > { %619 = vst.msk [vmem:[#allocation2 + $0x100] sm:$0x3] %vm588_vm2, %v4547_v49  ;;  %622 = vst.msk [vmem:[#allocation2 + $0x118] sm:$0x3] %vm588_vm2, %v4547_v49 }
  0x2b   : > { %625 = vst.msk [vmem:[#allocation2 + $0x130] sm:$0x3] %vm588_vm2, %v4547_v49  ;;  %628 = vst.msk [vmem:[#allocation2 + $0x148] sm:$0x3] %vm588_vm2, %v4547_v49 }
  0x2c   : > { %631 = vst.msk [vmem:[#allocation2 + $0x160] sm:$0x3] %vm588_vm2, %v4547_v49  ;;  %634 = vst.msk [vmem:[#allocation2 + $0x178] sm:$0x3] %vm588_vm2, %v4547_v49  ;;  %v793_v7 = vld [vmem:[#allocation2 + $0x9] sm:$0xff] }
  0x2d   : > { %637 = vst.msk [vmem:[#allocation2 + $0x190] sm:$0x3] %vm588_vm2, %v4547_v49  ;;  %640 = vst.msk [vmem:[#allocation2 + $0x1a8] sm:$0x3] %vm588_vm2, %v4547_v49  ;;  %v829_v18 = vmul.f32 %v3377_v62, %v793_v7  ;;  %v893_v21 = vld [vmem:[#allocation2 + $0xa] sm:$0xff] }
  0x2e   : > { %2862 = vmatmul.mubr.msk.bf16.gmra.mrb[12].mxu0 %vm343_vm0, %v319_v26  ;;  %4553 = vst [vmem:[#allocation4_spill] sm:$0xff] %v3386_v15  ;;  %v860_v26 = vadd.f32 %v828_v13, %v728_v12  ;;  %v929_v31 = vmul.f32 %v3386_v15, %v893_v21 }
  0x2f   : > { %2865 = vmatprep.mubr.msk.bf16.mxu0 %vm343_vm0, %v320_v27  ;;  %v1226_v27 = vsub.s32 5, %v725_v55  ;;  %v861_v30 = vadd.f32 %v829_v18, %v729_v17 }
  0x30   : > { %v960_v55 = vadd.f32 %v928_v29, %v860_v26 }
  0x31   : > { %v961_v56 = vadd.f32 %v929_v31, %v861_v30 }
  0x36   : > { %2866 = vmatmul.mubr.msk.bf16.gmra.mrb[16].mxu0 %vm343_vm0, %v321_v32 }
  0x37   : > { %2869 = vmatprep.mubr.msk.bf16.mxu0 %vm343_vm0, %v322_v33 }
  0x3e   : > { %2870 = vmatmul.mubr.msk.bf16.gmra.mrb[20].mxu0 %vm343_vm0, %v323_v38 }
  0x3f   : > { %2873 = vmatprep.mubr.msk.bf16.mxu0 %vm343_vm0, %v324_v39 }
  0x46   : > { %2874 = vmatmul.mubr.msk.bf16.gmra.mrb[24].mxu0 %vm343_vm0, %v325_v44  ;;  %v3405_v44 = vrot.slane %v689_v58, %v1226_v27 }
  0x47   : > { %2877 = vmatprep.mubr.msk.bf16.mxu0 %vm343_vm0, %v326_v45 }
  0x4e   : > { %2878 = vmatmul.mubr.msk.bf16.gmra.mrb[28].mxu0 %vm343_vm0, %v327_v48 }
  0x4f   : > { %2937 = vmatprep.mubr.msk.bf16.mxu0 %vm3107_vm3, %v4547_v49 }
  0xe9   : > { %v2851_v60 = vpop.f32.mrb[0].mxu0 }
  0xea   : > { %v435_v63 = vadd.f32 %v2851_v60, %v3373_v59  ;;  %v426_v0 = vpop.f32.mrb[1].mxu0 }
  0xeb   : > { %v427_v4 = vadd.f32 %v3373_v59, %v426_v0  ;;  %v2852_v5 = vpop.f32.mrb[2].mxu0 }
  0xec   : > { %v555_v8 = vmax.f32 %v435_v63, 0.0  ;;  %v438_v9 = vadd.f32 %v2852_v5, %v3373_v59  ;;  %v429_v10 = vpop.f32.mrb[3].mxu0 }
  0xed   : > { %v553_v11 = vmax.f32 %v427_v4, 0.0  ;;  %v430_v14 = vadd.f32 %v3373_v59, %v429_v10 }
  0xee   : > { %645 = vst.msk [vmem:[#allocation2 + $0x31] sm:$0xff] %vm585_vm1, %v555_v8  ;;  %v556_v16 = vmax.f32 %v438_v9, 0.0 }
  0xef   : > { %642 = vst.msk [vmem:[#allocation2 + $0x19] sm:$0xff] %vm585_vm1, %v553_v11  ;;  %v554_v20 = vmax.f32 %v430_v14, 0.0 }
  0xf0   : > { %646 = vst.msk [vmem:[#allocation2 + $0x39] sm:$0xff] %vm585_vm1, %v556_v16 }
  0xf1   : > { %643 = vst.msk [vmem:[#allocation2 + $0x21] sm:$0xff] %vm585_vm1, %v554_v20  ;;  %v2855_v28 = vpop.f32.mrb[4].mxu0 }
  0xf2   : > { %v451_v32 = vadd.f32 %v2855_v28, %v3373_v59  ;;  %v442_v33 = vpop.f32.mrb[5].mxu0 }
  0xf3   : > { %v443_v34 = vadd.f32 %v3373_v59, %v442_v33  ;;  %v2856_v35 = vpop.f32.mrb[6].mxu0 }
  0xf4   : > { %v559_v38 = vmax.f32 %v451_v32, 0.0  ;;  %v445_v39 = vpop.f32.mrb[7].mxu0  ;;  %v3414_v58 = vadd.f32 %v2856_v35, %v3373_v59 }
  0xf5   : > { %v696_v40 = vld [vmem:[#allocation2 + $0x30] sm:$0xff]  ;;  %v557_v45 = vmax.f32 %v443_v34, 0.0  ;;  %v3417_v2 = vadd.f32 %v3373_v59, %v445_v39 }
  0xf6   : > { %v796_v41 = vld [vmem:[#allocation2 + $0x31] sm:$0xff]  ;;  %v732_v46 = vmul.f32 %v3375_v61, %v696_v40  ;;  %v794_v54 = vld [vmem:[#allocation2 + $0x19] sm:$0xff]  ;;  %651 = vst.msk [vmem:[#allocation2 + $0x61] sm:$0xff] %vm585_vm1, %v559_v38  ;;  %v1030_v4 = vmul.f32 %v3397_v36, %v696_v40  ;;  %v1328_v9 = vmul.f32 %v3401_v42, %v696_v40 }
  0xf7   : > { %v832_v47 = vmul.f32 %v3377_v62, %v796_v41  ;;  %v694_v48 = vld [vmem:[#allocation2 + $0x18] sm:$0xff]  ;;  %v830_v60 = vmul.f32 %v3377_v62, %v794_v54  ;;  %648 = vst.msk [vmem:[#allocation2 + $0x49] sm:$0xff] %vm585_vm1, %v557_v45  ;;  %v3423_v8 = vmul.f32 %v3399_v37, %v796_v41  ;;  %v3431_v13 = vmul.f32 %v3403_v43, %v796_v41 }
  0xf8   : > { %v730_v57 = vmul.f32 %v3375_v61, %v694_v48  ;;  %v697_v63 = vld [vmem:[#allocation2 + $0x38] sm:$0xff]  ;;  %v1028_v5 = vmul.f32 %v3397_v36, %v694_v48  ;;  %v1128_v17 = vmul.f32 %v3399_v37, %v794_v54  ;;  %v695_v18 = vld [vmem:[#allocation2 + $0x20] sm:$0xff] }
  0xf9   : > { %v797_v0 = vld [vmem:[#allocation2 + $0x39] sm:$0xff]  ;;  %v864_v3 = vadd.f32 %v832_v47, %v732_v46  ;;  %v733_v6 = vmul.f32 %v3375_v61, %v697_v63  ;;  %v3428_v12 = vpop.f32.mrb[8].mxu0  ;;  %v795_v19 = vld [vmem:[#allocation2 + $0x21] sm:$0xff]  ;;  %v1031_v24 = vmul.f32 %v3397_v36, %v697_v63  ;;  %v1329_v34 = vmul.f32 %v3401_v42, %v697_v63 }
  0xfa   : > { %v896_v1 = vld [vmem:[#allocation2 + $0x32] sm:$0xff]  ;;  %v897_v7 = vld [vmem:[#allocation2 + $0x3a] sm:$0xff]  ;;  %v833_v10 = vmul.f32 %v3377_v62, %v797_v0  ;;  %v862_v14 = vadd.f32 %v830_v60, %v730_v57  ;;  %v1060_v16 = vadd.f32 %v1028_v5, %v960_v55  ;;  %v3434_v21 = vpop.f32.mrb[9].mxu0  ;;  %v3444_v25 = vmul.f32 %v3399_v37, %v797_v0  ;;  %v895_v32 = vld [vmem:[#allocation2 + $0x22] sm:$0xff] }
  0xfb   : > { %v932_v11 = vmul.f32 %v3386_v15, %v896_v1  ;;  %v894_v20 = vld [vmem:[#allocation2 + $0x1a] sm:$0xff]  ;;  %v933_v23 = vmul.f32 %v3386_v15, %v897_v7  ;;  %v1230_v26 = vmul.f32 %v3405_v44, %v896_v1  ;;  %v2860_v27 = vpop.f32.mrb[10].mxu0  ;;  %v3448_v31 = vmul.f32 %v3405_v44, %v897_v7 }
  0xfc   : > { %v1160_v28 = vadd.f32 %v1128_v17, %v1060_v16  ;;  %v865_v29 = vadd.f32 %v833_v10, %v733_v6  ;;  %v461_v33 = vpop.f32.mrb[11].mxu0  ;;  %v731_v35 = vmul.f32 %v3375_v61, %v695_v18  ;;  %v831_v38 = vmul.f32 %v3377_v62, %v795_v19 }
  0xfd   : > { %v964_v30 = vadd.f32 %v932_v11, %v864_v3  ;;  %v930_v39 = vmul.f32 %v3386_v15, %v894_v20  ;;  %v800_v40 = vld [vmem:[#allocation2 + $0x61] sm:$0xff]  ;;  %v1429_v41 = vmul.f32 %v3403_v43, %v797_v0  ;;  %v1528_v45 = vmul.f32 %v3439_v22, %v896_v1 }
  0xfe   : > { %v1029_v46 = vmul.f32 %v3397_v36, %v695_v18  ;;  %v1228_v47 = vmul.f32 %v3405_v44, %v894_v20  ;;  %v700_v48 = vld [vmem:[#allocation2 + $0x60] sm:$0xff]  ;;  %v863_v54 = vadd.f32 %v831_v38, %v731_v35  ;;  %v931_v55 = vmul.f32 %v3386_v15, %v895_v32  ;;  %v698_v0 = vld [vmem:[#allocation2 + $0x48] sm:$0xff] }
  0xff   : > { %v962_v57 = vadd.f32 %v930_v39, %v862_v14  ;;  %v736_v60 = vmul.f32 %v3375_v61, %v700_v48  ;;  %v1129_v3 = vmul.f32 %v3399_v37, %v795_v19  ;;  %v836_v6 = vmul.f32 %v3377_v62, %v800_v40  ;;  %v798_v19 = vld [vmem:[#allocation2 + $0x49] sm:$0xff] }
 0x100   : > { %v1061_v63 = vadd.f32 %v1029_v46, %v961_v56  ;;  %v1260_v5 = vadd.f32 %v1228_v47, %v1160_v28  ;;  %v3462_v10 = vadd.f32 %v933_v23, %v865_v29  ;;  %v1529_v1 = vmul.f32 %v3439_v22, %v897_v7 }
 0x101   : > { %v963_v11 = vadd.f32 %v931_v55, %v863_v54  ;;  %v1062_v16 = vadd.f32 %v1030_v4, %v962_v57  ;;  %v2863_v17 = vpop.f32.mrb[12].mxu0  ;;  %v1229_v20 = vmul.f32 %v3405_v44, %v895_v32  ;;  %v3467_v14 = vmul.f32 %v3397_v36, %v700_v48 }
 0x102   : > { %v1161_v18 = vadd.f32 %v1129_v3, %v1061_v63  ;;  %v3470_v56 = vmul.f32 %v3399_v37, %v800_v40  ;;  %v474_v28 = vpop.f32.mrb[13].mxu0  ;;  %v1360_v35 = vadd.f32 %v1328_v9, %v1260_v5  ;;  %v3472_v38 = vadd.f32 %v836_v6, %v736_v60 }
 0x103   : > { %v3475_v23 = vmul.f32 %v3401_v42, %v700_v48  ;;  %v1032_v4 = vmul.f32 %v3397_v36, %v698_v0  ;;  %v2864_v7 = vpop.f32.mrb[14].mxu0  ;;  %v1063_v29 = vadd.f32 %v1031_v24, %v963_v11  ;;  %v3479_v32 = vmul.f32 %v3403_v43, %v800_v40 }
 0x104   : > { %v1261_v39 = vadd.f32 %v1229_v20, %v1161_v18  ;;  %v1162_v46 = vadd.f32 %v3423_v8, %v1062_v16  ;;  %v477_v47 = vpop.f32.mrb[15].mxu0  ;;  %v734_v54 = vmul.f32 %v3375_v61, %v698_v0  ;;  %v834_v9 = vmul.f32 %v3377_v62, %v798_v19 }
 0x105   : > { %v1132_v55 = vmul.f32 %v3399_v37, %v798_v19  ;;  %v560_v48 = vmax.f32 %v3414_v58, 0.0  ;;  %v1330_v63 = vmul.f32 %v3401_v42, %v698_v0  ;;  %v558_v24 = vmax.f32 %v3417_v2, 0.0 }
 0x106   : > { %v1361_v57 = vadd.f32 %v1329_v34, %v1261_v39  ;;  %v1262_v60 = vadd.f32 %v1230_v26, %v1162_v46  ;;  %v1064_v3 = vadd.f32 %v1032_v4, %v964_v30  ;;  %v467_v8 = vadd.f32 %v3428_v12, %v3373_v59  ;;  %v3502_v30 = vld [vmem:[%s4543_s4] ss:$0 sm:$0xff] }
 0x107   : > { %652 = vst.msk [vmem:[#allocation2 + $0x69] sm:$0xff] %vm585_vm1, %v560_v48  ;;  %v459_v40 = vadd.f32 %v3373_v59, %v3434_v21  ;;  %v470_v5 = vadd.f32 %v2860_v27, %v3373_v59  ;;  %v1430_v6 = vmul.f32 %v3403_v43, %v798_v19  ;;  %649 = vst.msk [vmem:[#allocation2 + $0x51] sm:$0xff] %vm585_vm1, %v558_v24 }
 0x108   : > { %v1163_v58 = vadd.f32 %v3444_v25, %v1063_v29  ;;  %v462_v26 = vadd.f32 %v3373_v59, %v461_v33  ;;  %v1460_v2 = vadd.f32 %v3431_v13, %v1360_v35  ;;  %v563_v12 = vmax.f32 %v467_v8, 0.0 }
 0x109   : > { %v561_v34 = vmax.f32 %v459_v40, 0.0  ;;  %v564_v21 = vmax.f32 %v470_v5, 0.0  ;;  %v1461_v0 = vadd.f32 %v1429_v41, %v1361_v57  ;;  %v2867_v27 = vpop.f32.mrb[16].mxu0  ;;  %v1362_v11 = vadd.f32 %v1330_v63, %v1262_v60 }
 0x10a   : > { %v562_v16 = vmax.f32 %v462_v26, 0.0  ;;  %v1560_v18 = vadd.f32 %v1528_v45, %v1460_v2  ;;  %v483_v20 = vadd.f32 %v2863_v17, %v3373_v59  ;;  %v490_v25 = vpop.f32.mrb[17].mxu0  ;;  %657 = vst.msk [vmem:[#allocation2 + $0x91] sm:$0xff] %vm585_vm1, %v563_v12  ;;  %v475_v33 = vadd.f32 %v3373_v59, %v474_v28 }
 0x10b   : > { %654 = vst.msk [vmem:[#allocation2 + $0x79] sm:$0xff] %vm585_vm1, %v561_v34  ;;  %658 = vst.msk [vmem:[#allocation2 + $0x99] sm:$0xff] %vm585_vm1, %v564_v21  ;;  %v1561_v13 = vadd.f32 %v1529_v1, %v1461_v0  ;;  %v486_v19 = vadd.f32 %v2864_v7, %v3373_v59  ;;  %v478_v41 = vadd.f32 %v3373_v59, %v477_v47  ;;  %v2868_v35 = vpop.f32.mrb[18].mxu0 }
 0x10c   : > { %655 = vst.msk [vmem:[#allocation2 + $0x81] sm:$0xff] %vm585_vm1, %v562_v16  ;;  %v1598_v45 = vadd.f32 %v3502_v30, %v1560_v18  ;;  %v567_v17 = vmax.f32 %v483_v20, 0.0  ;;  %v499_v4 = vadd.f32 %v2867_v27, %v3373_v59  ;;  %v491_v29 = vadd.f32 %v3373_v59, %v490_v25  ;;  %v3515_v39 = vpop.f32.mrb[19].mxu0 }
 0x10d   : > { %v866_v46 = vadd.f32 %v834_v9, %v734_v54  ;;  %v565_v1 = vmax.f32 %v475_v33, 0.0  ;;  %v568_v48 = vmax.f32 %v486_v19, 0.0  ;;  %v566_v28 = vmax.f32 %v478_v41, 0.0 }
 0x10e   : > { %v1164_v57 = vadd.f32 %v1132_v55, %v1064_v3  ;;  %v701_v7 = vld [vmem:[#allocation2 + $0x68] sm:$0xff]  ;;  %v1630_v63 = vmax.f32 %v1598_v45, 0.0  ;;  %663 = vst.msk [vmem:[#allocation2 + $0xc1] sm:$0xff] %vm585_vm1, %v567_v17  ;;  %v571_v24 = vmax.f32 %v499_v4, 0.0  ;;  %v569_v8 = vmax.f32 %v491_v29, 0.0  ;;  %v799_v54 = vld [vmem:[#allocation2 + $0x51] sm:$0xff] }
 0x10f   : > { %v801_v60 = vld [vmem:[#allocation2 + $0x69] sm:$0xff]  ;;  %v737_v40 = vmul.f32 %v3375_v61, %v701_v7  ;;  %v1263_v9 = vadd.f32 %v3448_v31, %v1163_v58  ;;  %660 = vst.msk [vmem:[#allocation2 + $0xa9] sm:$0xff] %vm585_vm1, %v565_v1  ;;  %664 = vst.msk [vmem:[#allocation2 + $0xc9] sm:$0xff] %vm585_vm1, %v568_v48  ;;  %v1462_v55 = vadd.f32 %v1430_v6, %v1362_v11  ;;  %v899_v34 = vld [vmem:[#allocation2 + $0x52] sm:$0xff] }
 0x110   : > { %v900_v47 = vld [vmem:[#allocation2 + $0x62] sm:$0xff]  ;;  %v837_v5 = vmul.f32 %v3377_v62, %v801_v60  ;;  %v901_v26 = vld [vmem:[#allocation2 + $0x6a] sm:$0xff]  ;;  %661 = vst.msk [vmem:[#allocation2 + $0xb1] sm:$0xff] %vm585_vm1, %v566_v28  ;;  %v1035_v3 = vmul.f32 %v3397_v36, %v701_v7  ;;  %v3527_v21 = vadd.f32 %v3502_v30, %v1561_v13  ;;  %1662 = vst.msk [vmem:[#allocation3] sm:$0xff] %vm585_vm1, %v1630_v63 }
 0x111   : > { %v936_v2 = vmul.f32 %v3386_v15, %v900_v47  ;;  %v699_v12 = vld [vmem:[#allocation2 + $0x50] sm:$0xff]  ;;  %669 = vst.msk [vmem:[#allocation2 + $0xf1] sm:$0xff] %vm585_vm1, %v571_v24  ;;  %666 = vst.msk [vmem:[#allocation2 + $0xd9] sm:$0xff] %vm585_vm1, %v569_v8  ;;  %v3533_v31 = vadd.f32 %v2868_v35, %v3373_v59  ;;  %v937_v58 = vmul.f32 %v3386_v15, %v901_v26  ;;  %v3545_v16 = vpop.f32.mrb[20].mxu0 }
 0x112   : > { %v3537_v6 = vmul.f32 %v3399_v37, %v801_v60  ;;  %v3540_v0 = vmul.f32 %v3405_v44, %v900_v47  ;;  %v3543_v27 = vmul.f32 %v3405_v44, %v901_v26  ;;  %v898_v11 = vld [vmem:[#allocation2 + $0x4a] sm:$0xff]  ;;  %4554 = vst [vmem:[#allocation5_spill] sm:$0xff] %v3545_v16  ;;  %v869_v18 = vadd.f32 %v837_v5, %v737_v40  ;;  %v3550_v33 = vpop.f32.mrb[21].mxu0 }
 0x113   : > { %v968_v20 = vadd.f32 %v936_v2, %v3472_v38  ;;  %v735_v25 = vmul.f32 %v3375_v61, %v699_v12  ;;  %v835_v13 = vmul.f32 %v3377_v62, %v799_v54  ;;  %4555 = vst [vmem:[#allocation6_spill] sm:$0xff] %v3550_v33  ;;  %v1333_v19 = vmul.f32 %v3401_v42, %v701_v7  ;;  %v3556_v17 = vpop.f32.mrb[22].mxu0 }
 0x114   : > { %v934_v41 = vmul.f32 %v3386_v15, %v898_v11  ;;  %v935_v35 = vmul.f32 %v3386_v15, %v899_v34  ;;  %v1033_v45 = vmul.f32 %v3397_v36, %v699_v12  ;;  %4556 = vst [vmem:[#allocation7_spill] sm:$0xff] %v3556_v17  ;;  %v1133_v29 = vmul.f32 %v3399_v37, %v799_v54  ;;  %v3561_v48 = vpop.f32.mrb[23].mxu0 }
 0x115   : > { %v867_v4 = vadd.f32 %v835_v13, %v735_v25  ;;  %v1232_v38 = vmul.f32 %v3405_v44, %v898_v11  ;;  %v1233_v1 = vmul.f32 %v3405_v44, %v899_v34  ;;  %4557 = vst [vmem:[#allocation8_spill] sm:$0xff] %v3561_v48  ;;  %v1331_v63 = vmul.f32 %v3401_v42, %v699_v12 }
 0x116   : > { %v966_v28 = vadd.f32 %v934_v41, %v866_v46  ;;  %v1065_v7 = vadd.f32 %v1033_v45, %v3462_v10  ;;  %v1431_v24 = vmul.f32 %v3403_v43, %v799_v54  ;;  %v1433_v8 = vmul.f32 %v3403_v43, %v801_v60  ;;  %v704_v60 = vld [vmem:[#allocation2 + $0x90] sm:$0xff]  ;;  %v702_v45 = vld [vmem:[#allocation2 + $0x78] sm:$0xff] }
 0x117   : > { %v967_v40 = vadd.f32 %v935_v35, %v867_v4  ;;  %v1264_v5 = vadd.f32 %v1232_v38, %v1164_v57  ;;  %v1530_v2 = vmul.f32 %v3439_v22, %v898_v11  ;;  %v3569_v25 = vmul.f32 %v3439_v22, %v900_v47  ;;  %v804_v35 = vld [vmem:[#allocation2 + $0x91] sm:$0xff] }
 0x118   : > { %v1165_v13 = vadd.f32 %v1133_v29, %v1065_v7  ;;  %v1363_v49 = vadd.f32 %v1331_v63, %v1263_v9  ;;  %v1531_v48 = vmul.f32 %v3439_v22, %v899_v34  ;;  %v3572_v46 = vadd.f32 %v937_v58, %v869_v18 }
 0x119   : > { %4558 = vst [vmem:[#allocation9_spill] sm:$0xff] %v3569_v25  ;;  %v3575_v10 = vmul.f32 %v3439_v22, %v901_v26  ;;  %v1364_v54 = vadd.f32 %v3475_v23, %v1264_v5  ;;  %v1562_v12 = vadd.f32 %v1530_v2, %v1462_v55  ;;  %v1066_v57 = vadd.f32 %v3467_v14, %v966_v28  ;;  %v3580_v9 = vpop.f32.mrb[24].mxu0  ;;  %v802_v55 = vld [vmem:[#allocation2 + $0x79] sm:$0xff] }
 0x11a   : > { %v1265_v41 = vadd.f32 %v1233_v1, %v1165_v13  ;;  %v1463_v11 = vadd.f32 %v1431_v24, %v1363_v49  ;;  %v740_v47 = vmul.f32 %v3375_v61, %v704_v60  ;;  %4560 = vst [vmem:[#allocation11_spill] sm:$0xff] %v3580_v9  ;;  %v3582_v34 = vadd.f32 %v1035_v3, %v967_v40  ;;  %v3589_v18 = vpop.f32.mrb[25].mxu0  ;;  %v705_v40 = vld [vmem:[#allocation2 + $0x98] sm:$0xff] }
 0x11b   : > { %4559 = vst [vmem:[#allocation10_spill] sm:$0xff] %v3575_v10  ;;  %v1600_v58 = vadd.f32 %v3502_v30, %v1562_v12  ;;  %v840_v26 = vmul.f32 %v3377_v62, %v804_v35  ;;  %v3587_v23 = vmul.f32 %v3397_v36, %v704_v60  ;;  %4561 = vst [vmem:[#allocation12_spill] sm:$0xff] %v3589_v18  ;;  %v3597_v3 = vpop.f32.mrb[26].mxu0  ;;  %v805_v12 = vld [vmem:[#allocation2 + $0x99] sm:$0xff] }
 0x11c   : > { %v1365_v14 = vadd.f32 %v1333_v19, %v1265_v41  ;;  %v3592_v49 = vadd.f32 %v3479_v32, %v1364_v54  ;;  %v1563_v4 = vadd.f32 %v1531_v48, %v1463_v11  ;;  %v3595_v29 = vmul.f32 %v3399_v37, %v804_v35  ;;  %4563 = vst [vmem:[#allocation14_spill] sm:$0xff] %v3597_v3  ;;  %v3602_v63 = vpop.f32.mrb[27].mxu0  ;;  %v904_v41 = vld [vmem:[#allocation2 + $0x92] sm:$0xff] }
 0x11d   : > { %v1632_v38 = vmax.f32 %v1600_v58, 0.0  ;;  %v738_v1 = vmul.f32 %v3375_v61, %v702_v45  ;;  %v838_v28 = vmul.f32 %v3377_v62, %v802_v55  ;;  %v1036_v7 = vmul.f32 %v3397_v36, %v702_v45  ;;  %4564 = vst [vmem:[#allocation15_spill] sm:$0xff] %v3602_v63 }
 0x11e   : > { %4562 = vst [vmem:[#allocation13_spill] sm:$0xff] %v3592_v49  ;;  %v1601_v19 = vadd.f32 %v3502_v30, %v1563_v4  ;;  %v1136_v32 = vmul.f32 %v3399_v37, %v802_v55  ;;  %v1166_v48 = vadd.f32 %v3470_v56, %v1066_v57  ;;  %v1334_v24 = vmul.f32 %v3401_v42, %v702_v45 }
 0x11f   : > { %1664 = vst.msk [vmem:[#allocation3 + $0x10] sm:$0xff] %vm585_vm1, %v1632_v38  ;;  %v872_v5 = vadd.f32 %v840_v26, %v740_v47  ;;  %v1068_v2 = vadd.f32 %v1036_v7, %v968_v20  ;;  %v1434_v13 = vmul.f32 %v3403_v43, %v802_v55  ;;  %v741_v54 = vmul.f32 %v3375_v61, %v705_v40  ;;  %v905_v26 = vld [vmem:[#allocation2 + $0x9a] sm:$0xff] }
 0x120   : > { %v1633_v11 = vmax.f32 %v1601_v19, 0.0  ;;  %v1266_v58 = vadd.f32 %v3540_v0, %v1166_v48  ;;  %v841_v4 = vmul.f32 %v3377_v62, %v805_v12  ;;  %v940_v56 = vmul.f32 %v3386_v15, %v904_v41  ;;  %v703_v19 = vld [vmem:[#allocation2 + $0x80] sm:$0xff] }
 0x121   : > { %v3614_v57 = vadd.f32 %v1433_v8, %v1365_v14  ;;  %v1336_v45 = vmul.f32 %v3401_v42, %v704_v60  ;;  %v1436_v47 = vmul.f32 %v3403_v43, %v804_v35  ;;  %v870_v20 = vadd.f32 %v838_v28, %v738_v1  ;;  %v3621_v48 = vpop.f32.mrb[28].mxu0  ;;  %v803_v14 = vld [vmem:[#allocation2 + $0x81] sm:$0xff] }
 0x122   : > { %1665 = vst.msk [vmem:[#allocation3 + $0x18] sm:$0xff] %vm585_vm1, %v1633_v11  ;;  %v1168_v55 = vadd.f32 %v1136_v32, %v1068_v2  ;;  %v1366_v38 = vadd.f32 %v1334_v24, %v1266_v58  ;;  %v941_v7 = vmul.f32 %v3386_v15, %v905_v26  ;;  %v1039_v0 = vmul.f32 %v3397_v36, %v705_v40  ;;  %v902_v1 = vld [vmem:[#allocation2 + $0x7a] sm:$0xff]  ;;  %v903_v28 = vld [vmem:[#allocation2 + $0x82] sm:$0xff]  ;;  %v3631_v32 = vpop.f32.mrb[29].mxu0 }
 0x123   : > { %4565 = vst [vmem:[#allocation16_spill] sm:$0xff] %v3614_v57  ;;  %4566 = vst [vmem:[#allocation17_spill] sm:$0xff] %v3621_v48  ;;  %v873_v63 = vadd.f32 %v841_v4, %v741_v54  ;;  %v3623_v8 = vadd.f32 %v940_v56, %v872_v5  ;;  %v3626_v60 = vmul.f32 %v3399_v37, %v805_v12  ;;  %v3638_v54 = vpop.f32.mrb[30].mxu0 }
 0x124   : > { %v3629_v35 = vmul.f32 %v3405_v44, %v904_v41  ;;  %4567 = vst [vmem:[#allocation18_spill] sm:$0xff] %v3631_v32  ;;  %v1466_v24 = vadd.f32 %v1434_v13, %v1366_v38  ;;  %v3634_v2 = vmul.f32 %v3405_v44, %v905_v26  ;;  %v1337_v11 = vmul.f32 %v3401_v42, %v705_v40  ;;  %v3644_v3 = vpop.f32.mrb[31].mxu0 }
 0x125   : > { %v739_v5 = vmul.f32 %v3375_v61, %v703_v19  ;;  %4568 = vst [vmem:[#allocation19_spill] sm:$0xff] %v3638_v54  ;;  %v839_v58 = vmul.f32 %v3377_v62, %v803_v14  ;;  %v938_v4 = vmul.f32 %v3386_v15, %v902_v1  ;;  %v939_v56 = vmul.f32 %v3386_v15, %v903_v28 }
 0x126   : > { %v1037_v48 = vmul.f32 %v3397_v36, %v703_v19  ;;  %4569 = vst [vmem:[#allocation20_spill] sm:$0xff] %v3644_v3  ;;  %v1137_v13 = vmul.f32 %v3399_v37, %v803_v14  ;;  %v1167_v38 = vadd.f32 %v3537_v6, %v3582_v34  ;;  %v1236_v40 = vmul.f32 %v3405_v44, %v902_v1 }
 0x127   : > { %v1237_v32 = vmul.f32 %v3405_v44, %v903_v28  ;;  %v871_v54 = vadd.f32 %v839_v58, %v739_v5  ;;  %v970_v18 = vadd.f32 %v938_v4, %v870_v20  ;;  %v1335_v17 = vmul.f32 %v3401_v42, %v703_v19  ;;  %v808_v19 = vld [vmem:[#allocation2 + $0xc1] sm:$0xff] }
 0x128   : > { %v1069_v9 = vadd.f32 %v1037_v48, %v3572_v46  ;;  %v1267_v33 = vadd.f32 %v3543_v27, %v1167_v38  ;;  %v1268_v16 = vadd.f32 %v1236_v40, %v1168_v55  ;;  %v1435_v3 = vmul.f32 %v3403_v43, %v803_v14  ;;  %v708_v48 = vld [vmem:[#allocation2 + $0xc0] sm:$0xff]  ;;  %v709_v4 = vld [vmem:[#allocation2 + $0xc8] sm:$0xff] }
 0x129   : > { %v1534_v10 = vmul.f32 %v3439_v22, %v902_v1  ;;  %v1437_v57 = vmul.f32 %v3403_v43, %v805_v12  ;;  %v971_v6 = vadd.f32 %v939_v56, %v871_v54  ;;  %v1535_v25 = vmul.f32 %v3439_v22, %v903_v28 }
 0x12a   : > { %v1169_v34 = vadd.f32 %v1137_v13, %v1069_v9  ;;  %v1367_v49 = vadd.f32 %v1335_v17, %v1267_v33  ;;  %v1368_v5 = vadd.f32 %v1336_v45, %v1268_v16  ;;  %v1631_v46 = vmax.f32 %v3527_v21, 0.0  ;;  %v706_v16 = vld [vmem:[#allocation2 + $0xa8] sm:$0xff] }
 0x12b   : > { %v1566_v20 = vadd.f32 %v1534_v10, %v1466_v24  ;;  %v1536_v27 = vmul.f32 %v3439_v22, %v904_v41  ;;  %v744_v14 = vmul.f32 %v3375_v61, %v708_v48  ;;  %v844_v1 = vmul.f32 %v3377_v62, %v808_v19 }
 0x12c   : > { %v1269_v55 = vadd.f32 %v1237_v32, %v1169_v34  ;;  %v1070_v12 = vadd.f32 %v3587_v23, %v970_v18  ;;  %v1467_v54 = vadd.f32 %v1435_v3, %v1367_v49  ;;  %v1468_v9 = vadd.f32 %v1436_v47, %v1368_v5  ;;  %1663 = vst.msk [vmem:[#allocation3 + $0x8] sm:$0xff] %vm585_vm1, %v1631_v46  ;;  %v806_v23 = vld [vmem:[#allocation2 + $0xa9] sm:$0xff] }
 0x12d   : > { %v1604_v28 = vadd.f32 %v3502_v30, %v1566_v20  ;;  %v3665_v33 = vadd.f32 %v941_v7, %v873_v63  ;;  %v1537_v21 = vmul.f32 %v3439_v22, %v905_v26  ;;  %v3668_v17 = vadd.f32 %v1039_v0, %v971_v6  ;;  %v809_v6 = vld [vmem:[#allocation2 + $0xc9] sm:$0xff] }
 0x12e   : > { %v1369_v10 = vadd.f32 %v1337_v11, %v1269_v55  ;;  %v1567_v41 = vadd.f32 %v1535_v25, %v1467_v54  ;;  %v876_v32 = vadd.f32 %v844_v1, %v744_v14  ;;  %v3671_v24 = vmul.f32 %v3397_v36, %v708_v48  ;;  %v908_v34 = vld [vmem:[#allocation2 + $0xc2] sm:$0xff]  ;;  %v1703_v5 = vld [vmem:[#allocation3] sm:$0xff] }
 0x12f   : > { %v1636_v45 = vmax.f32 %v1604_v28, 0.0  ;;  %v1568_v49 = vadd.f32 %v1536_v27, %v1468_v9  ;;  %v3674_v3 = vmul.f32 %v3399_v37, %v808_v19  ;;  %v1040_v63 = vmul.f32 %v3397_v36, %v706_v16  ;;  %v909_v1 = vld [vmem:[#allocation2 + $0xca] sm:$0xff] }
 0x130   : > { %v1469_v18 = vadd.f32 %v1437_v57, %v1369_v10  ;;  %v1605_v47 = vadd.f32 %v3502_v30, %v1567_v41  ;;  %v742_v26 = vmul.f32 %v3375_v61, %v706_v16  ;;  %v842_v25 = vmul.f32 %v3377_v62, %v806_v23  ;;  %v707_v28 = vld [vmem:[#allocation2 + $0xb0] sm:$0xff] }
 0x131   : > { %1668 = vst.msk [vmem:[#allocation3 + $0x30] sm:$0xff] %vm585_vm1, %v1636_v45  ;;  %v1170_v7 = vadd.f32 %v3595_v29, %v1070_v12  ;;  %v1072_v11 = vadd.f32 %v1040_v63, %v3623_v8  ;;  %v1140_v57 = vmul.f32 %v3399_v37, %v806_v23  ;;  %v1338_v58 = vmul.f32 %v3401_v42, %v706_v16  ;;  %v807_v45 = vld [vmem:[#allocation2 + $0xb1] sm:$0xff] }
 0x132   : > { %v1569_v0 = vadd.f32 %v1537_v21, %v1469_v18  ;;  %v1637_v56 = vmax.f32 %v1605_v47, 0.0  ;;  %v1340_v13 = vmul.f32 %v3401_v42, %v708_v48  ;;  %v745_v40 = vmul.f32 %v3375_v61, %v709_v4  ;;  %v907_v18 = vld [vmem:[#allocation2 + $0xb2] sm:$0xff] }
 0x133   : > { %v1270_v38 = vadd.f32 %v3629_v35, %v1170_v7  ;;  %v1704_v20 = vld [vmem:[#allocation3 + $0x8] sm:$0xff]  ;;  %v3689_v29 = vmul.f32 %v3403_v43, %v808_v19  ;;  %v1438_v8 = vmul.f32 %v3403_v43, %v806_v23  ;;  %v845_v46 = vmul.f32 %v3377_v62, %v809_v6  ;;  %v906_v23 = vld [vmem:[#allocation2 + $0xaa] sm:$0xff] }
 0x134   : > { %v944_v27 = vmul.f32 %v3386_v15, %v908_v34  ;;  %v3695_v55 = vadd.f32 %v3502_v30, %v1568_v49  ;;  %1669 = vst.msk [vmem:[#allocation3 + $0x38] sm:$0xff] %vm585_vm1, %v1637_v56  ;;  %v1705_v35 = vpack.c.bf16 %v1704_v20, %v1703_v5  ;;  %v874_v48 = vadd.f32 %v842_v25, %v742_v26 }
 0x135   : > { %v1370_v14 = vadd.f32 %v1338_v58, %v1270_v38  ;;  %v3699_v12 = vadd.f32 %v3502_v30, %v1569_v0  ;;  %v1172_v19 = vadd.f32 %v1140_v57, %v1072_v11  ;;  %v945_v54 = vmul.f32 %v3386_v15, %v909_v1 }
 0x136   : > { %v1043_v9 = vmul.f32 %v3397_v36, %v709_v4  ;;  %2890 = vmatmul.mubr.msk.bf16.vlgmr.msra.gmra.mrb[0].mxu1 %vm585_vm1, %v1705_v35  ;;  %v877_v16 = vadd.f32 %v845_v46, %v745_v40  ;;  %v3704_v21 = vadd.f32 %v944_v27, %v876_v32  ;;  %v3707_v10 = vmul.f32 %v3399_v37, %v809_v6 }
 0x137   : > { %v3710_v41 = vmul.f32 %v3405_v44, %v908_v34  ;;  %2894 = vmatpush3.bf16.msra.mxu1 %v3330_v50  ;;  %v1470_v49 = vadd.f32 %v1438_v8, %v1370_v14  ;;  %v3714_v63 = vmul.f32 %v3405_v44, %v909_v1  ;;  %v1341_v47 = vmul.f32 %v3401_v42, %v709_v4 }
 0x138   : > { %v743_v32 = vmul.f32 %v3375_v61, %v707_v28  ;;  %v4570_v26 = vmov 0.0   ;;  %v843_v25 = vmul.f32 %v3377_v62, %v807_v45  ;;  %v942_v7 = vmul.f32 %v3386_v15, %v906_v23 }
 0x139   : > { %2895 = vmatprep.subr.bf16.mxu1 %v4570_v26  ;;  %v943_v0 = vmul.f32 %v3386_v15, %v907_v18  ;;  %v1041_v11 = vmul.f32 %v3397_v36, %v707_v28  ;;  %v1141_v50 = vmul.f32 %v3399_v37, %v807_v45  ;;  %v1171_v57 = vadd.f32 %v3626_v60, %v3668_v17 }
 0x13a   : > { %v1240_v58 = vmul.f32 %v3405_v44, %v906_v23  ;;  %v1241_v4 = vmul.f32 %v3405_v44, %v907_v18  ;;  %2901 = vmatprep.mubr.msk.bf16.mxu1 %vm3107_vm3, %v4570_v26  ;;  %v875_v56 = vadd.f32 %v843_v25, %v743_v32  ;;  %v974_v38 = vadd.f32 %v942_v7, %v874_v48  ;;  %v1788_v32 = vld [vmem:[#allocation3 + $0x18] sm:$0xff]  ;;  %v812_v25 = vld [vmem:[#allocation2 + $0xf1] sm:$0xff] }
 0x13b   : > { %v1073_v40 = vadd.f32 %v1041_v11, %v3665_v33  ;;  %v1339_v5 = vmul.f32 %v3401_v42, %v707_v28  ;;  %2896 = vmatpush3.bf16.msra.mxu1 %v3339_v51  ;;  %v1271_v20 = vadd.f32 %v3634_v2, %v1171_v57  ;;  %v1439_v60 = vmul.f32 %v3403_v43, %v807_v45  ;;  %v810_v57 = vld [vmem:[#allocation2 + $0xd9] sm:$0xff] }
 0x13c   : > { %v1272_v8 = vadd.f32 %v1240_v58, %v1172_v19  ;;  %v1538_v17 = vmul.f32 %v3439_v22, %v906_v23  ;;  %2897 = vmatprep.subr.bf16.mxu1 %v4570_v26  ;;  %v3737_v46 = vadd.f32 %v945_v54, %v877_v16  ;;  %v1441_v27 = vmul.f32 %v3403_v43, %v809_v6 }
 0x13d   : > { %v975_v35 = vadd.f32 %v943_v0, %v875_v56  ;;  %v1173_v48 = vadd.f32 %v1141_v50, %v1073_v40  ;;  %v1371_v33 = vadd.f32 %v1339_v5, %v1271_v20  ;;  %v1539_v28 = vmul.f32 %v3439_v22, %v907_v18  ;;  %v1787_v18 = vld [vmem:[#allocation3 + $0x10] sm:$0xff] }
 0x13e   : > { %v1372_v14 = vadd.f32 %v1340_v13, %v1272_v8  ;;  %v1570_v51 = vadd.f32 %v1538_v17, %v1470_v49  ;;  %v3742_v2 = vmul.f32 %v3439_v22, %v908_v34  ;;  %v1638_v45 = vmax.f32 %v3695_v55, 0.0  ;;  %v712_v49 = vld [vmem:[#allocation2 + $0xf0] sm:$0xff] }
 0x13f   : > { %v1273_v19 = vadd.f32 %v1241_v4, %v1173_v48  ;;  %v1639_v23 = vmax.f32 %v3699_v12, 0.0  ;;  %v3747_v54 = vmul.f32 %v3439_v22, %v909_v1  ;;  %2898 = vmatpush3.bf16.msra.mxu1 %v3348_v52  ;;  %v1074_v6 = vadd.f32 %v3671_v24, %v974_v38  ;;  %v710_v52 = vld [vmem:[#allocation2 + $0xd8] sm:$0xff] }
 0x140   : > { %v1471_v13 = vadd.f32 %v1439_v60, %v1371_v33  ;;  %v1608_v16 = vadd.f32 %v3502_v30, %v1570_v51  ;;  %v1075_v34 = vadd.f32 %v1043_v9, %v975_v35  ;;  %v3753_v0 = vadd.f32 %v3689_v29, %v1372_v14  ;;  %2899 = vmatprep.subr.bf16.mxu1 %v4570_v26  ;;  %v4571_v35 = vld [vmem:[#allocation13_spill] sm:$0xff]  ;;  %v4573_v14 = vld [vmem:[#allocation16_spill] sm:$0xff] }
 0x141   : > { %v1373_v7 = vadd.f32 %v1341_v47, %v1273_v19  ;;  %v1789_v55 = vpack.c.bf16 %v1788_v32, %v1787_v18  ;;  %1670 = vst.msk [vmem:[#allocation3 + $0x40] sm:$0xff] %vm585_vm1, %v1638_v45  ;;  %1671 = vst.msk [vmem:[#allocation3 + $0x48] sm:$0xff] %vm585_vm1, %v1639_v23  ;;  %v748_v12 = vmul.f32 %v3375_v61, %v712_v49  ;;  %v572_v8 = vmax.f32 %v3533_v31, 0.0  ;;  %v4572_v48 = vld [vmem:[#allocation9_spill] sm:$0xff] }
 0x142   : > { %v1571_v24 = vadd.f32 %v1539_v28, %v1471_v13  ;;  %v1640_v1 = vmax.f32 %v1608_v16, 0.0  ;;  %v848_v11 = vmul.f32 %v3377_v62, %v812_v25  ;;  %v3761_v9 = vmul.f32 %v3397_v36, %v712_v49  ;;  %v4574_v28 = vld [vmem:[#allocation10_spill] sm:$0xff]  ;;  %v4575_v51 = vld [vmem:[#allocation5_spill] sm:$0xff] }
 0x143   : > { %v3764_v29 = vmul.f32 %v3399_v37, %v812_v25  ;;  %v3767_v47 = vmul.f32 %v3401_v42, %v712_v49  ;;  %v3770_v50 = vmul.f32 %v3403_v43, %v812_v25  ;;  %v1473_v58 = vadd.f32 %v1441_v27, %v1373_v7  ;;  %2900 = vmatpush3.bf16.msra.mxu1 %v3357_v53  ;;  %v4576_v13 = vld [vmem:[#allocation6_spill] sm:$0xff] }
 0x144   : > { %v1609_v4 = vadd.f32 %v3502_v30, %v1571_v24  ;;  %1672 = vst.msk [vmem:[#allocation3 + $0x50] sm:$0xff] %vm585_vm1, %v1640_v1  ;;  %v1044_v56 = vmul.f32 %v3397_v36, %v710_v52  ;;  %v1174_v38 = vadd.f32 %v3674_v3, %v1074_v6  ;;  %2905 = vmatprep.subr.bf16.mxu1 %v4570_v26  ;;  %670 = vst.msk [vmem:[#allocation2 + $0xf9] sm:$0xff] %vm585_vm1, %v572_v8  ;;  %v4580_v8 = vld [vmem:[#allocation11_spill] sm:$0xff] }
 0x145   : > { %v746_v40 = vmul.f32 %v3375_v61, %v710_v52  ;;  %v846_v5 = vmul.f32 %v3377_v62, %v810_v57  ;;  %v1342_v20 = vmul.f32 %v3401_v42, %v710_v52  ;;  %v1144_v17 = vmul.f32 %v3399_v37, %v810_v57 }
 0x146   : > { %v1641_v60 = vmax.f32 %v1609_v4, 0.0  ;;  %v1274_v27 = vadd.f32 %v3710_v41, %v1174_v38  ;;  %v494_v53 = vadd.f32 %v3373_v59, %v3515_v39  ;;  %2902 = vmatmul.mubr.msk.bf16.vlgmr.msra.gmra.mrb[4].mxu1 %vm585_vm1, %v1789_v55  ;;  %v1442_v3 = vmul.f32 %v3403_v43, %v810_v57  ;;  %v3799_v39 = vld [vmem:[%s4544_s5] sm:$0xff]   ;;  %v3826_v38 = vld [vmem:[#allocation3 + $0x38] sm:$0xff] }
 0x147   : > { %v1564_v33 = vadd.f32 %v4572_v48, %v4571_v35  ;;  %v1565_v31 = vadd.f32 %v4574_v28, %v4573_v14  ;;  %v515_v32 = vadd.f32 %v4575_v51, %v3373_v59  ;;  %2906 = vmatpush3.bf16.msra.mxu1 %v3799_v39  ;;  %v1076_v45 = vadd.f32 %v1044_v56, %v3704_v21  ;;  %v3820_v4 = vld [vmem:[%s4541_s2] ss:$0 sm:$0xff]  ;;  %v4579_v56 = vld [vmem:[#allocation8_spill] sm:$0xff] }
 0x148   : > { %1673 = vst.msk [vmem:[#allocation3 + $0x58] sm:$0xff] %vm585_vm1, %v1641_v60  ;;  %v1952_v41 = vld [vmem:[#allocation3 + $0x40] sm:$0xff]  ;;  %v1953_v19 = vld [vmem:[#allocation3 + $0x48] sm:$0xff]  ;;  %v570_v23 = vmax.f32 %v494_v53, 0.0  ;;  %v1175_v6 = vadd.f32 %v3707_v10, %v1075_v34  ;;  %2913 = vmatprep.mubr.msk.bf16.mxu1 %vm3107_vm3, %v4570_v26  ;;  %v507_v16 = vadd.f32 %v3373_v59, %v4576_v13  ;;  %2907 = vmatprep.subr.bf16.mxu1 %v4570_v26  ;;  %v4577_v10 = vld [vmem:[#allocation7_spill] sm:$0xff] }
 0x149   : > { %v1954_v18 = vpack.c.bf16 %v1953_v19, %v1952_v41  ;;  %v1374_v49 = vadd.f32 %v1342_v20, %v1274_v27  ;;  %v1602_v25 = vadd.f32 %v3502_v30, %v1564_v33  ;;  %v1603_v7 = vadd.f32 %v3502_v30, %v1565_v31  ;;  %4578 = vst [vmem:[#allocation13_spill] sm:$0xff] %v3820_v4  ;;  %v4582_v33 = vld [vmem:[#allocation14_spill] sm:$0xff] }
 0x14a   : > { %v880_v55 = vadd.f32 %v848_v11, %v748_v12  ;;  %667 = vst.msk [vmem:[#allocation2 + $0xe1] sm:$0xff] %vm585_vm1, %v570_v23  ;;  %v575_v21 = vmax.f32 %v515_v32, 0.0  ;;  %v573_v52 = vmax.f32 %v507_v16, 0.0  ;;  %v518_v34 = vadd.f32 %v4577_v10, %v3373_v59  ;;  %v3824_v11 = vld [vmem:[#allocation3 + $0x30] sm:$0xff]  ;;  %v3831_v59 = vld [vmem:[%s4544_s5 + $0x8] sm:$0xff]   ;;  %v3878_v23 = vld [vmem:[%s4544_s5 + $0x10] sm:$0xff]  }
 0x14b   : > { %2938 = vmatmul.mubr.msk.bf16.vlgmr.msra.gmra.mrb[32].mxu0 %vm585_vm1, %v1954_v18  ;;  %v3815_v24 = vadd.f32 %v846_v5, %v746_v40  ;;  %v1634_v1 = vmax.f32 %v1602_v25, 0.0  ;;  %v1635_v57 = vmax.f32 %v1603_v7, 0.0  ;;  %v510_v12 = vadd.f32 %v3820_v4, %v4579_v56  ;;  %2908 = vmatpush3.bf16.msra.mxu1 %v3831_v59  ;;  %v4583_v32 = vld [vmem:[#allocation15_spill] sm:$0xff]  ;;  %v913_v19 = vld [vmem:[#allocation2 + $0xfa] sm:$0xff] }
 0x14c   : > { %2954 = vmatpush3.bf16.msra.mxu0 %v3799_v39  ;;  %675 = vst.msk [vmem:[#allocation2 + $0x121] sm:$0xff] %vm585_vm1, %v575_v21  ;;  %672 = vst.msk [vmem:[#allocation2 + $0x109] sm:$0xff] %vm585_vm1, %v573_v52  ;;  %v576_v40 = vmax.f32 %v518_v34, 0.0  ;;  %v1572_v5 = vadd.f32 %v3742_v2, %v3753_v0  ;;  %v1573_v20 = vadd.f32 %v3747_v54, %v1473_v58  ;;  %2909 = vmatprep.subr.bf16.mxu1 %v4570_v26  ;;  %v713_v54 = vld [vmem:[#allocation2 + $0xf8] sm:$0xff] }
 0x14d   : > { %v531_v60 = vadd.f32 %v3820_v4, %v4580_v8  ;;  %v3842_v27 = vadd.f32 %v1144_v17, %v1076_v45  ;;  %v3844_v53 = vadd.f32 %v1442_v3, %v1374_v49  ;;  %v3848_v35 = vadd.f32 %v3714_v63, %v1175_v6  ;;  %1666 = vst.msk [vmem:[#allocation3 + $0x20] sm:$0xff] %vm585_vm1, %v1634_v1  ;;  %v813_v0 = vld [vmem:[#allocation2 + $0xf9] sm:$0xff]  ;;  %v4581_v3 = vld [vmem:[#allocation12_spill] sm:$0xff] }
 0x14e   : > { %1667 = vst.msk [vmem:[#allocation3 + $0x28] sm:$0xff] %vm585_vm1, %v1635_v57  ;;  %2955 = vmatprep.subr.bf16.mxu0 %v4570_v26  ;;  %v574_v2 = vmax.f32 %v510_v12, 0.0  ;;  %v912_v58 = vld [vmem:[#allocation2 + $0xf2] sm:$0xff]  ;;  %676 = vst.msk [vmem:[#allocation2 + $0x129] sm:$0xff] %vm585_vm1, %v576_v40  ;;  %2961 = vmatprep.mubr.msk.bf16.mxu0 %vm3107_vm3, %v4570_v26  ;;  %v3860_v48 = vadd.f32 %v3820_v4, %v4581_v3  ;;  %v3864_v14 = vadd.f32 %v3820_v4, %v4582_v33 }
 0x14f   : > { %v579_v63 = vmax.f32 %v531_v60, 0.0  ;;  %v749_v28 = vmul.f32 %v3375_v61, %v713_v54  ;;  %v849_v31 = vmul.f32 %v3377_v62, %v813_v0  ;;  %v948_v51 = vmul.f32 %v3386_v15, %v912_v58  ;;  %2910 = vmatpush3.bf16.msra.mxu1 %v3878_v23  ;;  %v4584_v16 = vld [vmem:[#allocation17_spill] sm:$0xff] }
 0x150   : > { %673 = vst.msk [vmem:[#allocation2 + $0x111] sm:$0xff] %vm585_vm1, %v574_v2  ;;  %v3872_v41 = vadd.f32 %v3820_v4, %v4583_v32  ;;  %v1047_v45 = vmul.f32 %v3397_v36, %v713_v54  ;;  %v3882_v6 = vadd.f32 %v3502_v30, %v1572_v5  ;;  %v3885_v13 = vadd.f32 %v3502_v30, %v1573_v20  ;;  %v3919_v33 = vld [vmem:[%s4544_s5 + $0x18] sm:$0xff]  }
 0x151   : > { %681 = vst.msk [vmem:[#allocation2 + $0x151] sm:$0xff] %vm585_vm1, %v579_v63  ;;  %v3890_v18 = vadd.f32 %v3820_v4, %v4584_v16  ;;  %v949_v49 = vmul.f32 %v3386_v15, %v913_v19  ;;  %v3894_v25 = vmul.f32 %v3399_v37, %v813_v0  ;;  %v3897_v7 = vmul.f32 %v3405_v44, %v912_v58  ;;  %v711_v52 = vld [vmem:[#allocation2 + $0xe0] sm:$0xff] }
 0x152   : > { %v3900_v21 = vmul.f32 %v3405_v44, %v913_v19  ;;  %v811_v10 = vld [vmem:[#allocation2 + $0xe1] sm:$0xff]  ;;  %2911 = vmatprep.subr.bf16.mxu1 %v4570_v26  ;;  %v881_v1 = vadd.f32 %v849_v31, %v749_v28  ;;  %v3903_v57 = vadd.f32 %v948_v51, %v880_v55  ;;  %v747_v56 = vmul.f32 %v3375_v61, %v711_v52 }
 0x153   : > { %4585 = vst [vmem:[#allocation9_spill] sm:$0xff] %v3890_v18  ;;  %v910_v34 = vld [vmem:[#allocation2 + $0xda] sm:$0xff]  ;;  %v847_v12 = vmul.f32 %v3377_v62, %v811_v10  ;;  %v911_v40 = vld [vmem:[#allocation2 + $0xe2] sm:$0xff]  ;;  %2956 = vmatpush3.bf16.msra.mxu0 %v3831_v59  ;;  %v1345_v5 = vmul.f32 %v3401_v42, %v713_v54  ;;  %v1045_v60 = vmul.f32 %v3397_v36, %v711_v52 }
 0x154   : > { %v946_v20 = vmul.f32 %v3386_v15, %v910_v34  ;;  %v947_v8 = vmul.f32 %v3386_v15, %v911_v40  ;;  %2957 = vmatprep.subr.bf16.mxu0 %v4570_v26  ;;  %v1145_v55 = vmul.f32 %v3399_v37, %v811_v10  ;;  %v1244_v63 = vmul.f32 %v3405_v44, %v910_v34  ;;  %v1842_v4 = vld [vmem:[#allocation3 + $0x20] sm:$0xff] }
 0x155   : > { %v879_v2 = vadd.f32 %v847_v12, %v747_v56  ;;  %v1245_v3 = vmul.f32 %v3405_v44, %v911_v40  ;;  %2912 = vmatpush3.bf16.msra.mxu1 %v3919_v33  ;;  %v1843_v54 = vld [vmem:[#allocation3 + $0x28] sm:$0xff]  ;;  %v1077_v31 = vadd.f32 %v1045_v60, %v3737_v46  ;;  %v1343_v51 = vmul.f32 %v3401_v42, %v711_v52 }
 0x156   : > { %v978_v28 = vadd.f32 %v946_v20, %v3815_v24  ;;  %v1443_v32 = vmul.f32 %v3403_v43, %v811_v10  ;;  %2917 = vmatprep.subr.bf16.mxu1 %v4570_v26  ;;  %v1445_v16 = vmul.f32 %v3403_v43, %v813_v0  ;;  %v1276_v12 = vadd.f32 %v1244_v63, %v3842_v27 }
 0x157   : > { %v979_v56 = vadd.f32 %v947_v8, %v879_v2  ;;  %v1542_v17 = vmul.f32 %v3439_v22, %v910_v34  ;;  %2958 = vmatpush3.bf16.msra.mxu0 %v3878_v23  ;;  %v1177_v18 = vadd.f32 %v1145_v55, %v1077_v31  ;;  %v1375_v24 = vadd.f32 %v1343_v51, %v3848_v35  ;;  %v714_v2 = vld [vmem:[#allocation2 + $0x108] sm:$0xff] }
 0x158   : > { %v1543_v46 = vmul.f32 %v3439_v22, %v911_v40  ;;  %v1844_v52 = vpack.c.bf16 %v1843_v54, %v1842_v4  ;;  %2959 = vmatprep.subr.bf16.mxu0 %v4570_v26  ;;  %v3935_v10 = vmul.f32 %v3439_v22, %v912_v58  ;;  %v3938_v0 = vmul.f32 %v3439_v22, %v913_v19  ;;  %v716_v4 = vld [vmem:[#allocation2 + $0x120] sm:$0xff] }
 0x159   : > { %v1376_v27 = vadd.f32 %v3767_v47, %v1276_v12  ;;  %v1574_v34 = vadd.f32 %v1542_v17, %v3844_v53  ;;  %v3942_v20 = vadd.f32 %v949_v49, %v881_v1  ;;  %v1078_v8 = vadd.f32 %v3761_v9, %v978_v28  ;;  %v816_v40 = vld [vmem:[#allocation2 + $0x121] sm:$0xff]  ;;  %v814_v17 = vld [vmem:[#allocation2 + $0x109] sm:$0xff] }
 0x15a   : > { %v1277_v35 = vadd.f32 %v1245_v3, %v1177_v18  ;;  %v1475_v60 = vadd.f32 %v1443_v32, %v1375_v24  ;;  %2914 = vmatmul.mubr.msk.bf16.vlgmr.msra.gmra.mrb[8].mxu1 %vm585_vm1, %v1844_v52  ;;  %v3946_v58 = vadd.f32 %v1047_v45, %v979_v56  ;;  %v752_v47 = vmul.f32 %v3375_v61, %v716_v4  ;;  %v817_v56 = vld [vmem:[#allocation2 + $0x129] sm:$0xff] }
 0x15b   : > { %v1612_v22 = vadd.f32 %v3502_v30, %v1574_v34  ;;  %2918 = vmatpush3.bf16.msra.mxu1 %v3799_v39  ;;  %v852_v53 = vmul.f32 %v3377_v62, %v816_v40  ;;  %v3953_v9 = vadd.f32 %v3770_v50, %v1376_v27  ;;  %v3957_v18 = vmul.f32 %v3397_v36, %v716_v4  ;;  %v916_v52 = vld [vmem:[#allocation2 + $0x122] sm:$0xff] }
 0x15c   : > { %v1575_v19 = vadd.f32 %v1543_v46, %v1475_v60  ;;  %2919 = vmatprep.subr.bf16.mxu1 %v4570_v26  ;;  %v3960_v45 = vmul.f32 %v3399_v37, %v816_v40  ;;  %v1377_v49 = vadd.f32 %v1345_v5, %v1277_v35  ;;  %v750_v55 = vmul.f32 %v3375_v61, %v714_v2 }
 0x15d   : > { %v1644_v1 = vmax.f32 %v1612_v22, 0.0  ;;  %v1048_v63 = vmul.f32 %v3397_v36, %v714_v2  ;;  %2925 = vmatprep.mubr.msk.bf16.mxu1 %vm3107_vm3, %v4570_v26  ;;  %2960 = vmatpush3.bf16.msra.mxu0 %v3919_v33  ;;  %v850_v3 = vmul.f32 %v3377_v62, %v814_v17  ;;  %v1148_v54 = vmul.f32 %v3399_v37, %v814_v17 }
 0x15e   : > { %v1613_v50 = vadd.f32 %v3502_v30, %v1575_v19  ;;  %v1178_v28 = vadd.f32 %v3764_v29, %v1078_v8  ;;  %2977 = vmatprep.subr.bf16.mxu0 %v4570_v26  ;;  %v884_v5 = vadd.f32 %v852_v53, %v752_v47  ;;  %v1346_v51 = vmul.f32 %v3401_v42, %v714_v2  ;;  %v717_v30 = vld [vmem:[#allocation2 + $0x128] sm:$0xff] }
 0x15f   : > { %1676 = vst.msk [vmem:[#allocation3 + $0x70] sm:$0xff] %vm585_vm1, %v1644_v1  ;;  %2920 = vmatpush3.bf16.msra.mxu1 %v3831_v59  ;;  %v1080_v31 = vadd.f32 %v1048_v63, %v3903_v57  ;;  %v1446_v32 = vmul.f32 %v3403_v43, %v814_v17  ;;  %v753_v29 = vmul.f32 %v3375_v61, %v717_v30  ;;  %v917_v8 = vld [vmem:[#allocation2 + $0x12a] sm:$0xff] }
 0x160   : > { %v1645_v12 = vmax.f32 %v1613_v50, 0.0  ;;  %v1278_v24 = vadd.f32 %v3897_v7, %v1178_v28  ;;  %2921 = vmatprep.subr.bf16.mxu1 %v4570_v26  ;;  %v853_v46 = vmul.f32 %v3377_v62, %v817_v56  ;;  %v3981_v27 = vadd.f32 %v1445_v16, %v1377_v49  ;;  %v815_v17 = vld [vmem:[#allocation2 + $0x111] sm:$0xff] }
 0x161   : > { %v1348_v57 = vmul.f32 %v3401_v42, %v716_v4  ;;  %v3985_v34 = vmul.f32 %v3403_v43, %v816_v40  ;;  %v952_v35 = vmul.f32 %v3386_v15, %v916_v52  ;;  %v882_v7 = vadd.f32 %v850_v3, %v750_v55  ;;  %v715_v40 = vld [vmem:[#allocation2 + $0x110] sm:$0xff] }
 0x162   : > { %1677 = vst.msk [vmem:[#allocation3 + $0x78] sm:$0xff] %vm585_vm1, %v1645_v12  ;;  %v1180_v60 = vadd.f32 %v1148_v54, %v1080_v31  ;;  %v1378_v2 = vadd.f32 %v1346_v51, %v1278_v24  ;;  %v953_v22 = vmul.f32 %v3386_v15, %v917_v8  ;;  %v885_v47 = vadd.f32 %v853_v46, %v753_v29  ;;  %v914_v19 = vld [vmem:[#allocation2 + $0x10a] sm:$0xff]  ;;  %v915_v50 = vld [vmem:[#allocation2 + $0x112] sm:$0xff] }
 0x163   : > { %v1051_v53 = vmul.f32 %v3397_v36, %v717_v30  ;;  %v3992_v16 = vmul.f32 %v3399_v37, %v817_v56  ;;  %v3995_v4 = vmul.f32 %v3405_v44, %v916_v52  ;;  %2922 = vmatpush3.bf16.msra.mxu1 %v3878_v23  ;;  %v3998_v1 = vadd.f32 %v952_v35, %v884_v5 }
 0x164   : > { %v1478_v49 = vadd.f32 %v1446_v32, %v1378_v2  ;;  %v4001_v55 = vmul.f32 %v3405_v44, %v917_v8  ;;  %v1349_v63 = vmul.f32 %v3401_v42, %v717_v30  ;;  %2923 = vmatprep.subr.bf16.mxu1 %v4570_v26  ;;  %v751_v3 = vmul.f32 %v3375_v61, %v715_v40 }
 0x165   : > { %4586 = vst [vmem:[#allocation16_spill] sm:$0xff] %v3998_v1  ;;  %v851_v54 = vmul.f32 %v3377_v62, %v815_v17  ;;  %v950_v28 = vmul.f32 %v3386_v15, %v914_v19  ;;  %v951_v31 = vmul.f32 %v3386_v15, %v915_v50  ;;  %v1049_v51 = vmul.f32 %v3397_v36, %v715_v40 }
 0x166   : > { %v1149_v5 = vmul.f32 %v3399_v37, %v815_v17  ;;  %v1179_v32 = vadd.f32 %v3894_v25, %v3946_v58  ;;  %v1248_v30 = vmul.f32 %v3405_v44, %v914_v19  ;;  %v1249_v29 = vmul.f32 %v3405_v44, %v915_v50 }
 0x167   : > { %v883_v12 = vadd.f32 %v851_v54, %v751_v3  ;;  %v982_v24 = vadd.f32 %v950_v28, %v882_v7  ;;  %v1347_v46 = vmul.f32 %v3401_v42, %v715_v40  ;;  %2924 = vmatpush3.bf16.msra.mxu1 %v3919_v33  ;;  %v1081_v35 = vadd.f32 %v1049_v51, %v3942_v20  ;;  %v4025_v7 = vld [vmem:[%s4542_s3 + $0x8] ss:$0 sm:$0xff] }
 0x168   : > { %v1279_v2 = vadd.f32 %v3900_v21, %v1179_v32  ;;  %v1280_v15 = vadd.f32 %v1248_v30, %v1180_v60  ;;  %v1447_v1 = vmul.f32 %v3403_v43, %v815_v17  ;;  %2941 = vmatprep.subr.bf16.mxu1 %v4570_v26  ;;  %v1449_v25 = vmul.f32 %v3403_v43, %v817_v56 }
 0x169   : > { %v983_v58 = vadd.f32 %v951_v31, %v883_v12  ;;  %v1546_v40 = vmul.f32 %v4025_v7, %v914_v19  ;;  %v1547_v3 = vmul.f32 %v4025_v7, %v915_v50  ;;  %v1181_v20 = vadd.f32 %v1149_v5, %v1081_v35 }
 0x16a   : > { %v1379_v54 = vadd.f32 %v1347_v46, %v1279_v2  ;;  %v1380_v21 = vadd.f32 %v1348_v57, %v1280_v15  ;;  %v4587_v60 = vpack.c.bf16 %v3826_v38, %v3824_v11  ;;  %v1642_v56 = vmax.f32 %v3882_v6, 0.0  ;;  %v820_v57 = vld [vmem:[#allocation2 + $0x151] sm:$0xff] }
 0x16b   : > { %v4034_v17 = vadd.f32 %v953_v22, %v885_v47  ;;  %v4037_v28 = vmul.f32 %v4025_v7, %v916_v52  ;;  %v1578_v31 = vadd.f32 %v1546_v40, %v1478_v49  ;;  %v1643_v19 = vmax.f32 %v3885_v13, 0.0  ;;  %v720_v52 = vld [vmem:[#allocation2 + $0x150] sm:$0xff]  ;;  %v4052_v13 = vld [vmem:[%s4543_s4] ss:$0 sm:$0xff] }
 0x16c   : > { %2926 = vmatmul.mubr.msk.bf16.vlgmr.msra.gmra.mrb[12].mxu1 %vm585_vm1, %v4587_v60  ;;  %v4044_v15 = vmul.f32 %v4025_v7, %v917_v8  ;;  %v1082_v11 = vadd.f32 %v3957_v18, %v982_v24  ;;  %v1281_v38 = vadd.f32 %v1249_v29, %v1181_v20  ;;  %v1479_v6 = vadd.f32 %v1447_v1, %v1379_v54  ;;  %v4589_v40 = vld [vmem:[#allocation18_spill] sm:$0xff] }
 0x16d   : > { %2942 = vmatpush3.bf16.msra.mxu1 %v3799_v39  ;;  %2949 = vmatprep.mubr.msk.bf16.mxu1 %vm3107_vm3, %v4570_v26  ;;  %1674 = vst.msk [vmem:[#allocation3 + $0x60] sm:$0xff] %vm585_vm1, %v1642_v56  ;;  %v1083_v22 = vadd.f32 %v1051_v53, %v983_v58  ;;  %v1616_v47 = vadd.f32 %v4052_v13, %v1578_v31  ;;  %1675 = vst.msk [vmem:[#allocation3 + $0x68] sm:$0xff] %vm585_vm1, %v1643_v19  ;;  %v577_v32 = vmax.f32 %v3860_v48, 0.0  ;;  %v4080_v48 = vld [vmem:[#allocation3 + $0x50] sm:$0xff]  ;;  %v1322_v56 = vld [vmem:[#allocation2 + $0x198] sm:$0xff] }
 0x16e   : > { %2943 = vmatprep.subr.bf16.mxu1 %v4570_v26  ;;  %v756_v18 = vmul.f32 %v3375_v61, %v720_v52  ;;  %v856_v8 = vmul.f32 %v3377_v62, %v820_v57  ;;  %v1381_v49 = vadd.f32 %v1349_v63, %v1281_v38  ;;  %v1480_v1 = vadd.f32 %v3985_v34, %v1380_v21 }
 0x16f   : > { %v1579_v50 = vadd.f32 %v1547_v3, %v1479_v6  ;;  %v4060_v51 = vmul.f32 %v3397_v36, %v720_v52  ;;  %v1648_v53 = vmax.f32 %v1616_v47, 0.0  ;;  %v4064_v5 = vmul.f32 %v3399_v37, %v820_v57  ;;  %678 = vst.msk [vmem:[#allocation2 + $0x139] sm:$0xff] %vm585_vm1, %v577_v32  ;;  %v4590_v3 = vld [vmem:[#allocation13_spill] sm:$0xff] }
 0x170   : > { %v580_v30 = vmax.f32 %v3864_v14, 0.0  ;;  %v4070_v63 = vmul.f32 %v3401_v42, %v720_v52  ;;  %v1182_v34 = vadd.f32 %v3960_v45, %v1082_v11  ;;  %v578_v24 = vmax.f32 %v3872_v41, 0.0  ;;  %v4082_v14 = vld [vmem:[#allocation3 + $0x58] sm:$0xff]  ;;  %v4109_v52 = vld [vmem:[#allocation3 + $0x70] sm:$0xff] }
 0x171   : > { %2944 = vmatpush3.bf16.msra.mxu1 %v3831_v59  ;;  %v1617_v12 = vadd.f32 %v4052_v13, %v1579_v50  ;;  %v1481_v29 = vadd.f32 %v1449_v25, %v1381_v49  ;;  %1680 = vst.msk [vmem:[#allocation3 + $0x90] sm:$0xff] %vm585_vm1, %v1648_v53  ;;  %v4076_v46 = vadd.f32 %v856_v8, %v756_v18  ;;  %v4588_v25 = vld [vmem:[#allocation9_spill] sm:$0xff]  ;;  %v1423_v50 = vld [vmem:[#allocation2 + $0x1a1] sm:$0xff] }
 0x172   : > { %2945 = vmatprep.subr.bf16.mxu1 %v4570_v26  ;;  %682 = vst.msk [vmem:[#allocation2 + $0x159] sm:$0xff] %vm585_vm1, %v580_v30  ;;  %v1576_v45 = vadd.f32 %v3935_v10, %v3953_v9  ;;  %v1577_v35 = vadd.f32 %v3938_v0, %v3981_v27  ;;  %679 = vst.msk [vmem:[#allocation2 + $0x141] sm:$0xff] %vm585_vm1, %v578_v24  ;;  %v1183_v2 = vadd.f32 %v3992_v16, %v1083_v22  ;;  %v4591_v9 = vld [vmem:[#allocation19_spill] sm:$0xff]  ;;  %v4592_v27 = vld [vmem:[#allocation20_spill] sm:$0xff] }
 0x173   : > { %v1649_v41 = vmax.f32 %v1617_v12, 0.0  ;;  %v583_v58 = vmax.f32 %v4588_v25, 0.0  ;;  %v539_v20 = vadd.f32 %v4590_v3, %v4589_v40  ;;  %v550_v0 = vadd.f32 %v4590_v3, %v4591_v9  ;;  %v1323_v16 = vld [vmem:[#allocation2 + $0x1a0] sm:$0xff]  ;;  %v4111_v22 = vld [vmem:[#allocation3 + $0x78] sm:$0xff]  ;;  %v4594_v9 = vld [vmem:[#allocation4_spill] sm:$0xff] }
 0x174   : > { %v2062_v54 = vld [vmem:[#allocation3 + $0x60] sm:$0xff]  ;;  %v1614_v21 = vadd.f32 %v4052_v13, %v1576_v45  ;;  %v1615_v10 = vadd.f32 %v4052_v13, %v1577_v35  ;;  %v542_v60 = vadd.f32 %v4590_v3, %v4592_v27  ;;  %v2063_v31 = vld [vmem:[#allocation3 + $0x68] sm:$0xff]  ;;  %v4102_v19 = vmul.f32 %v3403_v43, %v820_v57 }
 0x175   : > { %2946 = vmatpush3.bf16.msra.mxu1 %v3878_v23  ;;  %1681 = vst.msk [vmem:[#allocation3 + $0x98] sm:$0xff] %vm585_vm1, %v1649_v41  ;;  %v1282_v11 = vadd.f32 %v3995_v4, %v1182_v34  ;;  %v2009_v38 = vpack.c.bf16 %v4082_v14, %v4080_v48  ;;  %687 = vst.msk [vmem:[#allocation2 + $0x181] sm:$0xff] %vm585_vm1, %v583_v58  ;;  %v581_v6 = vmax.f32 %v539_v20, 0.0  ;;  %v584_v49 = vmax.f32 %v550_v0, 0.0  ;;  %v1422_v57 = vld [vmem:[#allocation2 + $0x199] sm:$0xff] }
 0x176   : > { %2947 = vmatprep.subr.bf16.mxu1 %v4570_v26  ;;  %v2064_v47 = vpack.c.bf16 %v2063_v31, %v2062_v54  ;;  %v1646_v18 = vmax.f32 %v1614_v21, 0.0  ;;  %v1647_v8 = vmax.f32 %v1615_v10, 0.0  ;;  %v4114_v4 = vadd.f32 %v4001_v55, %v1183_v2  ;;  %v4593_v21 = vld [vmem:[#allocation16_spill] sm:$0xff] }
 0x177   : > { %684 = vst.msk [vmem:[#allocation2 + $0x169] sm:$0xff] %vm585_vm1, %v581_v6  ;;  %v582_v53 = vmax.f32 %v542_v60, 0.0  ;;  %v4118_v32 = vmul.f32 %v3401_v42, %v1322_v56  ;;  %v1580_v30 = vadd.f32 %v4037_v28, %v1480_v1  ;;  %688 = vst.msk [vmem:[#allocation2 + $0x189] sm:$0xff] %vm585_vm1, %v584_v49  ;;  %v4127_v55 = vmul.f32 %v3401_v42, %v1323_v16  ;;  %v718_v28 = vld [vmem:[#allocation2 + $0x138] sm:$0xff] }
 0x178   : > { %2962 = vmatmul.mubr.msk.bf16.vlgmr.msra.gmra.mrb[36].mxu0 %vm585_vm1, %v2064_v47  ;;  %1678 = vst.msk [vmem:[#allocation3 + $0x80] sm:$0xff] %vm585_vm1, %v1646_v18  ;;  %1679 = vst.msk [vmem:[#allocation3 + $0x88] sm:$0xff] %vm585_vm1, %v1647_v8  ;;  %v1581_v34 = vadd.f32 %v4044_v15, %v1481_v29  ;;  %v818_v1 = vld [vmem:[#allocation2 + $0x139] sm:$0xff]  ;;  %v4139_v48 = vmul.f32 %v3403_v43, %v1422_v57  ;;  %v4142_v14 = vmul.f32 %v3403_v43, %v1423_v50 }
 0x179   : > { %2948 = vmatpush3.bf16.msra.mxu1 %v3919_v33  ;;  %2978 = vmatpush3.bf16.msra.mxu0 %v3799_v39  ;;  %685 = vst.msk [vmem:[#allocation2 + $0x171] sm:$0xff] %vm585_vm1, %v582_v53  ;;  %v4136_v24 = vadd.f32 %v4052_v13, %v1580_v30  ;;  %v754_v15 = vmul.f32 %v3375_v61, %v718_v28  ;;  %v721_v41 = vld [vmem:[#allocation2 + $0x158] sm:$0xff]  ;;  %v719_v49 = vld [vmem:[#allocation2 + $0x140] sm:$0xff] }
 0x17a   : > { %2965 = vmatprep.subr.bf16.mxu1 %v4570_v26  ;;  %2979 = vmatprep.subr.bf16.mxu0 %v4570_v26  ;;  %v854_v29 = vmul.f32 %v3377_v62, %v818_v1  ;;  %v1052_v45 = vmul.f32 %v3397_v36, %v718_v28  ;;  %v1152_v35 = vmul.f32 %v3399_v37, %v818_v1  ;;  %v821_v2 = vld [vmem:[#allocation2 + $0x159] sm:$0xff]  ;;  %v819_v57 = vld [vmem:[#allocation2 + $0x141] sm:$0xff] }
 0x17b   : > { %v1350_v25 = vmul.f32 %v3401_v42, %v718_v28  ;;  %v1450_v58 = vmul.f32 %v3403_v43, %v818_v1  ;;  %v757_v40 = vmul.f32 %v3375_v61, %v721_v41  ;;  %v857_v3 = vmul.f32 %v3377_v62, %v821_v2  ;;  %v920_v20 = vld [vmem:[#allocation2 + $0x152] sm:$0xff]  ;;  %v921_v54 = vld [vmem:[#allocation2 + $0x15a] sm:$0xff]  ;;  %2985 = vmatprep.mubr.msk.bf16.mxu0 %vm3107_vm3, %v4570_v26 }
 0x17c   : > { %2950 = vmatmul.mubr.msk.bf16.vlgmr.msra.gmra.mrb[16].mxu1 %vm585_vm1, %v2009_v38  ;;  %v1084_v10 = vadd.f32 %v1052_v45, %v4593_v21  ;;  %v956_v0 = vmul.f32 %v4594_v9, %v920_v20  ;;  %v957_v27 = vmul.f32 %v4594_v9, %v921_v54  ;;  %v4159_v60 = vadd.f32 %v4052_v13, %v1581_v34  ;;  %v919_v34 = vld [vmem:[#allocation2 + $0x142] sm:$0xff] }
 0x17d   : > { %2966 = vmatpush3.bf16.msra.mxu1 %v3799_v39  ;;  %v886_v56 = vadd.f32 %v854_v29, %v754_v15  ;;  %v1382_v16 = vadd.f32 %v1350_v25, %v1282_v11  ;;  %2980 = vmatpush3.bf16.msra.mxu0 %v3831_v59  ;;  %v889_v31 = vadd.f32 %v857_v3, %v757_v40 }
 0x17e   : > { %v1055_v6 = vmul.f32 %v3397_v36, %v721_v41  ;;  %v1184_v47 = vadd.f32 %v1152_v35, %v1084_v10  ;;  %v4164_v38 = vadd.f32 %v956_v0, %v4076_v46  ;;  %v4167_v18 = vmul.f32 %v3399_v37, %v821_v2  ;;  %2981 = vmatprep.subr.bf16.mxu0 %v4570_v26  ;;  %v918_v46 = vld [vmem:[#allocation2 + $0x13a] sm:$0xff] }
 0x17f   : > { %v4170_v8 = vmul.f32 %v3405_v44, %v920_v20  ;;  %v1482_v11 = vadd.f32 %v1450_v58, %v1382_v16  ;;  %v4173_v50 = vadd.f32 %v957_v27, %v889_v31  ;;  %v4176_v53 = vmul.f32 %v3405_v44, %v921_v54  ;;  %2967 = vmatprep.subr.bf16.mxu1 %v4570_v26  ;;  %v2173_v21 = vld [vmem:[#allocation3 + $0x88] sm:$0xff] }
 0x180   : > { %v1353_v30 = vmul.f32 %v3401_v42, %v721_v41  ;;  %v1453_v28 = vmul.f32 %v3403_v43, %v821_v2  ;;  %v4183_v1 = vmul.f32 %v4025_v7, %v920_v20  ;;  %v755_v15 = vmul.f32 %v3375_v61, %v719_v49  ;;  %v2172_v20 = vld [vmem:[#allocation3 + $0x80] sm:$0xff]  ;;  %2973 = vmatprep.mubr.msk.bf16.mxu1 %vm3107_vm3, %v4570_v26 }
 0x181   : > { %v855_v29 = vmul.f32 %v3377_v62, %v819_v57  ;;  %v954_v45 = vmul.f32 %v4594_v9, %v918_v46  ;;  %v955_v35 = vmul.f32 %v4594_v9, %v919_v34  ;;  %v1053_v41 = vmul.f32 %v3397_v36, %v719_v49  ;;  %2982 = vmatpush3.bf16.msra.mxu0 %v3878_v23 }
 0x182   : > { %v1153_v25 = vmul.f32 %v3399_v37, %v819_v57  ;;  %v1252_v58 = vmul.f32 %v3405_v44, %v918_v46  ;;  %v1253_v40 = vmul.f32 %v3405_v44, %v919_v34  ;;  %v1351_v3 = vmul.f32 %v3401_v42, %v719_v49  ;;  %2983 = vmatprep.subr.bf16.mxu0 %v4570_v26 }
 0x183   : > { %v887_v2 = vadd.f32 %v855_v29, %v755_v15  ;;  %v986_v10 = vadd.f32 %v954_v45, %v886_v56  ;;  %v1085_v0 = vadd.f32 %v1053_v41, %v4034_v17  ;;  %v1451_v27 = vmul.f32 %v3403_v43, %v819_v57  ;;  %2968 = vmatpush3.bf16.msra.mxu1 %v3831_v59  ;;  %v1022_v57 = vld [vmem:[#allocation2 + $0x180] sm:$0xff] }
 0x184   : > { %v1550_v16 = vmul.f32 %v4025_v7, %v918_v46  ;;  %v1284_v15 = vadd.f32 %v1252_v58, %v1184_v47  ;;  %v1383_v29 = vadd.f32 %v1351_v3, %v4114_v4  ;;  %v1551_v12 = vmul.f32 %v4025_v7, %v919_v34  ;;  %2969 = vmatprep.subr.bf16.mxu1 %v4570_v26  ;;  %v1122_v34 = vld [vmem:[#allocation2 + $0x181] sm:$0xff]  ;;  %v822_v58 = vld [vmem:[#allocation2 + $0x169] sm:$0xff] }
 0x185   : > { %v987_v31 = vadd.f32 %v955_v35, %v887_v2  ;;  %v4205_v49 = vmul.f32 %v4025_v7, %v921_v54  ;;  %v1185_v56 = vadd.f32 %v1153_v25, %v1085_v0  ;;  %2984 = vmatpush3.bf16.msra.mxu0 %v3919_v33  ;;  %v2174_v17 = vpack.c.bf16 %v2173_v21, %v2172_v20  ;;  %v722_v35 = vld [vmem:[#allocation2 + $0x168] sm:$0xff] }
 0x186   : > { %v1582_v45 = vadd.f32 %v1550_v16, %v1482_v11  ;;  %v1086_v46 = vadd.f32 %v4060_v51, %v986_v10  ;;  %v1384_v47 = vadd.f32 %v4070_v63, %v1284_v15  ;;  %v1483_v4 = vadd.f32 %v1451_v27, %v1383_v29  ;;  %3001 = vmatprep.subr.bf16.mxu0 %v4570_v26  ;;  %v1023_v29 = vld [vmem:[#allocation2 + $0x188] sm:$0xff] }
 0x187   : > { %v4209_v41 = vadd.f32 %v1055_v6, %v987_v31  ;;  %v1285_v2 = vadd.f32 %v1253_v40, %v1185_v56  ;;  %v4215_v11 = vmul.f32 %v3397_v36, %v1022_v57  ;;  %v4218_v25 = vmul.f32 %v3399_v37, %v1122_v34  ;;  %2970 = vmatpush3.bf16.msra.mxu1 %v3878_v23  ;;  %v1123_v56 = vld [vmem:[#allocation2 + $0x189] sm:$0xff] }
 0x188   : > { %v1620_v54 = vadd.f32 %v4052_v13, %v1582_v45  ;;  %v4222_v51 = vadd.f32 %v4102_v19, %v1384_v47  ;;  %v1583_v63 = vadd.f32 %v1551_v12, %v1483_v4  ;;  %2986 = vmatmul.mubr.msk.bf16.vlgmr.msra.gmra.mrb[40].mxu0 %vm585_vm1, %v2174_v17  ;;  %v4226_v6 = vmul.f32 %v3401_v42, %v1022_v57  ;;  %v1222_v45 = vld [vmem:[#allocation2 + $0x182] sm:$0xff] }
 0x189   : > { %v758_v40 = vmul.f32 %v3375_v61, %v722_v35  ;;  %v1385_v3 = vadd.f32 %v1353_v30, %v1285_v2  ;;  %3002 = vmatpush3.bf16.msra.mxu0 %v3799_v39  ;;  %v858_v21 = vmul.f32 %v3377_v62, %v822_v58  ;;  %v1056_v10 = vmul.f32 %v3397_v36, %v722_v35 }
 0x18a   : > { %v1652_v20 = vmax.f32 %v1620_v54, 0.0  ;;  %2971 = vmatprep.subr.bf16.mxu1 %v4570_v26  ;;  %v1621_v19 = vadd.f32 %v4052_v13, %v1583_v63  ;;  %3003 = vmatprep.subr.bf16.mxu0 %v4570_v26  ;;  %v1156_v12 = vmul.f32 %v3399_v37, %v822_v58  ;;  %v1186_v0 = vadd.f32 %v4064_v5, %v1086_v46  ;;  %v1223_v46 = vld [vmem:[#allocation2 + $0x18a] sm:$0xff] }
 0x18b   : > { %v1354_v27 = vmul.f32 %v3401_v42, %v722_v35  ;;  %v4238_v30 = vadd.f32 %v1453_v28, %v1385_v3  ;;  %v4242_v16 = vmul.f32 %v3403_v43, %v1122_v34  ;;  %v890_v31 = vadd.f32 %v858_v21, %v758_v40  ;;  %2972 = vmatpush3.bf16.msra.mxu1 %v3919_v33  ;;  %v823_v35 = vld [vmem:[#allocation2 + $0x171] sm:$0xff] }
 0x18c   : > { %1684 = vst.msk [vmem:[#allocation3 + $0xb0] sm:$0xff] %vm585_vm1, %v1652_v20  ;;  %v1088_v15 = vadd.f32 %v1056_v10, %v4164_v38  ;;  %v1653_v17 = vmax.f32 %v1621_v19, 0.0  ;;  %v1286_v5 = vadd.f32 %v4170_v8, %v1186_v0  ;;  %v1454_v57 = vmul.f32 %v3403_v43, %v822_v58  ;;  %2989 = vmatprep.subr.bf16.mxu1 %v4570_v26  ;;  %v723_v8 = vld [vmem:[#allocation2 + $0x170] sm:$0xff] }
 0x18d   : > { %v1059_v28 = vmul.f32 %v3397_v36, %v1023_v29  ;;  %3004 = vmatpush3.bf16.msra.mxu0 %v3831_v59  ;;  %v1159_v38 = vmul.f32 %v3399_v37, %v1123_v56  ;;  %v1258_v4 = vmul.f32 %v3405_v44, %v1222_v45  ;;  %v4256_v34 = vmul.f32 %v3405_v44, %v1223_v46  ;;  %v922_v40 = vld [vmem:[#allocation2 + $0x16a] sm:$0xff]  ;;  %v923_v3 = vld [vmem:[#allocation2 + $0x172] sm:$0xff] }
 0x18e   : > { %v1188_v47 = vadd.f32 %v1156_v12, %v1088_v15  ;;  %1685 = vst.msk [vmem:[#allocation3 + $0xb8] sm:$0xff] %vm585_vm1, %v1653_v17  ;;  %v1386_v2 = vadd.f32 %v1354_v27, %v1286_v5  ;;  %v1357_v54 = vmul.f32 %v3401_v42, %v1023_v29  ;;  %v4261_v58 = vmul.f32 %v3403_v43, %v1123_v56 }
 0x18f   : > { %v4264_v63 = vmul.f32 %v4025_v7, %v1222_v45  ;;  %3005 = vmatprep.subr.bf16.mxu0 %v4570_v26  ;;  %v759_v20 = vmul.f32 %v3375_v61, %v723_v8  ;;  %v859_v21 = vmul.f32 %v3377_v62, %v823_v35  ;;  %v958_v10 = vmul.f32 %v4594_v9, %v922_v40 }
 0x190   : > { %v959_v19 = vmul.f32 %v4594_v9, %v923_v3  ;;  %v4595_v12 = vpack.c.bf16 %v4111_v22, %v4109_v52  ;;  %v1486_v0 = vadd.f32 %v1454_v57, %v1386_v2  ;;  %v1057_v27 = vmul.f32 %v3397_v36, %v723_v8  ;;  %3009 = vmatprep.mubr.msk.bf16.mxu0 %vm3107_vm3, %v4570_v26 }
 0x191   : > { %v1157_v15 = vmul.f32 %v3399_v37, %v823_v35  ;;  %v1187_v29 = vadd.f32 %v4167_v18, %v4209_v41  ;;  %v891_v61 = vadd.f32 %v859_v21, %v759_v20  ;;  %v990_v62 = vadd.f32 %v958_v10, %v890_v31  ;;  %3006 = vmatpush3.bf16.msra.mxu0 %v3878_v23 }
 0x192   : > { %2974 = vmatmul.mubr.msk.bf16.vlgmr.msra.gmra.mrb[20].mxu1 %vm585_vm1, %v4595_v12  ;;  %v1256_v56 = vmul.f32 %v3405_v44, %v922_v40  ;;  %v1257_v9 = vmul.f32 %v3405_v44, %v923_v3  ;;  %v1089_v52 = vadd.f32 %v1057_v27, %v4173_v50  ;;  %v1355_v36 = vmul.f32 %v3401_v42, %v723_v8 }
 0x193   : > { %2990 = vmatpush3.bf16.msra.mxu1 %v3799_v39  ;;  %v1287_v22 = vadd.f32 %v4176_v53, %v1187_v29  ;;  %v1455_v37 = vmul.f32 %v3403_v43, %v823_v35  ;;  %3007 = vmatprep.subr.bf16.mxu0 %v4570_v26  ;;  %v991_v18 = vadd.f32 %v959_v19, %v891_v61  ;;  %v1650_v53 = vmax.f32 %v4136_v24, 0.0  ;;  %v1522_v24 = vld [vmem:[#allocation2 + $0x19a] sm:$0xff]  ;;  %v2228_v19 = vld [vmem:[#allocation3 + $0x98] sm:$0xff] }
 0x194   : > { %v1090_v39 = vadd.f32 %v4215_v11, %v990_v62  ;;  %v1288_v41 = vadd.f32 %v1256_v56, %v1188_v47  ;;  %v1554_v31 = vmul.f32 %v4025_v7, %v922_v40  ;;  %v1189_v44 = vadd.f32 %v1157_v15, %v1089_v52  ;;  %2991 = vmatprep.subr.bf16.mxu1 %v4570_v26 }
 0x195   : > { %v1387_v45 = vadd.f32 %v1355_v36, %v1287_v22  ;;  %v1555_v50 = vmul.f32 %v4025_v7, %v923_v3  ;;  %2997 = vmatprep.mubr.msk.bf16.mxu1 %vm3107_vm3, %v4570_v26  ;;  %v1091_v42 = vadd.f32 %v1059_v28, %v991_v18  ;;  %3008 = vmatpush3.bf16.msra.mxu0 %v3919_v33  ;;  %v1651_v8 = vmax.f32 %v4159_v60, 0.0  ;;  %v1523_v3 = vld [vmem:[#allocation2 + $0x1a2] sm:$0xff] }
 0x196   : > { %v1190_v43 = vadd.f32 %v4218_v25, %v1090_v39  ;;  %v1388_v11 = vadd.f32 %v4226_v6, %v1288_v41  ;;  %v1586_v17 = vadd.f32 %v1554_v31, %v1486_v0  ;;  %v1557_v5 = vmul.f32 %v4025_v7, %v1223_v46  ;;  %1682 = vst.msk [vmem:[#allocation3 + $0xa0] sm:$0xff] %vm585_vm1, %v1650_v53  ;;  %v2337_v41 = vld [vmem:[#allocation3 + $0xb0] sm:$0xff]  ;;  %v2338_v31 = vld [vmem:[#allocation3 + $0xb8] sm:$0xff] }
 0x197   : > { %v1289_v57 = vadd.f32 %v1257_v9, %v1189_v44  ;;  %v1487_v47 = vadd.f32 %v1455_v37, %v1387_v45  ;;  %3025 = vmatprep.subr.bf16.mxu0 %v4570_v26  ;;  %2992 = vmatpush3.bf16.msra.mxu1 %v3831_v59  ;;  %v1191_v28 = vadd.f32 %v1159_v38, %v1091_v42  ;;  %v3095_v37 = vld [vmem:[%s4544_s5] sm:$0xff]   ;;  %v3096_v45 = vld [vmem:[%s4544_s5 + $0x8] sm:$0xff]  }
 0x198   : > { %v1290_v25 = vadd.f32 %v1258_v4, %v1190_v43  ;;  %v1488_v6 = vadd.f32 %v4242_v16, %v1388_v11  ;;  %v1624_v35 = vadd.f32 %v4052_v13, %v1586_v17  ;;  %2993 = vmatprep.subr.bf16.mxu1 %v4570_v26  ;;  %1683 = vst.msk [vmem:[#allocation3 + $0xa8] sm:$0xff] %vm585_vm1, %v1651_v8  ;;  %v4399_v8 = vld [vmem:[%s4545_s6] ss:$0 sm:$0xff] }
 0x199   : > { %v1389_v46 = vadd.f32 %v1357_v54, %v1289_v57  ;;  %v1587_v2 = vadd.f32 %v1555_v50, %v1487_v47  ;;  %v1584_v60 = vadd.f32 %v4183_v1, %v4222_v51  ;;  %v1585_v40 = vadd.f32 %v4205_v49, %v4238_v30 }
 0x19a   : > { %v1291_v38 = vadd.f32 %v4256_v34, %v1191_v28  ;;  %v1390_v4 = vadd.f32 %v4118_v32, %v1290_v25  ;;  %v1656_v16 = vmax.f32 %v1624_v35, 0.0  ;;  %v1558_v20 = vmul.f32 %v4025_v7, %v1522_v24  ;;  %v1780_v28 = vld [vmem:[%s3167_s8] sm:$0xff] }
 0x19b   : > { %v1489_v21 = vadd.f32 %v4261_v58, %v1389_v46  ;;  %v1625_v54 = vadd.f32 %v4052_v13, %v1587_v2  ;;  %2994 = vmatpush3.bf16.msra.mxu1 %v3878_v23  ;;  %v1622_v10 = vadd.f32 %v4052_v13, %v1584_v60  ;;  %v1623_v1 = vadd.f32 %v4052_v13, %v1585_v40  ;;  %v2227_v58 = vld [vmem:[#allocation3 + $0x90] sm:$0xff] }
 0x19c   : > { %v1391_v49 = vadd.f32 %v4127_v55, %v1291_v38  ;;  %1688 = vst.msk [vmem:[#allocation3 + $0xd0] sm:$0xff] %vm585_vm1, %v1656_v16  ;;  %2995 = vmatprep.subr.bf16.mxu1 %v4570_v26  ;;  %v1588_v32 = vadd.f32 %v4264_v63, %v1488_v6  ;;  %v1490_v51 = vadd.f32 %v4139_v48, %v1390_v4 }
 0x19d   : > { %v1559_v30 = vmul.f32 %v4025_v7, %v1523_v3  ;;  %v1657_v34 = vmax.f32 %v1625_v54, 0.0  ;;  %v1654_v12 = vmax.f32 %v1622_v10, 0.0  ;;  %v1655_v0 = vmax.f32 %v1623_v1, 0.0  ;;  %v2282_v15 = vld [vmem:[#allocation3 + $0xa0] sm:$0xff] }
 0x19e   : > { %v1589_v27 = vadd.f32 %v1557_v5, %v1489_v21  ;;  %v1626_v29 = vadd.f32 %v4052_v13, %v1588_v32  ;;  %v1491_v55 = vadd.f32 %v4142_v14, %v1391_v49  ;;  %v1590_v61 = vadd.f32 %v1558_v20, %v1490_v51  ;;  %v1834_v3 = vld [vmem:[%s3167_s8 + $0x10] sm:$0xff]  ;;  %v1835_v20 = vld [vmem:[%s3167_s8 + $0x18] sm:$0xff]  ;;  %v1999_v49 = vld [vmem:[%s3167_s8 + $0x40] sm:$0xff] }
 0x19f   : > { %1689 = vst.msk [vmem:[#allocation3 + $0xd8] sm:$0xff] %vm585_vm1, %v1657_v34  ;;  %2996 = vmatpush3.bf16.msra.mxu1 %v3919_v33  ;;  %1686 = vst.msk [vmem:[#allocation3 + $0xc0] sm:$0xff] %vm585_vm1, %v1654_v12  ;;  %v2283_v48 = vld [vmem:[#allocation3 + $0xa8] sm:$0xff]  ;;  %v2229_v63 = vpack.c.bf16 %v2228_v19, %v2227_v58  ;;  %v2000_v58 = vld [vmem:[%s3167_s8 + $0x48] sm:$0xff] }
 0x1a0   : > { %1687 = vst.msk [vmem:[#allocation3 + $0xc8] sm:$0xff] %vm585_vm1, %v1655_v0  ;;  %v1627_v7 = vadd.f32 %v4052_v13, %v1589_v27  ;;  %3013 = vmatprep.subr.bf16.mxu1 %v4570_v26  ;;  %v1658_v62 = vmax.f32 %v1626_v29, 0.0  ;;  %v1591_v56 = vadd.f32 %v1559_v30, %v1491_v55  ;;  %v1628_v9 = vadd.f32 %v4052_v13, %v1590_v61  ;;  %v1889_v29 = vld [vmem:[%s3167_s8 + $0x20] sm:$0xff] }
 0x1a1   : > { %v2284_v14 = vpack.c.bf16 %v2283_v48, %v2282_v15  ;;  %v1890_v48 = vld [vmem:[%s3167_s8 + $0x28] sm:$0xff] }
 0x1a2   : > { %v1659_v52 = vmax.f32 %v1627_v7, 0.0  ;;  %2998 = vmatmul.mubr.msk.bf16.vlgmr.msra.gmra.mrb[24].mxu1 %vm585_vm1, %v2229_v63  ;;  %1690 = vst.msk [vmem:[#allocation3 + $0xe0] sm:$0xff] %vm585_vm1, %v1658_v62  ;;  %v1629_v22 = vadd.f32 %v4052_v13, %v1591_v56  ;;  %v1660_v36 = vmax.f32 %v1628_v9, 0.0 }
 0x1a3   : > { %3010 = vmatmul.mubr.msk.bf16.vlgmr.msra.gmra.mrb[44].mxu0 %vm585_vm1, %v2284_v14  ;;  %3014 = vmatpush3.bf16.msra.mxu1 %v3095_v37  ;;  %v2447_v42 = vld [vmem:[#allocation3 + $0xd0] sm:$0xff] }
 0x1a4   : > { %1691 = vst.msk [vmem:[#allocation3 + $0xe8] sm:$0xff] %vm585_vm1, %v1659_v52  ;;  %3026 = vmatpush3.bf16.msra.mxu0 %v3095_v37  ;;  %3033 = vmatprep.mubr.msk.bf16.mxu0 %vm3107_vm3, %v4570_v26  ;;  %v1661_v18 = vmax.f32 %v1629_v22, 0.0  ;;  %1692 = vst.msk [vmem:[#allocation3 + $0xf0] sm:$0xff] %vm585_vm1, %v1660_v36  ;;  %v1944_v52 = vld [vmem:[%s3167_s8 + $0x30] sm:$0xff] }
 0x1a5   : > { %3027 = vmatprep.subr.bf16.mxu0 %v4570_v26  ;;  %3015 = vmatprep.subr.bf16.mxu1 %v4570_v26 }
 0x1a6   : > { %3021 = vmatprep.mubr.msk.bf16.mxu1 %vm3107_vm3, %v4570_v26  ;;  %1693 = vst.msk [vmem:[#allocation3 + $0xf8] sm:$0xff] %vm585_vm1, %v1661_v18  ;;  %v2392_v13 = vld [vmem:[#allocation3 + $0xc0] sm:$0xff]  ;;  %v2448_v43 = vld [vmem:[#allocation3 + $0xd8] sm:$0xff]  ;;  %v1945_v18 = vld [vmem:[%s3167_s8 + $0x38] sm:$0xff] }
 0x1a7   : > { %3016 = vmatpush3.bf16.msra.mxu1 %v3831_v59  ;;  %v2393_v39 = vld [vmem:[#allocation3 + $0xc8] sm:$0xff]  ;;  %v2449_v17 = vpack.c.bf16 %v2448_v43, %v2447_v42  ;;  %v2110_v42 = vld [vmem:[%s3167_s8 + $0x68] sm:$0xff] }
 0x1a8   : > { %3028 = vmatpush3.bf16.msra.mxu0 %v3831_v59  ;;  %3017 = vmatprep.subr.bf16.mxu1 %v4570_v26  ;;  %v2394_v44 = vpack.c.bf16 %v2393_v39, %v2392_v13  ;;  %v2339_v59 = vpack.c.bf16 %v2338_v31, %v2337_v41 }
 0x1a9   : > { %3029 = vmatprep.subr.bf16.mxu0 %v4570_v26  ;;  %v2502_v50 = vld [vmem:[#allocation3 + $0xe0] sm:$0xff] }
 0x1ab   : > { %3018 = vmatpush3.bf16.msra.mxu1 %v3878_v23  ;;  %v2503_v53 = vld [vmem:[#allocation3 + $0xe8] sm:$0xff]  ;;  %v2557_v5 = vld [vmem:[#allocation3 + $0xf0] sm:$0xff] }
 0x1ac   : > { %3030 = vmatpush3.bf16.msra.mxu0 %v3878_v23  ;;  %3019 = vmatprep.subr.bf16.mxu1 %v4570_v26  ;;  %v2504_v11 = vpack.c.bf16 %v2503_v53, %v2502_v50 }
 0x1ad   : > { %3031 = vmatprep.subr.bf16.mxu0 %v4570_v26  ;;  %v2558_v57 = vld [vmem:[#allocation3 + $0xf8] sm:$0xff] }
 0x1ae   : > { %v2559_v47 = vpack.c.bf16 %v2558_v57, %v2557_v5  ;;  %v2054_v5 = vld [vmem:[%s3167_s8 + $0x50] sm:$0xff] }
 0x1af   : > { %3020 = vmatpush3.bf16.msra.mxu1 %v3919_v33 }
 0x1b0   : > { %3032 = vmatpush3.bf16.msra.mxu0 %v3919_v33  ;;  %3037 = vmatprep.subr.bf16.mxu1 %v4570_v26 }
 0x1b1   : > { %3049 = vmatprep.subr.bf16.mxu0 %v4570_v26 }
 0x1b2   : > { %3022 = vmatmul.mubr.msk.bf16.vlgmr.msra.gmra.mrb[28].mxu1 %vm585_vm1, %v2339_v59  ;;  %v2109_v59 = vld [vmem:[%s3167_s8 + $0x60] sm:$0xff] }
 0x1b3   : > { %3034 = vmatmul.mubr.msk.bf16.vlgmr.msra.gmra.mrb[48].mxu0 %vm585_vm1, %v2394_v44  ;;  %3038 = vmatpush3.bf16.msra.mxu1 %v3095_v37 }
 0x1b4   : > { %3050 = vmatpush3.bf16.msra.mxu0 %v3095_v37  ;;  %3057 = vmatprep.mubr.msk.bf16.mxu0 %vm3107_vm3, %v4570_v26 }
 0x1b5   : > { %3051 = vmatprep.subr.bf16.mxu0 %v4570_v26  ;;  %3039 = vmatprep.subr.bf16.mxu1 %v4570_v26 }
 0x1b6   : > { %3045 = vmatprep.mubr.msk.bf16.mxu1 %vm3107_vm3, %v4570_v26 }
 0x1b7   : > { %3040 = vmatpush3.bf16.msra.mxu1 %v3096_v45 }
 0x1b8   : > { %3052 = vmatpush3.bf16.msra.mxu0 %v3096_v45  ;;  %3041 = vmatprep.subr.bf16.mxu1 %v4570_v26 }
 0x1b9   : > { %3053 = vmatprep.subr.bf16.mxu0 %v4570_v26 }
 0x1bb   : > { %3042 = vmatpush3.bf16.msra.mxu1 %v3878_v23 }
 0x1bc   : > { %3054 = vmatpush3.bf16.msra.mxu0 %v3878_v23  ;;  %3043 = vmatprep.subr.bf16.mxu1 %v4570_v26  ;;  %v3097_v23 = vld [vmem:[%s4544_s5 + $0x10] sm:$0xff]  }
 0x1bd   : > { %3055 = vmatprep.subr.bf16.mxu0 %v4570_v26 }
 0x1bf   : > { %3044 = vmatpush3.bf16.msra.mxu1 %v3919_v33 }
 0x1c0   : > { %3056 = vmatpush3.bf16.msra.mxu0 %v3919_v33  ;;  %3061 = vmatprep.subr.bf16.mxu1 %v4570_v26 }
 0x1c2   : > { %3046 = vmatmul.mubr.msk.bf16.vlgmr.msra.gmra.mrb[32].mxu1 %vm585_vm1, %v2449_v17 }
 0x1c3   : > { %3058 = vmatmul.mubr.msk.bf16.vlgmr.msra.gmra.mrb[52].mxu0 %vm585_vm1, %v2504_v11  ;;  %3062 = vmatpush3.bf16.msra.mxu1 %v3095_v37 }
 0x1c4   : > { %3063 = vmatprep.subr.bf16.mxu1 %v4570_v26  ;;  %3069 = vmatprep.mubr.msk.bf16.mxu1 %vm3107_vm3, %v4570_v26 }
 0x1c7   : > { %3064 = vmatpush3.bf16.msra.mxu1 %v3096_v45 }
 0x1c8   : > { %3065 = vmatprep.subr.bf16.mxu1 %v4570_v26 }
 0x1cb   : > { %3066 = vmatpush3.bf16.msra.mxu1 %v3097_v23 }
 0x1cc   : > { %3067 = vmatprep.subr.bf16.mxu1 %v4570_v26 }
 0x1cf   : > { %3068 = vmatpush3.bf16.msra.mxu1 %v3919_v33  ;;  %v1781_v33 = vld [vmem:[%s3167_s8 + $0x8] sm:$0xff] }
 0x1d2   : > { %3070 = vmatmul.mubr.msk.bf16.vlgmr.msra.gmra.mrb[36].mxu1 %vm585_vm1, %v2559_v47 }
 0x209   : > { %v1773_v24 = vpop.f32.mrb[0].mxu1 }
 0x20a   : > { %v1774_v25 = vadd.f32 %v4399_v8, %v1773_v24  ;;  %v2891_v6 = vpop.f32.mrb[1].mxu1 }
 0x20b   : > { %v1776_v26 = vpop.f32.mrb[2].mxu1 }
 0x20c   : > { %v1782_v35 = vadd.f32 %v1780_v28, %v1774_v25  ;;  %v1777_v46 = vadd.f32 %v4399_v8, %v1776_v26  ;;  %v2892_v2 = vpop.f32.mrb[3].mxu1  ;;  %v2055_v25 = vld [vmem:[%s3167_s8 + $0x58] sm:$0xff] }
 0x20d   : > { %v2219_v2 = vld [vmem:[%s3167_s8 + $0x80] sm:$0xff] }
 0x20e   : > { %1784 = vst.msk [vmem:[%s4408_s11] sm:$0xff] %vm343_vm0, %v1782_v35  ;;  %v1783_v60 = vadd.f32 %v1781_v33, %v1777_v46 }
 0x210   : > { %1785 = vst.msk [vmem:[%s4408_s11 + $0x8] sm:$0xff] %vm343_vm0, %v1783_v60 }
 0x219   : > { %v1827_v40 = vpop.f32.mrb[4].mxu1 }
 0x21a   : > { %v1828_v38 = vadd.f32 %v4399_v8, %v1827_v40  ;;  %v2903_v4 = vpop.f32.mrb[5].mxu1 }
 0x21b   : > { %v1830_v16 = vpop.f32.mrb[6].mxu1 }
 0x21c   : > { %v1836_v21 = vadd.f32 %v1834_v3, %v1828_v38  ;;  %v1831_v54 = vadd.f32 %v4399_v8, %v1830_v16  ;;  %v2904_v10 = vpop.f32.mrb[7].mxu1  ;;  %v2220_v38 = vld [vmem:[%s3167_s8 + $0x88] sm:$0xff] }
 0x21d   : > { %v2164_v10 = vld [vmem:[%s3167_s8 + $0x70] sm:$0xff] }
 0x21e   : > { %v1992_v1 = vpop.f32.mrb[32].mxu0  ;;  %2702 = vst.msk [vmem:[%s4408_s11 + $0x10] sm:$0xff] %vm343_vm0, %v1836_v21  ;;  %v1837_v32 = vadd.f32 %v1835_v20, %v1831_v54 }
 0x21f   : > { %v1993_v51 = vadd.f32 %v4399_v8, %v1992_v1  ;;  %v2939_v30 = vpop.f32.mrb[33].mxu0 }
 0x220   : > { %v1995_v34 = vpop.f32.mrb[34].mxu0  ;;  %2703 = vst.msk [vmem:[%s4408_s11 + $0x18] sm:$0xff] %vm343_vm0, %v1837_v32 }
 0x221   : > { %v2001_v19 = vadd.f32 %v1999_v49, %v1993_v51  ;;  %v1996_v12 = vadd.f32 %v4399_v8, %v1995_v34  ;;  %v2940_v0 = vpop.f32.mrb[35].mxu0  ;;  %v2165_v51 = vld [vmem:[%s3167_s8 + $0x78] sm:$0xff] }
 0x222   : > { %v2274_v0 = vld [vmem:[%s3167_s8 + $0x90] sm:$0xff] }
 0x223   : > { %2711 = vst.msk [vmem:[%s4408_s11 + $0x40] sm:$0xff] %vm343_vm0, %v2001_v19  ;;  %v2002_v27 = vadd.f32 %v2000_v58, %v1996_v12 }
 0x225   : > { %2712 = vst.msk [vmem:[%s4408_s11 + $0x48] sm:$0xff] %vm343_vm0, %v2002_v27 }
 0x22d   : > { %v1882_v15 = vpop.f32.mrb[8].mxu1 }
 0x22e   : > { %v1883_v55 = vadd.f32 %v4399_v8, %v1882_v15  ;;  %v2915_v61 = vpop.f32.mrb[9].mxu1  ;;  %v2329_v15 = vld [vmem:[%s3167_s8 + $0xa0] sm:$0xff] }
 0x22f   : > { %v1885_v7 = vpop.f32.mrb[10].mxu1 }
 0x230   : > { %v1891_v63 = vadd.f32 %v1889_v29, %v1883_v55  ;;  %v1886_v62 = vadd.f32 %v4399_v8, %v1885_v7  ;;  %v2916_v56 = vpop.f32.mrb[11].mxu1 }
 0x231   : > { %v2330_v56 = vld [vmem:[%s3167_s8 + $0xa8] sm:$0xff] }
 0x232   : > { %2705 = vst.msk [vmem:[%s4408_s11 + $0x20] sm:$0xff] %vm343_vm0, %v1891_v63  ;;  %v1892_v9 = vadd.f32 %v1890_v48, %v1886_v62  ;;  %v2275_v63 = vld [vmem:[%s3167_s8 + $0x98] sm:$0xff] }
 0x234   : > { %2706 = vst.msk [vmem:[%s4408_s11 + $0x28] sm:$0xff] %vm343_vm0, %v1892_v9 }
 0x23f   : > { %v1937_v14 = vpop.f32.mrb[12].mxu1 }
 0x240   : > { %v1938_v22 = vadd.f32 %v4399_v8, %v1937_v14  ;;  %v2927_v36 = vpop.f32.mrb[13].mxu1 }
 0x241   : > { %v1940_v37 = vpop.f32.mrb[14].mxu1 }
 0x242   : > { %v1946_v13 = vadd.f32 %v1944_v52, %v1938_v22  ;;  %v1941_v39 = vadd.f32 %v4399_v8, %v1940_v37  ;;  %v2928_v41 = vpop.f32.mrb[15].mxu1 }
 0x243   : > { %v2384_v41 = vld [vmem:[%s3167_s8 + $0xb0] sm:$0xff] }
 0x244   : > { %2708 = vst.msk [vmem:[%s4408_s11 + $0x30] sm:$0xff] %vm343_vm0, %v1946_v13  ;;  %v1947_v31 = vadd.f32 %v1945_v18, %v1941_v39 }
 0x246   : > { %2709 = vst.msk [vmem:[%s4408_s11 + $0x38] sm:$0xff] %vm343_vm0, %v1947_v31 }
 0x24b   : > { %v2102_v44 = vpop.f32.mrb[36].mxu0 }
 0x24c   : > { %v2103_v45 = vadd.f32 %v4399_v8, %v2102_v44  ;;  %v2963_v50 = vpop.f32.mrb[37].mxu0  ;;  %v2439_v44 = vld [vmem:[%s3167_s8 + $0xc0] sm:$0xff] }
 0x24d   : > { %v2105_v53 = vpop.f32.mrb[38].mxu0 }
 0x24e   : > { %v2111_v43 = vadd.f32 %v2109_v59, %v2103_v45  ;;  %v2106_v11 = vadd.f32 %v4399_v8, %v2105_v53  ;;  %v2964_v17 = vpop.f32.mrb[39].mxu0 }
 0x24f   : > { %v2047_v23 = vpop.f32.mrb[16].mxu1  ;;  %v2440_v17 = vld [vmem:[%s3167_s8 + $0xc8] sm:$0xff] }
 0x250   : > { %v2048_v57 = vadd.f32 %v4399_v8, %v2047_v23  ;;  %v2951_v47 = vpop.f32.mrb[17].mxu1  ;;  %2717 = vst.msk [vmem:[%s4408_s11 + $0x60] sm:$0xff] %vm343_vm0, %v2111_v43  ;;  %v2112_v24 = vadd.f32 %v2110_v42, %v2106_v11  ;;  %v2385_v43 = vld [vmem:[%s3167_s8 + $0xb8] sm:$0xff] }
 0x251   : > { %v2050_v28 = vpop.f32.mrb[18].mxu1 }
 0x252   : > { %v2056_v6 = vadd.f32 %v2054_v5, %v2048_v57  ;;  %v2051_v26 = vadd.f32 %v4399_v8, %v2050_v28  ;;  %v2952_v33 = vpop.f32.mrb[19].mxu1  ;;  %2718 = vst.msk [vmem:[%s4408_s11 + $0x68] sm:$0xff] %vm343_vm0, %v2112_v24 }
 0x253   : > { %v2494_v33 = vld [vmem:[%s3167_s8 + $0xd0] sm:$0xff] }
 0x254   : > { %2714 = vst.msk [vmem:[%s4408_s11 + $0x50] sm:$0xff] %vm343_vm0, %v2056_v6  ;;  %v2057_v35 = vadd.f32 %v2055_v25, %v2051_v26 }
 0x256   : > { %2715 = vst.msk [vmem:[%s4408_s11 + $0x58] sm:$0xff] %vm343_vm0, %v2057_v35 }
 0x25b   : > { %v2212_v46 = vpop.f32.mrb[40].mxu0 }
 0x25c   : > { %v2213_v60 = vadd.f32 %v4399_v8, %v2212_v46  ;;  %v2987_v40 = vpop.f32.mrb[41].mxu0  ;;  %v2549_v46 = vld [vmem:[%s3167_s8 + $0xe0] sm:$0xff] }
 0x25d   : > { %v2215_v3 = vpop.f32.mrb[42].mxu0 }
 0x25e   : > { %v2221_v4 = vadd.f32 %v2219_v2, %v2213_v60  ;;  %v2216_v16 = vadd.f32 %v4399_v8, %v2215_v3  ;;  %v2988_v20 = vpop.f32.mrb[43].mxu0 }
 0x25f   : > { %v2550_v20 = vld [vmem:[%s3167_s8 + $0xe8] sm:$0xff] }
 0x260   : > { %2723 = vst.msk [vmem:[%s4408_s11 + $0x80] sm:$0xff] %vm343_vm0, %v2221_v4  ;;  %v2222_v21 = vadd.f32 %v2220_v38, %v2216_v16  ;;  %v2495_v4 = vld [vmem:[%s3167_s8 + $0xd8] sm:$0xff] }
 0x262   : > { %2724 = vst.msk [vmem:[%s4408_s11 + $0x88] sm:$0xff] %vm343_vm0, %v2222_v21 }
 0x265   : > { %v2157_v54 = vpop.f32.mrb[20].mxu1 }
 0x266   : > { %v2158_v1 = vadd.f32 %v4399_v8, %v2157_v54  ;;  %v2975_v49 = vpop.f32.mrb[21].mxu1 }
 0x267   : > { %v2160_v32 = vpop.f32.mrb[22].mxu1 }
 0x268   : > { %v2166_v30 = vadd.f32 %v2164_v10, %v2158_v1  ;;  %v2161_v34 = vadd.f32 %v4399_v8, %v2160_v32  ;;  %v2976_v58 = vpop.f32.mrb[23].mxu1 }
 0x269   : > { %v2604_v58 = vld [vmem:[%s3167_s8 + $0xf0] sm:$0xff] }
 0x26a   : > { %2720 = vst.msk [vmem:[%s4408_s11 + $0x70] sm:$0xff] %vm343_vm0, %v2166_v30  ;;  %v2167_v19 = vadd.f32 %v2165_v51, %v2161_v34 }
 0x26c   : > { %2721 = vst.msk [vmem:[%s4408_s11 + $0x78] sm:$0xff] %vm343_vm0, %v2167_v19 }
 0x275   : > { %v2267_v12 = vpop.f32.mrb[24].mxu1 }
 0x276   : > { %v2322_v27 = vpop.f32.mrb[44].mxu0  ;;  %v2268_v29 = vadd.f32 %v4399_v8, %v2267_v12  ;;  %v2999_v55 = vpop.f32.mrb[25].mxu1 }
 0x277   : > { %v2323_v61 = vadd.f32 %v4399_v8, %v2322_v27  ;;  %v3011_v7 = vpop.f32.mrb[45].mxu0  ;;  %v2270_v48 = vpop.f32.mrb[26].mxu1  ;;  %v2605_v27 = vld [vmem:[%s3167_s8 + $0xf8] sm:$0xff] }
 0x278   : > { %v2325_v62 = vpop.f32.mrb[46].mxu0  ;;  %v2276_v9 = vadd.f32 %v2274_v0, %v2268_v29  ;;  %v2271_v14 = vadd.f32 %v4399_v8, %v2270_v48  ;;  %v3000_v52 = vpop.f32.mrb[27].mxu1 }
 0x279   : > { %v2331_v22 = vadd.f32 %v2329_v15, %v2323_v61  ;;  %v2326_v36 = vadd.f32 %v4399_v8, %v2325_v62  ;;  %v3012_v37 = vpop.f32.mrb[47].mxu0 }
 0x27a   : > { %2726 = vst.msk [vmem:[%s4408_s11 + $0x90] sm:$0xff] %vm343_vm0, %v2276_v9  ;;  %v2277_v18 = vadd.f32 %v2275_v63, %v2271_v14 }
 0x27b   : > { %2729 = vst.msk [vmem:[%s4408_s11 + $0xa0] sm:$0xff] %vm343_vm0, %v2331_v22  ;;  %v2332_v13 = vadd.f32 %v2330_v56, %v2326_v36 }
 0x27c   : > { %2727 = vst.msk [vmem:[%s4408_s11 + $0x98] sm:$0xff] %vm343_vm0, %v2277_v18 }
 0x27d   : > { %2730 = vst.msk [vmem:[%s4408_s11 + $0xa8] sm:$0xff] %vm343_vm0, %v2332_v13 }
 0x285   : > { %v2377_v39 = vpop.f32.mrb[28].mxu1 }
 0x286   : > { %v2432_v31 = vpop.f32.mrb[48].mxu0  ;;  %v2378_v59 = vadd.f32 %v4399_v8, %v2377_v39  ;;  %v3023_v45 = vpop.f32.mrb[29].mxu1 }
 0x287   : > { %v2433_v50 = vadd.f32 %v4399_v8, %v2432_v31  ;;  %v3035_v53 = vpop.f32.mrb[49].mxu0  ;;  %v2380_v42 = vpop.f32.mrb[30].mxu1 }
 0x288   : > { %v2435_v11 = vpop.f32.mrb[50].mxu0  ;;  %v2386_v23 = vadd.f32 %v2384_v41, %v2378_v59  ;;  %v2381_v5 = vadd.f32 %v4399_v8, %v2380_v42  ;;  %v3024_v57 = vpop.f32.mrb[31].mxu1 }
 0x289   : > { %v2441_v47 = vadd.f32 %v2439_v44, %v2433_v50  ;;  %v2436_v24 = vadd.f32 %v4399_v8, %v2435_v11  ;;  %v3036_v28 = vpop.f32.mrb[51].mxu0 }
 0x28a   : > { %2732 = vst.msk [vmem:[%s4408_s11 + $0xb0] sm:$0xff] %vm343_vm0, %v2386_v23  ;;  %v2387_v25 = vadd.f32 %v2385_v43, %v2381_v5 }
 0x28b   : > { %2735 = vst.msk [vmem:[%s4408_s11 + $0xc0] sm:$0xff] %vm343_vm0, %v2441_v47  ;;  %v2442_v6 = vadd.f32 %v2440_v17, %v2436_v24 }
 0x28c   : > { %2733 = vst.msk [vmem:[%s4408_s11 + $0xb8] sm:$0xff] %vm343_vm0, %v2387_v25 }
 0x28d   : > { %2736 = vst.msk [vmem:[%s4408_s11 + $0xc8] sm:$0xff] %vm343_vm0, %v2442_v6 }
 0x295   : > { %v2487_v26 = vpop.f32.mrb[32].mxu1 }
 0x296   : > { %v2542_v35 = vpop.f32.mrb[52].mxu0  ;;  %v2488_v2 = vadd.f32 %v4399_v8, %v2487_v26  ;;  %v3047_v60 = vpop.f32.mrb[33].mxu1 }
 0x297   : > { %v2543_v40 = vadd.f32 %v4399_v8, %v2542_v35  ;;  %v3059_v3 = vpop.f32.mrb[53].mxu0  ;;  %v2490_v38 = vpop.f32.mrb[34].mxu1 }
 0x298   : > { %v2545_v16 = vpop.f32.mrb[54].mxu0  ;;  %v2496_v21 = vadd.f32 %v2494_v33, %v2488_v2  ;;  %v2491_v54 = vadd.f32 %v4399_v8, %v2490_v38  ;;  %v3048_v10 = vpop.f32.mrb[35].mxu1 }
 0x299   : > { %v2551_v1 = vadd.f32 %v2549_v46, %v2543_v40  ;;  %v2546_v49 = vadd.f32 %v4399_v8, %v2545_v16  ;;  %v3060_v32 = vpop.f32.mrb[55].mxu0 }
 0x29a   : > { %2738 = vst.msk [vmem:[%s4408_s11 + $0xd0] sm:$0xff] %vm343_vm0, %v2496_v21  ;;  %v2497_v51 = vadd.f32 %v2495_v4, %v2491_v54 }
 0x29b   : > { %2741 = vst.msk [vmem:[%s4408_s11 + $0xe0] sm:$0xff] %vm343_vm0, %v2551_v1  ;;  %v2552_v30 = vadd.f32 %v2550_v20, %v2546_v49 }
 0x29c   : > { %2739 = vst.msk [vmem:[%s4408_s11 + $0xd8] sm:$0xff] %vm343_vm0, %v2497_v51 }
 0x29d   : > { %2742 = vst.msk [vmem:[%s4408_s11 + $0xe8] sm:$0xff] %vm343_vm0, %v2552_v30 }
 0x2a5   : > { %v2597_v34 = vpop.f32.mrb[36].mxu1 }
 0x2a6   : > { %v2598_v19 = vadd.f32 %v4399_v8, %v2597_v34  ;;  %v3071_v12 = vpop.f32.mrb[37].mxu1 }
 0x2a7   : > { %v2600_v0 = vpop.f32.mrb[38].mxu1 }
 0x2a8   : > { %v2606_v15 = vadd.f32 %v2604_v58, %v2598_v19  ;;  %v2601_v29 = vadd.f32 %v4399_v8, %v2600_v0  ;;  %v3072_v55 = vpop.f32.mrb[39].mxu1 }
 0x2aa   : > { %2744 = vst.msk [vmem:[%s4408_s11 + $0xf0] sm:$0xff] %vm343_vm0, %v2606_v15  ;;  %v2607_v61 = vadd.f32 %v2605_v27, %v2601_v29 }
 0x2ac   : > { %2745 = vst.msk [vmem:[%s4408_s11 + $0xf8] sm:$0xff] %vm343_vm0, %v2607_v61 }
 0x2ad PF: > { %s17_s24 = sadd.s32 1, %s3104_s24  }
 0x2ae   : > { %p14_p4 = scmp.ge.s32.totalorder %s17_s24, 4  }
 0x2b0   :  { %16 = sbr.rel (!%p14_p4) target bundleno = 1 (0x1), region = 124 }

</bundles_post_ra>
